<compile_context>
chip_gen: v6e
topology: v6e:2x2x1
jax: 0.10.0
libtpu: 0.0.40
codegen_flags: <defaults>
</compile_context>

<pallas_src>
import functools

import jax
import jax.numpy as jnp
import numpy as np
from jax.experimental import pallas as pl
from jax.experimental.pallas import tpu as pltpu

NUM_CLASSES = 19
_VMEM_LIMIT = 32 * 1024 * 1024   # explicit scoped-VMEM limit (safe on v5e..v7x)


def _round_up(v, m):
    return -(-v // m) * m


# ----------------------------------------------------------------------------
# Pallas kernels
# ----------------------------------------------------------------------------
def _fused_conv_kernel(*args, cin, stride, wc, mq, relu):
    """conv3x3(pad=1, stride s) for one image: in-kernel im2col + one matmul.

    args = (w_aug, x_phase_0..x_phase_{s*s-1}, out, slab_scratch)
      w_aug : (Cout, 9*Cin+1) bf16, columns ordered (tap, cin), last col = bias
      x_phase_k : (1, Cin, flat_len) bf16 flattened parity plane of the padded
                  image (row length wc); tap (i,j) is the static slice at lane
                  offset (i//s)*wc + (j//s) of phase ((i%s)*s + (j%s)).
      out : (1, Cout, mq); slab : (9*Cin+1, mq) VMEM scratch.
    """
    nph = stride * stride
    w_ref = args[0]
    x_refs = args[1:1 + nph]
    o_ref = args[1 + nph]
    slab_ref = args[2 + nph]
    k9 = 9 * cin
    for t in range(9):                       # static: 9 VMEM copies, no HBM
        i, j = divmod(t, 3)
        ph = (i % stride) * stride + (j % stride)
        off = (i // stride) * wc + (j // stride)
        slab_ref[t * cin:(t + 1) * cin, :] = x_refs[ph][0, :, off:off + mq]
    # constant ones row -> bias folded into the matmul (last weight column)
    slab_ref[k9:k9 + 1, :] = jnp.ones((1, mq), dtype=slab_ref.dtype)
    acc = jnp.dot(w_ref[...], slab_ref[...], preferred_element_type=jnp.float32)
    if relu:
        acc = jnp.maximum(acc, 0.0)
    o_ref[0] = acc.astype(o_ref.dtype)


def _fused_head_kernel(w1_ref, w2_ref, b2_ref, x_ref, o_ref, slab_ref, *,
                       cin, wc, mq):
    """Fused sem_head: in-kernel im2col + conv3x3(+BN)+ReLU + 1x1 classifier."""
    k9 = 9 * cin
    for t in range(9):
        i, j = divmod(t, 3)
        off = i * wc + j
        slab_ref[t * cin:(t + 1) * cin, :] = x_ref[0, :, off:off + mq]
    slab_ref[k9:k9 + 1, :] = jnp.ones((1, mq), dtype=slab_ref.dtype)
    h = jnp.dot(w1_ref[...], slab_ref[...], preferred_element_type=jnp.float32)
    h = jnp.maximum(h, 0.0).astype(w2_ref.dtype)          # (64, mq) bf16, VMEM only
    out = jnp.dot(w2_ref[...], h, preferred_element_type=jnp.float32)
    o_ref[0] = out + b2_ref[...]                           # (Ncls_pad, mq) f32


def _upsample_kernel(ah_ref, awt_ref, x_ref, o_ref, *, C, h):
    """Bilinear upsample for one (batch, row-tile) step, all channels batched.

    ah_ref : (tH, h) bf16 row-interp block, awt_ref : (w, W) bf16,
    x_ref  : (1, C*h, w) bf16 (full input rows), o_ref : (1, C, tH, W) f32.
    """
    tH = ah_ref.shape[0]
    W = awt_ref.shape[1]
    # contract w over all channels/rows at once (lane-dense output width W)
    t = jnp.dot(x_ref[0], awt_ref[...], preferred_element_type=jnp.float32)
    t = t.astype(jnp.bfloat16).reshape(C, h, W)
    # contract h as one batched matmul over channels (no per-channel unroll)
    ahb = jnp.broadcast_to(ah_ref[...], (C, tH, h))
    out = jnp.einsum('cyr,crx->cyx', ahb, t,
                     preferred_element_type=jnp.float32)   # (C, tH, W)
    o_ref[0] = out


# ----------------------------------------------------------------------------
# Wrapper-side layout plumbing (pad + parity split + flatten; ~1x bytes, no 9x)
# ----------------------------------------------------------------------------
def _phase_split(x_bchw, stride):
    """Pad by 1, split padded image into stride^2 parity planes, flatten.

    Returns (phases list of (B, C, flat_len) bf16, wc, mq, ho, wo) where
    wc is the flattened row length, mq the (128-aligned) matmul pixel count.
    """
    B, C, H, W = x_bchw.shape
    ho, wo = H // stride, W // stride
    ext = 2 // stride                       # halo in phase coords: 2 (s=1), 1 (s=2)
    wc, rc = wo + ext, ho + ext
    mq = _round_up(ho * wc, 128)
    flat_len = _round_up(mq + ext * wc + ext, 128)
    xp = jnp.pad(x_bchw, ((0, 0), (0, 0), (1, 1), (1, 1)))
    phases = []
    for p in range(stride):
        for q in range(stride):
            ph = xp[:, :, p::stride, q::stride][:, :, :rc, :wc]
            ph = ph.reshape(B, C, rc * wc)
            ph = jnp.pad(ph, ((0, 0), (0, 0), (0, flat_len - rc * wc)))
            phases.append(ph.astype(jnp.bfloat16))
    return phases, wc, mq, ho, wo


def _unflatten(y_flat, ho, wo, wc):
    """(B, Cout, mq) flat conv output -> (B, Cout, ho, wo)."""
    B, Cout = y_flat.shape[:2]
    return y_flat[:, :, :ho * wc].reshape(B, Cout, ho, wc)[..., :wo]


# ----------------------------------------------------------------------------
# pallas_call wrappers
# ----------------------------------------------------------------------------
def fused_conv3x3(x, w_aug, *, stride, relu, out_dtype):
    """3x3 conv (pad=1) with in-kernel im2col, one matmul per batch element."""
    # TODO(synk): for large resolutions (e.g. 1024x2048 inputs) add a row-chunk
    # grid axis (wrapper prepares halo'd chunks) so per-step blocks fit VMEM.
    B, C = x.shape[:2]
    cout, k1 = w_aug.shape
    cin = (k1 - 1) // 9
    assert cin == C
    phases, wc, mq, ho, wo = _phase_split(x, stride)
    flat_len = phases[0].shape[-1]
    kern = functools.partial(_fused_conv_kernel, cin=cin, stride=stride,
                             wc=wc, mq=mq, relu=relu)
    y = pl.pallas_call(
        kern,
        out_shape=jax.ShapeDtypeStruct((B, cout, mq), out_dtype),
        grid=(B,),
        in_specs=[pl.BlockSpec((cout, k1), lambda b: (0, 0))]
                 + [pl.BlockSpec((1, cin, flat_len), lambda b: (b, 0, 0))]
                 * (stride * stride),
        out_specs=pl.BlockSpec((1, cout, mq), lambda b: (b, 0, 0)),
        scratch_shapes=[pltpu.VMEM((9 * cin + 1, mq), jnp.bfloat16)],
        compiler_params=pltpu.CompilerParams(
            dimension_semantics=("parallel",),
            vmem_limit_bytes=_VMEM_LIMIT),
    )(w_aug, *phases)
    return _unflatten(y, ho, wo, wc)


def fused_sem_head(x_s8, w1_aug, w2, b2):
    """Fused conv3x3(+BN)+ReLU + 1x1 classifier on the s8 feature map."""
    B, C = x_s8.shape[:2]
    c1, k1 = w1_aug.shape
    c2 = w2.shape[0]
    cin = (k1 - 1) // 9
    assert cin == C
    phases, wc, mq, ho, wo = _phase_split(x_s8, 1)
    flat_len = phases[0].shape[-1]
    kern = functools.partial(_fused_head_kernel, cin=cin, wc=wc, mq=mq)
    y = pl.pallas_call(
        kern,
        out_shape=jax.ShapeDtypeStruct((B, c2, mq), jnp.float32),
        grid=(B,),
        in_specs=[
            pl.BlockSpec((c1, k1), lambda b: (0, 0)),
            pl.BlockSpec((c2, c1), lambda b: (0, 0)),
            pl.BlockSpec((c2, 1), lambda b: (0, 0)),
            pl.BlockSpec((1, cin, flat_len), lambda b: (b, 0, 0)),
        ],
        out_specs=pl.BlockSpec((1, c2, mq), lambda b: (b, 0, 0)),
        scratch_shapes=[pltpu.VMEM((9 * cin + 1, mq), jnp.bfloat16)],
        compiler_params=pltpu.CompilerParams(
            dimension_semantics=("parallel",),
            vmem_limit_bytes=_VMEM_LIMIT),
    )(w1_aug, w2, b2, phases[0])
    return _unflatten(y, ho, wo, wc)            # (B, c2_pad, h8, w8) f32


def _bilinear_matrix(out_size, in_size, align_corners):
    if align_corners and out_size > 1:
        src = np.arange(out_size) * (in_size - 1) / max(out_size - 1, 1)
    else:
        scale = in_size / out_size
        src = (np.arange(out_size) + 0.5) * scale - 0.5
    src = np.clip(src, 0.0, in_size - 1)        # explicit edge clamp (review fix)
    i0 = np.clip(np.floor(src).astype(np.int64), 0, in_size - 1)
    i1 = np.minimum(i0 + 1, in_size - 1)
    lam = (src - i0).astype(np.float32)
    A = np.zeros((out_size, in_size), np.float32)
    A[np.arange(out_size), i0] += 1.0 - lam
    A[np.arange(out_size), i1] += lam
    return A


def _pick_h_tile(H, C, W):
    """Largest output-row tile dividing H, >=2 grid steps if possible, small
    enough that the double-buffered f32 output block stays well under VMEM."""
    budget = 6 * 1024 * 1024
    cands = [t for t in (256, 128, 64, 32, 16, 8)
             if H % t == 0 and C * t * W * 4 <= budget]
    for t in cands:
        if H // t >= 2:
            return t
    return cands[0] if cands else H


def bilinear_upsample(x_bchw, out_hw, align_corners=False):
    """(B, C, h, w) -> (B, C, H, W) f32, matching F.interpolate('bilinear')."""
    B, C, h, w = x_bchw.shape
    H, W = out_hw
    ah = jnp.asarray(_bilinear_matrix(H, h, align_corners), jnp.bfloat16)    # (H, h)
    awt = jnp.asarray(_bilinear_matrix(W, w, align_corners).T, jnp.bfloat16)  # (w, W)
    tH = _pick_h_tile(H, C, W)
    x2 = x_bchw.astype(jnp.bfloat16).reshape(B, C * h, w)
    return pl.pallas_call(
        functools.partial(_upsample_kernel, C=C, h=h),
        out_shape=jax.ShapeDtypeStruct((B, C, H, W), jnp.float32),
        grid=(B, H // tH),
        in_specs=[
            pl.BlockSpec((tH, h), lambda b, k: (k, 0)),
            pl.BlockSpec((w, W), lambda b, k: (0, 0)),
            pl.BlockSpec((1, C * h, w), lambda b, k: (b, 0, 0)),
        ],
        out_specs=pl.BlockSpec((1, C, tH, W), lambda b, k: (b, 0, k, 0)),
        compiler_params=pltpu.CompilerParams(
            dimension_semantics=("parallel", "parallel"),
            vmem_limit_bytes=_VMEM_LIMIT),
    )(ah, awt, x2)


# ----------------------------------------------------------------------------
# Parameters & forward
# ----------------------------------------------------------------------------
def init_params(key, in_ch=3, stem=(16, 32, 64), head_ch=64,
                num_classes=NUM_CLASSES, dtype=jnp.bfloat16):
    """Synthetic params, packed (Cout, 9*Cin+1) bf16 with bias folded as the
    last column (consumed by the in-kernel ones-row)."""
    def pack_conv(w, b):
        cout = w.shape[0]
        wm = jnp.transpose(w, (0, 2, 3, 1)).reshape(cout, -1)   # (tap, cin) cols
        return jnp.concatenate([wm, b[:, None]], axis=1).astype(dtype)

    ks = jax.random.split(key, 8)
    p = {}
    chans = [in_ch] + list(stem)
    for i in range(3):                       # stride-2 stem convs -> s8 backbone
        w = jax.random.normal(ks[i], (chans[i + 1], chans[i], 3, 3), jnp.float32) * 0.05
        b = jnp.zeros((chans[i + 1],), jnp.float32)
        p[f"stem{i}_w"] = pack_conv(w, b)
    # semantic head: conv3x3 with BN folded in, then 1x1 classifier
    w_h = jax.random.normal(ks[4], (head_ch, stem[-1], 3, 3), jnp.float32) * 0.05
    b_h = jnp.zeros((head_ch,), jnp.float32)
    gamma = 1.0 + 0.1 * jnp.cos(jnp.arange(head_ch, dtype=jnp.float32))
    beta = 0.01 * jnp.sin(jnp.arange(head_ch, dtype=jnp.float32))
    w_h = w_h * gamma[:, None, None, None]
    b_h = b_h * gamma + beta
    p["head_w"] = pack_conv(w_h, b_h)
    # 1x1 classifier, output channels padded 19 -> 24 (sublane-aligned stores)
    ncls_pad = _round_up(num_classes, 8)
    w_c = jax.random.normal(ks[5], (num_classes, head_ch), jnp.float32) * 0.05
    w_c = jnp.concatenate(
        [w_c, jnp.zeros((ncls_pad - num_classes, head_ch), jnp.float32)], axis=0)
    p["cls_w"] = w_c.astype(dtype)
    p["cls_b"] = jnp.zeros((ncls_pad, 1), jnp.float32)
    return p


def hrtlab_forward(params, x, align_corners=False):
    """Eval path of HRTLab (sem_only=True): semantic logits at input resolution."""
    # TODO(synk): the searched HyCTAS backbone is replaced by a deterministic
    # 3x stride-2 conv stem producing the s8 feature map.
    # TODO(synk): training branch (aux s16/s32 heads, semantic/center/offset
    # losses, offset rescaling) and the instance head are not implemented.
    B, _, H, W = x.shape
    assert H % 8 == 0 and W % 8 == 0
    f = x.astype(jnp.bfloat16)
    for i in range(3):
        f = fused_conv3x3(f, params[f"stem{i}_w"], stride=2, relu=True,
                          out_dtype=jnp.bfloat16)
    # sem_head (HRTSemHeadLight): conv3x3+BN+ReLU fused with the 1x1 classifier
    logits = fused_sem_head(f, params["head_w"], params["cls_w"], params["cls_b"])
    logits = logits[:, :NUM_CLASSES]                    # drop channel padding
    # _upsample_predictions: bilinear x8 to input resolution (align_corners=False)
    return bilinear_upsample(logits, (H, W), align_corners=align_corners)


if __name__ == "__main__":
    key = jax.random.PRNGKey(0)
    k_x, k_p = jax.random.split(key)
    x = jax.random.normal(k_x, (2, 3, 64, 64), jnp.float32)   # NCHW, like PyTorch
    params = init_params(k_p)

    out = jax.jit(hrtlab_forward)(params, x)
    out = jax.block_until_ready(out)
    assert out.shape == (2, NUM_CLASSES, 64, 64), out.shape
    assert out.dtype == jnp.float32
    assert bool(jnp.isfinite(out).all())
    print("KERNEL_OK")
</pallas_src>

<mosaic_0001>
module attributes {stable_mosaic.version = 11 : i64} {
  func.func @_fused_conv_kernel(%arg0: i32, %arg1: memref<16x28xbf16, #tpu.memory_space<vmem>>, %arg2: memref<1x3x1280xbf16, #tpu.memory_space<vmem>>, %arg3: memref<1x3x1280xbf16, #tpu.memory_space<vmem>>, %arg4: memref<1x3x1280xbf16, #tpu.memory_space<vmem>>, %arg5: memref<1x3x1280xbf16, #tpu.memory_space<vmem>>, %arg6: memref<1x16x1152xbf16, #tpu.memory_space<vmem>>, %arg7: memref<28x1152xbf16, #tpu.memory_space<vmem>>) attributes {dimension_semantics = [#tpu.dimension_semantics<parallel>], iteration_bounds = array<i64: 2>, scalar_prefetch = 0 : i64, scratch_operands = 1 : i64, tpu.core_type = #tpu.core_type<tc>, window_params = [{pipeline_mode = #tpu.pipeline_mode<synchronous>, transform_indices = @transform_0, window_bounds = array<i64: 16, 28>}, {transform_indices = @transform_1, window_bounds = array<i64: 1, 3, 1280>}, {transform_indices = @transform_2, window_bounds = array<i64: 1, 3, 1280>}, {transform_indices = @transform_3, window_bounds = array<i64: 1, 3, 1280>}, {transform_indices = @transform_4, window_bounds = array<i64: 1, 3, 1280>}, {transform_indices = @transform_5, window_bounds = array<i64: 1, 16, 1152>}]} {
    %c0 = arith.constant 0 : index
    %c0_0 = arith.constant 0 : index
    %c0_1 = arith.constant 0 : index
    %0 = vector.load %arg2[%c0, %c0_0, %c0_1] : memref<1x3x1280xbf16, #tpu.memory_space<vmem>>, vector<1x3x1152xbf16>
    %1 = vector.shape_cast %0 : vector<1x3x1152xbf16> to vector<3x1152xbf16>
    %c0_2 = arith.constant 0 : index
    %c0_3 = arith.constant 0 : index
    %2 = vector.load %arg7[%c0_2, %c0_3] : memref<28x1152xbf16, #tpu.memory_space<vmem>>, vector<3x1152xbf16>
    tpu.vector_store %arg7[%c0_2, %c0_3], %1 {strides = array<i32>} : memref<28x1152xbf16, #tpu.memory_space<vmem>>, vector<3x1152xbf16>,
    %c0_4 = arith.constant 0 : index
    %c0_5 = arith.constant 0 : index
    %c0_6 = arith.constant 0 : index
    %3 = vector.load %arg3[%c0_4, %c0_5, %c0_6] : memref<1x3x1280xbf16, #tpu.memory_space<vmem>>, vector<1x3x1152xbf16>
    %4 = vector.shape_cast %3 : vector<1x3x1152xbf16> to vector<3x1152xbf16>
    %c3 = arith.constant 3 : index
    %c0_7 = arith.constant 0 : index
    %5 = vector.load %arg7[%c3, %c0_7] : memref<28x1152xbf16, #tpu.memory_space<vmem>>, vector<3x1152xbf16>
    tpu.vector_store %arg7[%c3, %c0_7], %4 {strides = array<i32>} : memref<28x1152xbf16, #tpu.memory_space<vmem>>, vector<3x1152xbf16>,
    %c0_8 = arith.constant 0 : index
    %c0_9 = arith.constant 0 : index
    %c1 = arith.constant 1 : index
    %6 = vector.load %arg2[%c0_8, %c0_9, %c1] : memref<1x3x1280xbf16, #tpu.memory_space<vmem>>, vector<1x3x1152xbf16>
    %7 = vector.shape_cast %6 : vector<1x3x1152xbf16> to vector<3x1152xbf16>
    %c6 = arith.constant 6 : index
    %c0_10 = arith.constant 0 : index
    %8 = vector.load %arg7[%c6, %c0_10] : memref<28x1152xbf16, #tpu.memory_space<vmem>>, vector<3x1152xbf16>
    tpu.vector_store %arg7[%c6, %c0_10], %7 {strides = array<i32>} : memref<28x1152xbf16, #tpu.memory_space<vmem>>, vector<3x1152xbf16>,
    %c0_11 = arith.constant 0 : index
    %c0_12 = arith.constant 0 : index
    %c0_13 = arith.constant 0 : index
    %9 = vector.load %arg4[%c0_11, %c0_12, %c0_13] : memref<1x3x1280xbf16, #tpu.memory_space<vmem>>, vector<1x3x1152xbf16>
    %10 = vector.shape_cast %9 : vector<1x3x1152xbf16> to vector<3x1152xbf16>
    %c9 = arith.constant 9 : index
    %c0_14 = arith.constant 0 : index
    %11 = vector.load %arg7[%c9, %c0_14] : memref<28x1152xbf16, #tpu.memory_space<vmem>>, vector<3x1152xbf16>
    tpu.vector_store %arg7[%c9, %c0_14], %10 {strides = array<i32>} : memref<28x1152xbf16, #tpu.memory_space<vmem>>, vector<3x1152xbf16>,
    %c0_15 = arith.constant 0 : index
    %c0_16 = arith.constant 0 : index
    %c0_17 = arith.constant 0 : index
    %12 = vector.load %arg5[%c0_15, %c0_16, %c0_17] : memref<1x3x1280xbf16, #tpu.memory_space<vmem>>, vector<1x3x1152xbf16>
    %13 = vector.shape_cast %12 : vector<1x3x1152xbf16> to vector<3x1152xbf16>
    %c12 = arith.constant 12 : index
    %c0_18 = arith.constant 0 : index
    %14 = vector.load %arg7[%c12, %c0_18] : memref<28x1152xbf16, #tpu.memory_space<vmem>>, vector<3x1152xbf16>
    tpu.vector_store %arg7[%c12, %c0_18], %13 {strides = array<i32>} : memref<28x1152xbf16, #tpu.memory_space<vmem>>, vector<3x1152xbf16>,
    %c0_19 = arith.constant 0 : index
    %c0_20 = arith.constant 0 : index
    %c1_21 = arith.constant 1 : index
    %15 = vector.load %arg4[%c0_19, %c0_20, %c1_21] : memref<1x3x1280xbf16, #tpu.memory_space<vmem>>, vector<1x3x1152xbf16>
    %16 = vector.shape_cast %15 : vector<1x3x1152xbf16> to vector<3x1152xbf16>
    %c15 = arith.constant 15 : index
    %c0_22 = arith.constant 0 : index
    %17 = vector.load %arg7[%c15, %c0_22] : memref<28x1152xbf16, #tpu.memory_space<vmem>>, vector<3x1152xbf16>
    tpu.vector_store %arg7[%c15, %c0_22], %16 {strides = array<i32>} : memref<28x1152xbf16, #tpu.memory_space<vmem>>, vector<3x1152xbf16>,
    %c0_23 = arith.constant 0 : index
    %c0_24 = arith.constant 0 : index
    %c33 = arith.constant 33 : index
    %18 = vector.load %arg2[%c0_23, %c0_24, %c33] : memref<1x3x1280xbf16, #tpu.memory_space<vmem>>, vector<1x3x1152xbf16>
    %19 = vector.shape_cast %18 : vector<1x3x1152xbf16> to vector<3x1152xbf16>
    %c18 = arith.constant 18 : index
    %c0_25 = arith.constant 0 : index
    %20 = vector.load %arg7[%c18, %c0_25] : memref<28x1152xbf16, #tpu.memory_space<vmem>>, vector<3x1152xbf16>
    tpu.vector_store %arg7[%c18, %c0_25], %19 {strides = array<i32>} : memref<28x1152xbf16, #tpu.memory_space<vmem>>, vector<3x1152xbf16>,
    %c0_26 = arith.constant 0 : index
    %c0_27 = arith.constant 0 : index
    %c33_28 = arith.constant 33 : index
    %21 = vector.load %arg3[%c0_26, %c0_27, %c33_28] : memref<1x3x1280xbf16, #tpu.memory_space<vmem>>, vector<1x3x1152xbf16>
    %22 = vector.shape_cast %21 : vector<1x3x1152xbf16> to vector<3x1152xbf16>
    %c21 = arith.constant 21 : index
    %c0_29 = arith.constant 0 : index
    %23 = vector.load %arg7[%c21, %c0_29] : memref<28x1152xbf16, #tpu.memory_space<vmem>>, vector<3x1152xbf16>
    tpu.vector_store %arg7[%c21, %c0_29], %22 {strides = array<i32>} : memref<28x1152xbf16, #tpu.memory_space<vmem>>, vector<3x1152xbf16>,
    %c0_30 = arith.constant 0 : index
    %c0_31 = arith.constant 0 : index
    %c34 = arith.constant 34 : index
    %24 = vector.load %arg2[%c0_30, %c0_31, %c34] : memref<1x3x1280xbf16, #tpu.memory_space<vmem>>, vector<1x3x1152xbf16>
    %25 = vector.shape_cast %24 : vector<1x3x1152xbf16> to vector<3x1152xbf16>
    %c24 = arith.constant 24 : index
    %c0_32 = arith.constant 0 : index
    %26 = vector.load %arg7[%c24, %c0_32] : memref<28x1152xbf16, #tpu.memory_space<vmem>>, vector<3x1152xbf16>
    tpu.vector_store %arg7[%c24, %c0_32], %25 {strides = array<i32>} : memref<28x1152xbf16, #tpu.memory_space<vmem>>, vector<3x1152xbf16>,
    %cst = arith.constant 1.000000e+00 : bf16
    %27 = vector.broadcast %cst : bf16 to vector<1x1152xbf16>
    %c27 = arith.constant 27 : index
    %c0_33 = arith.constant 0 : index
    %28 = vector.load %arg7[%c27, %c0_33] : memref<28x1152xbf16, #tpu.memory_space<vmem>>, vector<1x1152xbf16>
    tpu.vector_store %arg7[%c27, %c0_33], %27 {strides = array<i32>} : memref<28x1152xbf16, #tpu.memory_space<vmem>>, vector<1x1152xbf16>,
    %c0_34 = arith.constant 0 : index
    %c0_35 = arith.constant 0 : index
    %29 = vector.load %arg1[%c0_34, %c0_35] : memref<16x28xbf16, #tpu.memory_space<vmem>>, vector<16x28xbf16>
    %c0_36 = arith.constant 0 : index
    %c0_37 = arith.constant 0 : index
    %30 = vector.load %arg7[%c0_36, %c0_37] : memref<28x1152xbf16, #tpu.memory_space<vmem>>, vector<28x1152xbf16>
    %cst_38 = arith.constant dense<0.000000e+00> : vector<16x1152xf32>
    %31 = tpu.matmul %29, %30, %cst_38 {dimension_numbers = #tpu.dot_dimension_numbers<[1], [0], [0], [1], [0, 0, 1, 1], [], []>} : vector<16x28xbf16>, vector<28x1152xbf16>, vector<16x1152xf32> -> vector<16x1152xf32>
    %cst_39 = arith.constant 0.000000e+00 : f32
    %32 = vector.broadcast %cst_39 : f32 to vector<16x1152xf32>
    %33 = arith.maximumf %31, %32 : vector<16x1152xf32>
    %34 = arith.truncf %33 : vector<16x1152xf32> to vector<16x1152xbf16>
    %c0_40 = arith.constant 0 : index
    %c0_41 = arith.constant 0 : index
    %c0_42 = arith.constant 0 : index
    %35 = vector.load %arg6[%c0_40, %c0_41, %c0_42] : memref<1x16x1152xbf16, #tpu.memory_space<vmem>>, vector<1x16x1152xbf16>
    %36 = vector.shape_cast %35 : vector<1x16x1152xbf16> to vector<16x1152xbf16>
    %37 = vector.shape_cast %34 : vector<16x1152xbf16> to vector<1x16x1152xbf16>
    tpu.vector_store %arg6[%c0_40, %c0_41, %c0_42], %37 {strides = array<i32>} : memref<1x16x1152xbf16, #tpu.memory_space<vmem>>, vector<1x16x1152xbf16>,
    return
  }
  func.func @transform_0(%arg0: i32) -> (i32, i32) {
    %c0_i32 = arith.constant 0 : i32
    %c0_i32_0 = arith.constant 0 : i32
    %c0_i32_1 = arith.constant 0 : i32
    return %c0_i32, %c0_i32_0 : i32, i32
  }
  func.func @transform_1(%arg0: i32) -> (i32, i32, i32) {
    %c0_i32 = arith.constant 0 : i32
    %c0_i32_0 = arith.constant 0 : i32
    %c0_i32_1 = arith.constant 0 : i32
    return %arg0, %c0_i32, %c0_i32_0 : i32, i32, i32
  }
  func.func @transform_2(%arg0: i32) -> (i32, i32, i32) {
    %c0_i32 = arith.constant 0 : i32
    %c0_i32_0 = arith.constant 0 : i32
    %c0_i32_1 = arith.constant 0 : i32
    return %arg0, %c0_i32, %c0_i32_0 : i32, i32, i32
  }
  func.func @transform_3(%arg0: i32) -> (i32, i32, i32) {
    %c0_i32 = arith.constant 0 : i32
    %c0_i32_0 = arith.constant 0 : i32
    %c0_i32_1 = arith.constant 0 : i32
    return %arg0, %c0_i32, %c0_i32_0 : i32, i32, i32
  }
  func.func @transform_4(%arg0: i32) -> (i32, i32, i32) {
    %c0_i32 = arith.constant 0 : i32
    %c0_i32_0 = arith.constant 0 : i32
    %c0_i32_1 = arith.constant 0 : i32
    return %arg0, %c0_i32, %c0_i32_0 : i32, i32, i32
  }
  func.func @transform_5(%arg0: i32) -> (i32, i32, i32) {
    %c0_i32 = arith.constant 0 : i32
    %c0_i32_0 = arith.constant 0 : i32
    %c0_i32_1 = arith.constant 0 : i32
    return %arg0, %c0_i32, %c0_i32_0 : i32, i32, i32
  }
}

module attributes {stable_mosaic.version = 11 : i64} {
  func.func @_fused_conv_kernel(%arg0: i32, %arg1: memref<32x145xbf16, #tpu.memory_space<vmem>>, %arg2: memref<1x16x512xbf16, #tpu.memory_space<vmem>>, %arg3: memref<1x16x512xbf16, #tpu.memory_space<vmem>>, %arg4: memref<1x16x512xbf16, #tpu.memory_space<vmem>>, %arg5: memref<1x16x512xbf16, #tpu.memory_space<vmem>>, %arg6: memref<1x32x384xbf16, #tpu.memory_space<vmem>>, %arg7: memref<145x384xbf16, #tpu.memory_space<vmem>>) attributes {dimension_semantics = [#tpu.dimension_semantics<parallel>], iteration_bounds = array<i64: 2>, scalar_prefetch = 0 : i64, scratch_operands = 1 : i64, tpu.core_type = #tpu.core_type<tc>, window_params = [{pipeline_mode = #tpu.pipeline_mode<synchronous>, transform_indices = @transform_0, window_bounds = array<i64: 32, 145>}, {transform_indices = @transform_1, window_bounds = array<i64: 1, 16, 512>}, {transform_indices = @transform_2, window_bounds = array<i64: 1, 16, 512>}, {transform_indices = @transform_3, window_bounds = array<i64: 1, 16, 512>}, {transform_indices = @transform_4, window_bounds = array<i64: 1, 16, 512>}, {transform_indices = @transform_5, window_bounds = array<i64: 1, 32, 384>}]} {
    %c0 = arith.constant 0 : index
    %c0_0 = arith.constant 0 : index
    %c0_1 = arith.constant 0 : index
    %0 = vector.load %arg2[%c0, %c0_0, %c0_1] : memref<1x16x512xbf16, #tpu.memory_space<vmem>>, vector<1x16x384xbf16>
    %1 = vector.shape_cast %0 : vector<1x16x384xbf16> to vector<16x384xbf16>
    %c0_2 = arith.constant 0 : index
    %c0_3 = arith.constant 0 : index
    %2 = vector.load %arg7[%c0_2, %c0_3] : memref<145x384xbf16, #tpu.memory_space<vmem>>, vector<16x384xbf16>
    tpu.vector_store %arg7[%c0_2, %c0_3], %1 {strides = array<i32>} : memref<145x384xbf16, #tpu.memory_space<vmem>>, vector<16x384xbf16>,
    %c0_4 = arith.constant 0 : index
    %c0_5 = arith.constant 0 : index
    %c0_6 = arith.constant 0 : index
    %3 = vector.load %arg3[%c0_4, %c0_5, %c0_6] : memref<1x16x512xbf16, #tpu.memory_space<vmem>>, vector<1x16x384xbf16>
    %4 = vector.shape_cast %3 : vector<1x16x384xbf16> to vector<16x384xbf16>
    %c16 = arith.constant 16 : index
    %c0_7 = arith.constant 0 : index
    %5 = vector.load %arg7[%c16, %c0_7] : memref<145x384xbf16, #tpu.memory_space<vmem>>, vector<16x384xbf16>
    tpu.vector_store %arg7[%c16, %c0_7], %4 {strides = array<i32>} : memref<145x384xbf16, #tpu.memory_space<vmem>>, vector<16x384xbf16>,
    %c0_8 = arith.constant 0 : index
    %c0_9 = arith.constant 0 : index
    %c1 = arith.constant 1 : index
    %6 = vector.load %arg2[%c0_8, %c0_9, %c1] : memref<1x16x512xbf16, #tpu.memory_space<vmem>>, vector<1x16x384xbf16>
    %7 = vector.shape_cast %6 : vector<1x16x384xbf16> to vector<16x384xbf16>
    %c32 = arith.constant 32 : index
    %c0_10 = arith.constant 0 : index
    %8 = vector.load %arg7[%c32, %c0_10] : memref<145x384xbf16, #tpu.memory_space<vmem>>, vector<16x384xbf16>
    tpu.vector_store %arg7[%c32, %c0_10], %7 {strides = array<i32>} : memref<145x384xbf16, #tpu.memory_space<vmem>>, vector<16x384xbf16>,
    %c0_11 = arith.constant 0 : index
    %c0_12 = arith.constant 0 : index
    %c0_13 = arith.constant 0 : index
    %9 = vector.load %arg4[%c0_11, %c0_12, %c0_13] : memref<1x16x512xbf16, #tpu.memory_space<vmem>>, vector<1x16x384xbf16>
    %10 = vector.shape_cast %9 : vector<1x16x384xbf16> to vector<16x384xbf16>
    %c48 = arith.constant 48 : index
    %c0_14 = arith.constant 0 : index
    %11 = vector.load %arg7[%c48, %c0_14] : memref<145x384xbf16, #tpu.memory_space<vmem>>, vector<16x384xbf16>
    tpu.vector_store %arg7[%c48, %c0_14], %10 {strides = array<i32>} : memref<145x384xbf16, #tpu.memory_space<vmem>>, vector<16x384xbf16>,
    %c0_15 = arith.constant 0 : index
    %c0_16 = arith.constant 0 : index
    %c0_17 = arith.constant 0 : index
    %12 = vector.load %arg5[%c0_15, %c0_16, %c0_17] : memref<1x16x512xbf16, #tpu.memory_space<vmem>>, vector<1x16x384xbf16>
    %13 = vector.shape_cast %12 : vector<1x16x384xbf16> to vector<16x384xbf16>
    %c64 = arith.constant 64 : index
    %c0_18 = arith.constant 0 : index
    %14 = vector.load %arg7[%c64, %c0_18] : memref<145x384xbf16, #tpu.memory_space<vmem>>, vector<16x384xbf16>
    tpu.vector_store %arg7[%c64, %c0_18], %13 {strides = array<i32>} : memref<145x384xbf16, #tpu.memory_space<vmem>>, vector<16x384xbf16>,
    %c0_19 = arith.constant 0 : index
    %c0_20 = arith.constant 0 : index
    %c1_21 = arith.constant 1 : index
    %15 = vector.load %arg4[%c0_19, %c0_20, %c1_21] : memref<1x16x512xbf16, #tpu.memory_space<vmem>>, vector<1x16x384xbf16>
    %16 = vector.shape_cast %15 : vector<1x16x384xbf16> to vector<16x384xbf16>
    %c80 = arith.constant 80 : index
    %c0_22 = arith.constant 0 : index
    %17 = vector.load %arg7[%c80, %c0_22] : memref<145x384xbf16, #tpu.memory_space<vmem>>, vector<16x384xbf16>
    tpu.vector_store %arg7[%c80, %c0_22], %16 {strides = array<i32>} : memref<145x384xbf16, #tpu.memory_space<vmem>>, vector<16x384xbf16>,
    %c0_23 = arith.constant 0 : index
    %c0_24 = arith.constant 0 : index
    %c17 = arith.constant 17 : index
    %18 = vector.load %arg2[%c0_23, %c0_24, %c17] : memref<1x16x512xbf16, #tpu.memory_space<vmem>>, vector<1x16x384xbf16>
    %19 = vector.shape_cast %18 : vector<1x16x384xbf16> to vector<16x384xbf16>
    %c96 = arith.constant 96 : index
    %c0_25 = arith.constant 0 : index
    %20 = vector.load %arg7[%c96, %c0_25] : memref<145x384xbf16, #tpu.memory_space<vmem>>, vector<16x384xbf16>
    tpu.vector_store %arg7[%c96, %c0_25], %19 {strides = array<i32>} : memref<145x384xbf16, #tpu.memory_space<vmem>>, vector<16x384xbf16>,
    %c0_26 = arith.constant 0 : index
    %c0_27 = arith.constant 0 : index
    %c17_28 = arith.constant 17 : index
    %21 = vector.load %arg3[%c0_26, %c0_27, %c17_28] : memref<1x16x512xbf16, #tpu.memory_space<vmem>>, vector<1x16x384xbf16>
    %22 = vector.shape_cast %21 : vector<1x16x384xbf16> to vector<16x384xbf16>
    %c112 = arith.constant 112 : index
    %c0_29 = arith.constant 0 : index
    %23 = vector.load %arg7[%c112, %c0_29] : memref<145x384xbf16, #tpu.memory_space<vmem>>, vector<16x384xbf16>
    tpu.vector_store %arg7[%c112, %c0_29], %22 {strides = array<i32>} : memref<145x384xbf16, #tpu.memory_space<vmem>>, vector<16x384xbf16>,
    %c0_30 = arith.constant 0 : index
    %c0_31 = arith.constant 0 : index
    %c18 = arith.constant 18 : index
    %24 = vector.load %arg2[%c0_30, %c0_31, %c18] : memref<1x16x512xbf16, #tpu.memory_space<vmem>>, vector<1x16x384xbf16>
    %25 = vector.shape_cast %24 : vector<1x16x384xbf16> to vector<16x384xbf16>
    %c128 = arith.constant 128 : index
    %c0_32 = arith.constant 0 : index
    %26 = vector.load %arg7[%c128, %c0_32] : memref<145x384xbf16, #tpu.memory_space<vmem>>, vector<16x384xbf16>
    tpu.vector_store %arg7[%c128, %c0_32], %25 {strides = array<i32>} : memref<145x384xbf16, #tpu.memory_space<vmem>>, vector<16x384xbf16>,
    %cst = arith.constant 1.000000e+00 : bf16
    %27 = vector.broadcast %cst : bf16 to vector<1x384xbf16>
    %c144 = arith.constant 144 : index
    %c0_33 = arith.constant 0 : index
    %28 = vector.load %arg7[%c144, %c0_33] : memref<145x384xbf16, #tpu.memory_space<vmem>>, vector<1x384xbf16>
    tpu.vector_store %arg7[%c144, %c0_33], %27 {strides = array<i32>} : memref<145x384xbf16, #tpu.memory_space<vmem>>, vector<1x384xbf16>,
    %c0_34 = arith.constant 0 : index
    %c0_35 = arith.constant 0 : index
    %29 = vector.load %arg1[%c0_34, %c0_35] : memref<32x145xbf16, #tpu.memory_space<vmem>>, vector<32x145xbf16>
    %c0_36 = arith.constant 0 : index
    %c0_37 = arith.constant 0 : index
    %30 = vector.load %arg7[%c0_36, %c0_37] : memref<145x384xbf16, #tpu.memory_space<vmem>>, vector<145x384xbf16>
    %cst_38 = arith.constant dense<0.000000e+00> : vector<32x384xf32>
    %31 = tpu.matmul %29, %30, %cst_38 {dimension_numbers = #tpu.dot_dimension_numbers<[1], [0], [0], [1], [0, 0, 1, 1], [], []>} : vector<32x145xbf16>, vector<145x384xbf16>, vector<32x384xf32> -> vector<32x384xf32>
    %cst_39 = arith.constant 0.000000e+00 : f32
    %32 = vector.broadcast %cst_39 : f32 to vector<32x384xf32>
    %33 = arith.maximumf %31, %32 : vector<32x384xf32>
    %34 = arith.truncf %33 : vector<32x384xf32> to vector<32x384xbf16>
    %c0_40 = arith.constant 0 : index
    %c0_41 = arith.constant 0 : index
    %c0_42 = arith.constant 0 : index
    %35 = vector.load %arg6[%c0_40, %c0_41, %c0_42] : memref<1x32x384xbf16, #tpu.memory_space<vmem>>, vector<1x32x384xbf16>
    %36 = vector.shape_cast %35 : vector<1x32x384xbf16> to vector<32x384xbf16>
    %37 = vector.shape_cast %34 : vector<32x384xbf16> to vector<1x32x384xbf16>
    tpu.vector_store %arg6[%c0_40, %c0_41, %c0_42], %37 {strides = array<i32>} : memref<1x32x384xbf16, #tpu.memory_space<vmem>>, vector<1x32x384xbf16>,
    return
  }
  func.func @transform_0(%arg0: i32) -> (i32, i32) {
    %c0_i32 = arith.constant 0 : i32
    %c0_i32_0 = arith.constant 0 : i32
    %c0_i32_1 = arith.constant 0 : i32
    return %c0_i32, %c0_i32_0 : i32, i32
  }
  func.func @transform_1(%arg0: i32) -> (i32, i32, i32) {
    %c0_i32 = arith.constant 0 : i32
    %c0_i32_0 = arith.constant 0 : i32
    %c0_i32_1 = arith.constant 0 : i32
    return %arg0, %c0_i32, %c0_i32_0 : i32, i32, i32
  }
  func.func @transform_2(%arg0: i32) -> (i32, i32, i32) {
    %c0_i32 = arith.constant 0 : i32
    %c0_i32_0 = arith.constant 0 : i32
    %c0_i32_1 = arith.constant 0 : i32
    return %arg0, %c0_i32, %c0_i32_0 : i32, i32, i32
  }
  func.func @transform_3(%arg0: i32) -> (i32, i32, i32) {
    %c0_i32 = arith.constant 0 : i32
    %c0_i32_0 = arith.constant 0 : i32
    %c0_i32_1 = arith.constant 0 : i32
    return %arg0, %c0_i32, %c0_i32_0 : i32, i32, i32
  }
  func.func @transform_4(%arg0: i32) -> (i32, i32, i32) {
    %c0_i32 = arith.constant 0 : i32
    %c0_i32_0 = arith.constant 0 : i32
    %c0_i32_1 = arith.constant 0 : i32
    return %arg0, %c0_i32, %c0_i32_0 : i32, i32, i32
  }
  func.func @transform_5(%arg0: i32) -> (i32, i32, i32) {
    %c0_i32 = arith.constant 0 : i32
    %c0_i32_0 = arith.constant 0 : i32
    %c0_i32_1 = arith.constant 0 : i32
    return %arg0, %c0_i32, %c0_i32_0 : i32, i32, i32
  }
}

module attributes {stable_mosaic.version = 11 : i64} {
  func.func @_fused_conv_kernel(%arg0: i32, %arg1: memref<64x289xbf16, #tpu.memory_space<vmem>>, %arg2: memref<1x32x256xbf16, #tpu.memory_space<vmem>>, %arg3: memref<1x32x256xbf16, #tpu.memory_space<vmem>>, %arg4: memref<1x32x256xbf16, #tpu.memory_space<vmem>>, %arg5: memref<1x32x256xbf16, #tpu.memory_space<vmem>>, %arg6: memref<1x64x128xbf16, #tpu.memory_space<vmem>>, %arg7: memref<289x128xbf16, #tpu.memory_space<vmem>>) attributes {dimension_semantics = [#tpu.dimension_semantics<parallel>], iteration_bounds = array<i64: 2>, scalar_prefetch = 0 : i64, scratch_operands = 1 : i64, tpu.core_type = #tpu.core_type<tc>, window_params = [{pipeline_mode = #tpu.pipeline_mode<synchronous>, transform_indices = @transform_0, window_bounds = array<i64: 64, 289>}, {transform_indices = @transform_1, window_bounds = array<i64: 1, 32, 256>}, {transform_indices = @transform_2, window_bounds = array<i64: 1, 32, 256>}, {transform_indices = @transform_3, window_bounds = array<i64: 1, 32, 256>}, {transform_indices = @transform_4, window_bounds = array<i64: 1, 32, 256>}, {transform_indices = @transform_5, window_bounds = array<i64: 1, 64, 128>}]} {
    %c0 = arith.constant 0 : index
    %c0_0 = arith.constant 0 : index
    %c0_1 = arith.constant 0 : index
    %0 = vector.load %arg2[%c0, %c0_0, %c0_1] : memref<1x32x256xbf16, #tpu.memory_space<vmem>>, vector<1x32x128xbf16>
    %1 = vector.shape_cast %0 : vector<1x32x128xbf16> to vector<32x128xbf16>
    %c0_2 = arith.constant 0 : index
    %c0_3 = arith.constant 0 : index
    %2 = vector.load %arg7[%c0_2, %c0_3] : memref<289x128xbf16, #tpu.memory_space<vmem>>, vector<32x128xbf16>
    tpu.vector_store %arg7[%c0_2, %c0_3], %1 {strides = array<i32>} : memref<289x128xbf16, #tpu.memory_space<vmem>>, vector<32x128xbf16>,
    %c0_4 = arith.constant 0 : index
    %c0_5 = arith.constant 0 : index
    %c0_6 = arith.constant 0 : index
    %3 = vector.load %arg3[%c0_4, %c0_5, %c0_6] : memref<1x32x256xbf16, #tpu.memory_space<vmem>>, vector<1x32x128xbf16>
    %4 = vector.shape_cast %3 : vector<1x32x128xbf16> to vector<32x128xbf16>
    %c32 = arith.constant 32 : index
    %c0_7 = arith.constant 0 : index
    %5 = vector.load %arg7[%c32, %c0_7] : memref<289x128xbf16, #tpu.memory_space<vmem>>, vector<32x128xbf16>
    tpu.vector_store %arg7[%c32, %c0_7], %4 {strides = array<i32>} : memref<289x128xbf16, #tpu.memory_space<vmem>>, vector<32x128xbf16>,
    %c0_8 = arith.constant 0 : index
    %c0_9 = arith.constant 0 : index
    %c1 = arith.constant 1 : index
    %6 = vector.load %arg2[%c0_8, %c0_9, %c1] : memref<1x32x256xbf16, #tpu.memory_space<vmem>>, vector<1x32x128xbf16>
    %7 = vector.shape_cast %6 : vector<1x32x128xbf16> to vector<32x128xbf16>
    %c64 = arith.constant 64 : index
    %c0_10 = arith.constant 0 : index
    %8 = vector.load %arg7[%c64, %c0_10] : memref<289x128xbf16, #tpu.memory_space<vmem>>, vector<32x128xbf16>
    tpu.vector_store %arg7[%c64, %c0_10], %7 {strides = array<i32>} : memref<289x128xbf16, #tpu.memory_space<vmem>>, vector<32x128xbf16>,
    %c0_11 = arith.constant 0 : index
    %c0_12 = arith.constant 0 : index
    %c0_13 = arith.constant 0 : index
    %9 = vector.load %arg4[%c0_11, %c0_12, %c0_13] : memref<1x32x256xbf16, #tpu.memory_space<vmem>>, vector<1x32x128xbf16>
    %10 = vector.shape_cast %9 : vector<1x32x128xbf16> to vector<32x128xbf16>
    %c96 = arith.constant 96 : index
    %c0_14 = arith.constant 0 : index
    %11 = vector.load %arg7[%c96, %c0_14] : memref<289x128xbf16, #tpu.memory_space<vmem>>, vector<32x128xbf16>
    tpu.vector_store %arg7[%c96, %c0_14], %10 {strides = array<i32>} : memref<289x128xbf16, #tpu.memory_space<vmem>>, vector<32x128xbf16>,
    %c0_15 = arith.constant 0 : index
    %c0_16 = arith.constant 0 : index
    %c0_17 = arith.constant 0 : index
    %12 = vector.load %arg5[%c0_15, %c0_16, %c0_17] : memref<1x32x256xbf16, #tpu.memory_space<vmem>>, vector<1x32x128xbf16>
    %13 = vector.shape_cast %12 : vector<1x32x128xbf16> to vector<32x128xbf16>
    %c128 = arith.constant 128 : index
    %c0_18 = arith.constant 0 : index
    %14 = vector.load %arg7[%c128, %c0_18] : memref<289x128xbf16, #tpu.memory_space<vmem>>, vector<32x128xbf16>
    tpu.vector_store %arg7[%c128, %c0_18], %13 {strides = array<i32>} : memref<289x128xbf16, #tpu.memory_space<vmem>>, vector<32x128xbf16>,
    %c0_19 = arith.constant 0 : index
    %c0_20 = arith.constant 0 : index
    %c1_21 = arith.constant 1 : index
    %15 = vector.load %arg4[%c0_19, %c0_20, %c1_21] : memref<1x32x256xbf16, #tpu.memory_space<vmem>>, vector<1x32x128xbf16>
    %16 = vector.shape_cast %15 : vector<1x32x128xbf16> to vector<32x128xbf16>
    %c160 = arith.constant 160 : index
    %c0_22 = arith.constant 0 : index
    %17 = vector.load %arg7[%c160, %c0_22] : memref<289x128xbf16, #tpu.memory_space<vmem>>, vector<32x128xbf16>
    tpu.vector_store %arg7[%c160, %c0_22], %16 {strides = array<i32>} : memref<289x128xbf16, #tpu.memory_space<vmem>>, vector<32x128xbf16>,
    %c0_23 = arith.constant 0 : index
    %c0_24 = arith.constant 0 : index
    %c9 = arith.constant 9 : index
    %18 = vector.load %arg2[%c0_23, %c0_24, %c9] : memref<1x32x256xbf16, #tpu.memory_space<vmem>>, vector<1x32x128xbf16>
    %19 = vector.shape_cast %18 : vector<1x32x128xbf16> to vector<32x128xbf16>
    %c192 = arith.constant 192 : index
    %c0_25 = arith.constant 0 : index
    %20 = vector.load %arg7[%c192, %c0_25] : memref<289x128xbf16, #tpu.memory_space<vmem>>, vector<32x128xbf16>
    tpu.vector_store %arg7[%c192, %c0_25], %19 {strides = array<i32>} : memref<289x128xbf16, #tpu.memory_space<vmem>>, vector<32x128xbf16>,
    %c0_26 = arith.constant 0 : index
    %c0_27 = arith.constant 0 : index
    %c9_28 = arith.constant 9 : index
    %21 = vector.load %arg3[%c0_26, %c0_27, %c9_28] : memref<1x32x256xbf16, #tpu.memory_space<vmem>>, vector<1x32x128xbf16>
    %22 = vector.shape_cast %21 : vector<1x32x128xbf16> to vector<32x128xbf16>
    %c224 = arith.constant 224 : index
    %c0_29 = arith.constant 0 : index
    %23 = vector.load %arg7[%c224, %c0_29] : memref<289x128xbf16, #tpu.memory_space<vmem>>, vector<32x128xbf16>
    tpu.vector_store %arg7[%c224, %c0_29], %22 {strides = array<i32>} : memref<289x128xbf16, #tpu.memory_space<vmem>>, vector<32x128xbf16>,
    %c0_30 = arith.constant 0 : index
    %c0_31 = arith.constant 0 : index
    %c10 = arith.constant 10 : index
    %24 = vector.load %arg2[%c0_30, %c0_31, %c10] : memref<1x32x256xbf16, #tpu.memory_space<vmem>>, vector<1x32x128xbf16>
    %25 = vector.shape_cast %24 : vector<1x32x128xbf16> to vector<32x128xbf16>
    %c256 = arith.constant 256 : index
    %c0_32 = arith.constant 0 : index
    %26 = vector.load %arg7[%c256, %c0_32] : memref<289x128xbf16, #tpu.memory_space<vmem>>, vector<32x128xbf16>
    tpu.vector_store %arg7[%c256, %c0_32], %25 {strides = array<i32>} : memref<289x128xbf16, #tpu.memory_space<vmem>>, vector<32x128xbf16>,
    %cst = arith.constant 1.000000e+00 : bf16
    %27 = vector.broadcast %cst : bf16 to vector<1x128xbf16>
    %c288 = arith.constant 288 : index
    %c0_33 = arith.constant 0 : index
    %28 = vector.load %arg7[%c288, %c0_33] : memref<289x128xbf16, #tpu.memory_space<vmem>>, vector<1x128xbf16>
    tpu.vector_store %arg7[%c288, %c0_33], %27 {strides = array<i32>} : memref<289x128xbf16, #tpu.memory_space<vmem>>, vector<1x128xbf16>,
    %c0_34 = arith.constant 0 : index
    %c0_35 = arith.constant 0 : index
    %29 = vector.load %arg1[%c0_34, %c0_35] : memref<64x289xbf16, #tpu.memory_space<vmem>>, vector<64x289xbf16>
    %c0_36 = arith.constant 0 : index
    %c0_37 = arith.constant 0 : index
    %30 = vector.load %arg7[%c0_36, %c0_37] : memref<289x128xbf16, #tpu.memory_space<vmem>>, vector<289x128xbf16>
    %cst_38 = arith.constant dense<0.000000e+00> : vector<64x128xf32>
    %31 = tpu.matmul %29, %30, %cst_38 {dimension_numbers = #tpu.dot_dimension_numbers<[1], [0], [0], [1], [0, 0, 1, 1], [], []>} : vector<64x289xbf16>, vector<289x128xbf16>, vector<64x128xf32> -> vector<64x128xf32>
    %cst_39 = arith.constant 0.000000e+00 : f32
    %32 = vector.broadcast %cst_39 : f32 to vector<64x128xf32>
    %33 = arith.maximumf %31, %32 : vector<64x128xf32>
    %34 = arith.truncf %33 : vector<64x128xf32> to vector<64x128xbf16>
    %c0_40 = arith.constant 0 : index
    %c0_41 = arith.constant 0 : index
    %c0_42 = arith.constant 0 : index
    %35 = vector.load %arg6[%c0_40, %c0_41, %c0_42] : memref<1x64x128xbf16, #tpu.memory_space<vmem>>, vector<1x64x128xbf16>
    %36 = vector.shape_cast %35 : vector<1x64x128xbf16> to vector<64x128xbf16>
    %37 = vector.shape_cast %34 : vector<64x128xbf16> to vector<1x64x128xbf16>
    tpu.vector_store %arg6[%c0_40, %c0_41, %c0_42], %37 {strides = array<i32>} : memref<1x64x128xbf16, #tpu.memory_space<vmem>>, vector<1x64x128xbf16>,
    return
  }
  func.func @transform_0(%arg0: i32) -> (i32, i32) {
    %c0_i32 = arith.constant 0 : i32
    %c0_i32_0 = arith.constant 0 : i32
    %c0_i32_1 = arith.constant 0 : i32
    return %c0_i32, %c0_i32_0 : i32, i32
  }
  func.func @transform_1(%arg0: i32) -> (i32, i32, i32) {
    %c0_i32 = arith.constant 0 : i32
    %c0_i32_0 = arith.constant 0 : i32
    %c0_i32_1 = arith.constant 0 : i32
    return %arg0, %c0_i32, %c0_i32_0 : i32, i32, i32
  }
  func.func @transform_2(%arg0: i32) -> (i32, i32, i32) {
    %c0_i32 = arith.constant 0 : i32
    %c0_i32_0 = arith.constant 0 : i32
    %c0_i32_1 = arith.constant 0 : i32
    return %arg0, %c0_i32, %c0_i32_0 : i32, i32, i32
  }
  func.func @transform_3(%arg0: i32) -> (i32, i32, i32) {
    %c0_i32 = arith.constant 0 : i32
    %c0_i32_0 = arith.constant 0 : i32
    %c0_i32_1 = arith.constant 0 : i32
    return %arg0, %c0_i32, %c0_i32_0 : i32, i32, i32
  }
  func.func @transform_4(%arg0: i32) -> (i32, i32, i32) {
    %c0_i32 = arith.constant 0 : i32
    %c0_i32_0 = arith.constant 0 : i32
    %c0_i32_1 = arith.constant 0 : i32
    return %arg0, %c0_i32, %c0_i32_0 : i32, i32, i32
  }
  func.func @transform_5(%arg0: i32) -> (i32, i32, i32) {
    %c0_i32 = arith.constant 0 : i32
    %c0_i32_0 = arith.constant 0 : i32
    %c0_i32_1 = arith.constant 0 : i32
    return %arg0, %c0_i32, %c0_i32_0 : i32, i32, i32
  }
}

module attributes {stable_mosaic.version = 11 : i64} {
  func.func @_fused_head_kernel(%arg0: i32, %arg1: memref<64x577xbf16, #tpu.memory_space<vmem>>, %arg2: memref<24x64xbf16, #tpu.memory_space<vmem>>, %arg3: memref<24x1xf32, #tpu.memory_space<vmem>>, %arg4: memref<1x64x256xbf16, #tpu.memory_space<vmem>>, %arg5: memref<1x24x128xf32, #tpu.memory_space<vmem>>, %arg6: memref<577x128xbf16, #tpu.memory_space<vmem>>) attributes {dimension_semantics = [#tpu.dimension_semantics<parallel>], iteration_bounds = array<i64: 2>, scalar_prefetch = 0 : i64, scratch_operands = 1 : i64, tpu.core_type = #tpu.core_type<tc>, window_params = [{pipeline_mode = #tpu.pipeline_mode<synchronous>, transform_indices = @transform_0, window_bounds = array<i64: 64, 577>}, {pipeline_mode = #tpu.pipeline_mode<synchronous>, transform_indices = @transform_1, window_bounds = array<i64: 24, 64>}, {pipeline_mode = #tpu.pipeline_mode<synchronous>, transform_indices = @transform_2, window_bounds = array<i64: 24, 1>}, {transform_indices = @transform_3, window_bounds = array<i64: 1, 64, 256>}, {transform_indices = @transform_4, window_bounds = array<i64: 1, 24, 128>}]} {
    %c0 = arith.constant 0 : index
    %c0_0 = arith.constant 0 : index
    %c0_1 = arith.constant 0 : index
    %0 = vector.load %arg4[%c0, %c0_0, %c0_1] : memref<1x64x256xbf16, #tpu.memory_space<vmem>>, vector<1x64x128xbf16>
    %1 = vector.shape_cast %0 : vector<1x64x128xbf16> to vector<64x128xbf16>
    %c0_2 = arith.constant 0 : index
    %c0_3 = arith.constant 0 : index
    %2 = vector.load %arg6[%c0_2, %c0_3] : memref<577x128xbf16, #tpu.memory_space<vmem>>, vector<64x128xbf16>
    tpu.vector_store %arg6[%c0_2, %c0_3], %1 {strides = array<i32>} : memref<577x128xbf16, #tpu.memory_space<vmem>>, vector<64x128xbf16>,
    %c0_4 = arith.constant 0 : index
    %c0_5 = arith.constant 0 : index
    %c1 = arith.constant 1 : index
    %3 = vector.load %arg4[%c0_4, %c0_5, %c1] : memref<1x64x256xbf16, #tpu.memory_space<vmem>>, vector<1x64x128xbf16>
    %4 = vector.shape_cast %3 : vector<1x64x128xbf16> to vector<64x128xbf16>
    %c64 = arith.constant 64 : index
    %c0_6 = arith.constant 0 : index
    %5 = vector.load %arg6[%c64, %c0_6] : memref<577x128xbf16, #tpu.memory_space<vmem>>, vector<64x128xbf16>
    tpu.vector_store %arg6[%c64, %c0_6], %4 {strides = array<i32>} : memref<577x128xbf16, #tpu.memory_space<vmem>>, vector<64x128xbf16>,
    %c0_7 = arith.constant 0 : index
    %c0_8 = arith.constant 0 : index
    %c2 = arith.constant 2 : index
    %6 = vector.load %arg4[%c0_7, %c0_8, %c2] : memref<1x64x256xbf16, #tpu.memory_space<vmem>>, vector<1x64x128xbf16>
    %7 = vector.shape_cast %6 : vector<1x64x128xbf16> to vector<64x128xbf16>
    %c128 = arith.constant 128 : index
    %c0_9 = arith.constant 0 : index
    %8 = vector.load %arg6[%c128, %c0_9] : memref<577x128xbf16, #tpu.memory_space<vmem>>, vector<64x128xbf16>
    tpu.vector_store %arg6[%c128, %c0_9], %7 {strides = array<i32>} : memref<577x128xbf16, #tpu.memory_space<vmem>>, vector<64x128xbf16>,
    %c0_10 = arith.constant 0 : index
    %c0_11 = arith.constant 0 : index
    %c10 = arith.constant 10 : index
    %9 = vector.load %arg4[%c0_10, %c0_11, %c10] : memref<1x64x256xbf16, #tpu.memory_space<vmem>>, vector<1x64x128xbf16>
    %10 = vector.shape_cast %9 : vector<1x64x128xbf16> to vector<64x128xbf16>
    %c192 = arith.constant 192 : index
    %c0_12 = arith.constant 0 : index
    %11 = vector.load %arg6[%c192, %c0_12] : memref<577x128xbf16, #tpu.memory_space<vmem>>, vector<64x128xbf16>
    tpu.vector_store %arg6[%c192, %c0_12], %10 {strides = array<i32>} : memref<577x128xbf16, #tpu.memory_space<vmem>>, vector<64x128xbf16>,
    %c0_13 = arith.constant 0 : index
    %c0_14 = arith.constant 0 : index
    %c11 = arith.constant 11 : index
    %12 = vector.load %arg4[%c0_13, %c0_14, %c11] : memref<1x64x256xbf16, #tpu.memory_space<vmem>>, vector<1x64x128xbf16>
    %13 = vector.shape_cast %12 : vector<1x64x128xbf16> to vector<64x128xbf16>
    %c256 = arith.constant 256 : index
    %c0_15 = arith.constant 0 : index
    %14 = vector.load %arg6[%c256, %c0_15] : memref<577x128xbf16, #tpu.memory_space<vmem>>, vector<64x128xbf16>
    tpu.vector_store %arg6[%c256, %c0_15], %13 {strides = array<i32>} : memref<577x128xbf16, #tpu.memory_space<vmem>>, vector<64x128xbf16>,
    %c0_16 = arith.constant 0 : index
    %c0_17 = arith.constant 0 : index
    %c12 = arith.constant 12 : index
    %15 = vector.load %arg4[%c0_16, %c0_17, %c12] : memref<1x64x256xbf16, #tpu.memory_space<vmem>>, vector<1x64x128xbf16>
    %16 = vector.shape_cast %15 : vector<1x64x128xbf16> to vector<64x128xbf16>
    %c320 = arith.constant 320 : index
    %c0_18 = arith.constant 0 : index
    %17 = vector.load %arg6[%c320, %c0_18] : memref<577x128xbf16, #tpu.memory_space<vmem>>, vector<64x128xbf16>
    tpu.vector_store %arg6[%c320, %c0_18], %16 {strides = array<i32>} : memref<577x128xbf16, #tpu.memory_space<vmem>>, vector<64x128xbf16>,
    %c0_19 = arith.constant 0 : index
    %c0_20 = arith.constant 0 : index
    %c20 = arith.constant 20 : index
    %18 = vector.load %arg4[%c0_19, %c0_20, %c20] : memref<1x64x256xbf16, #tpu.memory_space<vmem>>, vector<1x64x128xbf16>
    %19 = vector.shape_cast %18 : vector<1x64x128xbf16> to vector<64x128xbf16>
    %c384 = arith.constant 384 : index
    %c0_21 = arith.constant 0 : index
    %20 = vector.load %arg6[%c384, %c0_21] : memref<577x128xbf16, #tpu.memory_space<vmem>>, vector<64x128xbf16>
    tpu.vector_store %arg6[%c384, %c0_21], %19 {strides = array<i32>} : memref<577x128xbf16, #tpu.memory_space<vmem>>, vector<64x128xbf16>,
    %c0_22 = arith.constant 0 : index
    %c0_23 = arith.constant 0 : index
    %c21 = arith.constant 21 : index
    %21 = vector.load %arg4[%c0_22, %c0_23, %c21] : memref<1x64x256xbf16, #tpu.memory_space<vmem>>, vector<1x64x128xbf16>
    %22 = vector.shape_cast %21 : vector<1x64x128xbf16> to vector<64x128xbf16>
    %c448 = arith.constant 448 : index
    %c0_24 = arith.constant 0 : index
    %23 = vector.load %arg6[%c448, %c0_24] : memref<577x128xbf16, #tpu.memory_space<vmem>>, vector<64x128xbf16>
    tpu.vector_store %arg6[%c448, %c0_24], %22 {strides = array<i32>} : memref<577x128xbf16, #tpu.memory_space<vmem>>, vector<64x128xbf16>,
    %c0_25 = arith.constant 0 : index
    %c0_26 = arith.constant 0 : index
    %c22 = arith.constant 22 : index
    %24 = vector.load %arg4[%c0_25, %c0_26, %c22] : memref<1x64x256xbf16, #tpu.memory_space<vmem>>, vector<1x64x128xbf16>
    %25 = vector.shape_cast %24 : vector<1x64x128xbf16> to vector<64x128xbf16>
    %c512 = arith.constant 512 : index
    %c0_27 = arith.constant 0 : index
    %26 = vector.load %arg6[%c512, %c0_27] : memref<577x128xbf16, #tpu.memory_space<vmem>>, vector<64x128xbf16>
    tpu.vector_store %arg6[%c512, %c0_27], %25 {strides = array<i32>} : memref<577x128xbf16, #tpu.memory_space<vmem>>, vector<64x128xbf16>,
    %cst = arith.constant 1.000000e+00 : bf16
    %27 = vector.broadcast %cst : bf16 to vector<1x128xbf16>
    %c576 = arith.constant 576 : index
    %c0_28 = arith.constant 0 : index
    %28 = vector.load %arg6[%c576, %c0_28] : memref<577x128xbf16, #tpu.memory_space<vmem>>, vector<1x128xbf16>
    tpu.vector_store %arg6[%c576, %c0_28], %27 {strides = array<i32>} : memref<577x128xbf16, #tpu.memory_space<vmem>>, vector<1x128xbf16>,
    %c0_29 = arith.constant 0 : index
    %c0_30 = arith.constant 0 : index
    %29 = vector.load %arg1[%c0_29, %c0_30] : memref<64x577xbf16, #tpu.memory_space<vmem>>, vector<64x577xbf16>
    %c0_31 = arith.constant 0 : index
    %c0_32 = arith.constant 0 : index
    %30 = vector.load %arg6[%c0_31, %c0_32] : memref<577x128xbf16, #tpu.memory_space<vmem>>, vector<577x128xbf16>
    %cst_33 = arith.constant dense<0.000000e+00> : vector<64x128xf32>
    %31 = tpu.matmul %29, %30, %cst_33 {dimension_numbers = #tpu.dot_dimension_numbers<[1], [0], [0], [1], [0, 0, 1, 1], [], []>} : vector<64x577xbf16>, vector<577x128xbf16>, vector<64x128xf32> -> vector<64x128xf32>
    %cst_34 = arith.constant 0.000000e+00 : f32
    %32 = vector.broadcast %cst_34 : f32 to vector<64x128xf32>
    %33 = arith.maximumf %31, %32 : vector<64x128xf32>
    %34 = arith.truncf %33 : vector<64x128xf32> to vector<64x128xbf16>
    %c0_35 = arith.constant 0 : index
    %c0_36 = arith.constant 0 : index
    %35 = vector.load %arg2[%c0_35, %c0_36] : memref<24x64xbf16, #tpu.memory_space<vmem>>, vector<24x64xbf16>
    %cst_37 = arith.constant dense<0.000000e+00> : vector<24x128xf32>
    %36 = tpu.matmul %35, %34, %cst_37 {dimension_numbers = #tpu.dot_dimension_numbers<[1], [0], [0], [1], [0, 0, 1, 1], [], []>} : vector<24x64xbf16>, vector<64x128xbf16>, vector<24x128xf32> -> vector<24x128xf32>
    %c0_38 = arith.constant 0 : index
    %c0_39 = arith.constant 0 : index
    %37 = vector.load %arg3[%c0_38, %c0_39] : memref<24x1xf32, #tpu.memory_space<vmem>>, vector<24x1xf32>
    %38 = vector.broadcast %37 : vector<24x1xf32> to vector<24x128xf32>
    %39 = arith.addf %36, %38 : vector<24x128xf32>
    %c0_40 = arith.constant 0 : index
    %c0_41 = arith.constant 0 : index
    %c0_42 = arith.constant 0 : index
    %40 = vector.load %arg5[%c0_40, %c0_41, %c0_42] : memref<1x24x128xf32, #tpu.memory_space<vmem>>, vector<1x24x128xf32>
    %41 = vector.shape_cast %40 : vector<1x24x128xf32> to vector<24x128xf32>
    %42 = vector.shape_cast %39 : vector<24x128xf32> to vector<1x24x128xf32>
    tpu.vector_store %arg5[%c0_40, %c0_41, %c0_42], %42 {strides = array<i32>} : memref<1x24x128xf32, #tpu.memory_space<vmem>>, vector<1x24x128xf32>,
    return
  }
  func.func @transform_0(%arg0: i32) -> (i32, i32) {
    %c0_i32 = arith.constant 0 : i32
    %c0_i32_0 = arith.constant 0 : i32
    %c0_i32_1 = arith.constant 0 : i32
    return %c0_i32, %c0_i32_0 : i32, i32
  }
  func.func @transform_1(%arg0: i32) -> (i32, i32) {
    %c0_i32 = arith.constant 0 : i32
    %c0_i32_0 = arith.constant 0 : i32
    %c0_i32_1 = arith.constant 0 : i32
    return %c0_i32, %c0_i32_0 : i32, i32
  }
  func.func @transform_2(%arg0: i32) -> (i32, i32) {
    %c0_i32 = arith.constant 0 : i32
    %c0_i32_0 = arith.constant 0 : i32
    %c0_i32_1 = arith.constant 0 : i32
    return %c0_i32, %c0_i32_0 : i32, i32
  }
  func.func @transform_3(%arg0: i32) -> (i32, i32, i32) {
    %c0_i32 = arith.constant 0 : i32
    %c0_i32_0 = arith.constant 0 : i32
    %c0_i32_1 = arith.constant 0 : i32
    return %arg0, %c0_i32, %c0_i32_0 : i32, i32, i32
  }
  func.func @transform_4(%arg0: i32) -> (i32, i32, i32) {
    %c0_i32 = arith.constant 0 : i32
    %c0_i32_0 = arith.constant 0 : i32
    %c0_i32_1 = arith.constant 0 : i32
    return %arg0, %c0_i32, %c0_i32_0 : i32, i32, i32
  }
}

module attributes {stable_mosaic.version = 11 : i64} {
  func.func @_upsample_kernel(%arg0: i32, %arg1: i32, %arg2: memref<32x8xbf16, #tpu.memory_space<vmem>>, %arg3: memref<8x64xbf16, #tpu.memory_space<vmem>>, %arg4: memref<1x152x8xbf16, #tpu.memory_space<vmem>>, %arg5: memref<1x19x32x64xf32, #tpu.memory_space<vmem>>) attributes {dimension_semantics = [#tpu.dimension_semantics<parallel>, #tpu.dimension_semantics<parallel>], iteration_bounds = array<i64: 2, 2>, scalar_prefetch = 0 : i64, scratch_operands = 0 : i64, tpu.core_type = #tpu.core_type<tc>, window_params = [{transform_indices = @transform_0, window_bounds = array<i64: 32, 8>}, {pipeline_mode = #tpu.pipeline_mode<synchronous>, transform_indices = @transform_1, window_bounds = array<i64: 8, 64>}, {transform_indices = @transform_2, window_bounds = array<i64: 1, 152, 8>}, {transform_indices = @transform_3, window_bounds = array<i64: 1, 19, 32, 64>}]} {
    %c0 = arith.constant 0 : index
    %c0_0 = arith.constant 0 : index
    %c0_1 = arith.constant 0 : index
    %0 = vector.load %arg4[%c0, %c0_0, %c0_1] : memref<1x152x8xbf16, #tpu.memory_space<vmem>>, vector<1x152x8xbf16>
    %1 = vector.shape_cast %0 : vector<1x152x8xbf16> to vector<152x8xbf16>
    %c0_2 = arith.constant 0 : index
    %c0_3 = arith.constant 0 : index
    %2 = vector.load %arg3[%c0_2, %c0_3] : memref<8x64xbf16, #tpu.memory_space<vmem>>, vector<8x64xbf16>
    %cst = arith.constant dense<0.000000e+00> : vector<152x64xf32>
    %3 = tpu.matmul %1, %2, %cst {dimension_numbers = #tpu.dot_dimension_numbers<[1], [0], [0], [1], [0, 0, 1, 1], [], []>} : vector<152x8xbf16>, vector<8x64xbf16>, vector<152x64xf32> -> vector<152x64xf32>
    %4 = arith.truncf %3 : vector<152x64xf32> to vector<152x64xbf16>
    %5 = vector.shape_cast %4 : vector<152x64xbf16> to vector<19x8x64xbf16>
    %c0_4 = arith.constant 0 : index
    %c0_5 = arith.constant 0 : index
    %6 = vector.load %arg2[%c0_4, %c0_5] : memref<32x8xbf16, #tpu.memory_space<vmem>>, vector<32x8xbf16>
    %7 = vector.shape_cast %6 : vector<32x8xbf16> to vector<1x32x8xbf16>
    %8 = vector.broadcast %7 : vector<1x32x8xbf16> to vector<19x32x8xbf16>
    "tpu.trace_start"() <{level = 10 : i32, message = "cyr,crx->cyx"}> : () -> ()
    %cst_6 = arith.constant dense<0.000000e+00> : vector<19x32x64xf32>
    %9 = tpu.matmul %8, %5, %cst_6 {dimension_numbers = #tpu.dot_dimension_numbers<[2], [1], [1], [2], [0, 0, 0, 1, 1, 2], [0], [0]>} : vector<19x32x8xbf16>, vector<19x8x64xbf16>, vector<19x32x64xf32> -> vector<19x32x64xf32>
    "tpu.trace_stop"() : () -> ()
    %c0_7 = arith.constant 0 : index
    %c0_8 = arith.constant 0 : index
    %c0_9 = arith.constant 0 : index
    %c0_10 = arith.constant 0 : index
    %10 = vector.load %arg5[%c0_7, %c0_8, %c0_9, %c0_10] : memref<1x19x32x64xf32, #tpu.memory_space<vmem>>, vector<1x19x32x64xf32>
    %11 = vector.shape_cast %10 : vector<1x19x32x64xf32> to vector<19x32x64xf32>
    %12 = vector.shape_cast %9 : vector<19x32x64xf32> to vector<1x19x32x64xf32>
    tpu.vector_store %arg5[%c0_7, %c0_8, %c0_9, %c0_10], %12 {strides = array<i32>} : memref<1x19x32x64xf32, #tpu.memory_space<vmem>>, vector<1x19x32x64xf32>,
    return
  }
  func.func @transform_0(%arg0: i32, %arg1: i32) -> (i32, i32) {
    %c0_i32 = arith.constant 0 : i32
    %c0_i32_0 = arith.constant 0 : i32
    return %arg1, %c0_i32 : i32, i32
  }
  func.func @transform_1(%arg0: i32, %arg1: i32) -> (i32, i32) {
    %c0_i32 = arith.constant 0 : i32
    %c0_i32_0 = arith.constant 0 : i32
    %c0_i32_1 = arith.constant 0 : i32
    return %c0_i32, %c0_i32_0 : i32, i32
  }
  func.func @transform_2(%arg0: i32, %arg1: i32) -> (i32, i32, i32) {
    %c0_i32 = arith.constant 0 : i32
    %c0_i32_0 = arith.constant 0 : i32
    %c0_i32_1 = arith.constant 0 : i32
    return %arg0, %c0_i32, %c0_i32_0 : i32, i32, i32
  }
  func.func @transform_3(%arg0: i32, %arg1: i32) -> (i32, i32, i32, i32) {
    %c0_i32 = arith.constant 0 : i32
    %c0_i32_0 = arith.constant 0 : i32
    %c0_i32_1 = arith.constant 0 : i32
    return %arg0, %c0_i32, %arg1, %c0_i32_0 : i32, i32, i32, i32
  }
}

</mosaic_0001>

<bundles_post_ra>
// kernel: hrtlab_forward.5
= control target key start
LH: loop header
LB: loop body
LE: loop exit
PB: predicated region body
PF: predicated region fallthrough
CT: control target
= control target key end

     0   :  { %s2008_s18 = smov 0   ;;  %s2723_s0 = inlined_call_operand.vmem [shape: bf16[16,28], index: 0, kind: input, shape index: {}]   ;;  %s2724_s1 = inlined_call_operand.vmem [shape: bf16[2,3,1280], index: 1, kind: input, shape index: {}]   ;;  %s2725_s2 = inlined_call_operand.vmem [shape: bf16[2,3,1280], index: 2, kind: input, shape index: {}]   ;;  %s2726_s3 = inlined_call_operand.vmem [shape: bf16[2,3,1280], index: 3, kind: input, shape index: {}]   ;;  %s2727_s4 = inlined_call_operand.vmem [shape: bf16[2,3,1280], index: 4, kind: input, shape index: {}]   ;;  %s2728_s5 = inlined_call_operand.vmem [shape: bf16[2,16,1152], index: 5, kind: output, shape index: {}]  }
   0x1 LB: > { %s1822_s19 = sadd.s32 4294967295, %s1969_s18   ;;  %p1826_p0 = scmp.ge.s32.totalorder %s1969_s18, 1  ;;  %s1969_s18 = sphi %s2008_s18, %s15_s18  }
   0x2   : > { %p217_p1 = scmp.lt.s32.totalorder %s1969_s18, 3 }
   0x4   : > { %p218_p2 = pnand %p1826_p0, %p217_p1 }
   0x5   : > { %p260_p3 = scmp.lt.s32.totalorder (!%p218_p2), %s1822_s19, 1  ;;  %s1972_s30 = smov (!%p218_p2), 94  }
   0x6   : > { %221 = sbr.rel (%p218_p2) target bundleno = 423 (0x1a7), region = 40  ;;  %s1973_s6 = smov (!%p218_p2), 95  }
   0x7   : > { %s1974_s7 = smov (!%p218_p2), 127  }
   0xb   : > { %v297_v0 = vlaneseq  ;;  %v1971_v1 = vmov 1983009808   ;;  %s2826_s19 = smov (!%p260_p3, %s1822_s19), 1  ;;  %vm446_vm0 = vsmask.f32 7942  ;;  %vm1272_vm1 = vcmask 1041409  }
   0xc   : > { %v295_v2 = vunpack.c.l.s4 %v1971_v1  ;;  %s2019_s20 = smul.u32 20, %s2826_s19  ;;  %vm449_vm2 = vsmask.f32 7958  ;;  %vm1274_vm3 = vcmask 1045509   ;;  %vm2051_vm4 = vmand %vm1272_vm1, %vm446_vm0  ;;  %v2738_v12 = vmov 0 }
   0xd   : > { %v298_v3 = vshrl.u32 %v297_v0, 7  ;;  %v2739_v12 = vsel %vm2051_vm4, 4294967295, %v2738_v12  ;;  %vm1275_vm5 = vmand %vm1274_vm3, %vm449_vm2  ;;  %v2740_v16 = vmov 0  ;;  %vm2731_vm7 = vcmask 1041408   ;;  %s1902_s13 = smul.u32 72, %s2826_s19 }
   0xe   : > { %v296_v4 = vunpack.c.0.s8 %v295_v2  ;;  %s2027_s23 = scalar_lea.vmem %s2724_s1, %s2019_s20  ;;  %s2033_s26 = scalar_lea.vmem %s2725_s2, %s2019_s20  ;;  %vm2062_vm6 = vmor %vm1275_vm5, %vm2051_vm4  ;;  %vm336_vm8 = vsmask.f32 1280  ;;  %vm2729_vm9 = vcmask 1045508   ;;  %vm339_vm10 = vsmask.f32 5376 }
   0xf   : > { %v1184_v6 = vld [vmem:[%s2027_s23] sm:$0xff]  ;;  %v1185_v7 = vld [vmem:[%s2027_s23 + $0x8] sm:$0xff]  ;;  %s2042_s29 = scalar_lea.vmem %s2726_s3, %s2019_s20  ;;  %v2741_v16 = vsel %vm2062_vm6, 4294967295, %v2740_v16  ;;  %vm2165_vm11 = vmand %vm2731_vm7, %vm336_vm8  ;;  %s2189_s10 = scalar_lea.vmem %s2727_s4, %s2019_s20  ;;  %vm445_vm14 = vcmask 1042433   ;;  %vm448_vm1 = vcmask 1046533  }
  0x10   : > { %v2021_v5 = vsub.s32 %v296_v4, %v298_v3  ;;  %v1052_v8 = vld [vmem:[%s2033_s26] sm:$0xff]  ;;  %v1190_v10 = vcombine.high %v1184_v6, %v1184_v6  ;;  %v1205_v21 = vcombine.high %v1185_v7, %v1185_v7  ;;  %v1053_v33 = vld [vmem:[%s2033_s26 + $0x8] sm:$0xff]  ;;  %v2143_v59 = vld.sshfl [vmem:[%s2027_s23 + $0x10] sm:$0x33 pattern:$0x76325410]  ;;  %s2708_s16 = scalar_lea.vmem %s2728_s5, %s1902_s13 }
  0x11   : > { %v1058_v14 = vcombine.high %v1052_v8, %v1052_v8  ;;  %v607_v15 = vld [vmem:[%s2042_s29] sm:$0xff]  ;;  %v608_v34 = vld [vmem:[%s2042_s29 + $0x8] sm:$0xff]  ;;  %v1073_v49 = vcombine.high %v1053_v33, %v1053_v33  ;;  %vm2174_vm12 = vmand %vm2729_vm9, %vm339_vm10  ;;  %vm1032_vm5 = vsmask.f32 2304  ;;  %vm1034_vm8 = vsmask.f32 6400 }
  0x12   : > { %v2045_v9 = vrot.slane %v1184_v6, %v2021_v5  ;;  %v2048_v11 = vrot.slane %v1185_v7, %v2021_v5  ;;  %v2069_v18 = vrot.slane %v1190_v10, %v2021_v5  ;;  %v613_v19 = vcombine.high %v607_v15, %v607_v15  ;;  %vm2205_vm13 = vmor %vm2174_vm12, %vm2165_vm11 }
  0x13   : > { %v2072_v20 = vrot.slane %v607_v15, %v2021_v5  ;;  %v2077_v22 = vrot.slane %v1058_v14, %v2021_v5  ;;  %v2083_v25 = vrot.slane %v1052_v8, %v2021_v5  ;;  %v2093_v29 = vrot.slane %v1205_v21, %v2021_v5  ;;  %vm2226_vm15 = vmand %vm445_vm14, %vm446_vm0 }
  0x14   : > { %1227 = vrot.lane.b32.xlu1 %v2045_v9, %s1972_s30  ;;  %v997_v13 = vrot.slane %v2045_v9, 7  ;;  %v999_v17 = vrot.slane %v2048_v11, 7  ;;  %v998_v23 = vrot.slane %v2069_v18, 7  ;;  %v510_v24 = vrot.slane %v2045_v9, 5  ;;  %vm450_vm3 = vmand %vm448_vm1, %vm449_vm2 }
  0x15   : > { %v2086_v26 = vrot.slane %v613_v19, %v2021_v5  ;;  %v825_v27 = vshll.u32 %v2072_v20, 16  ;;  %v844_v28 = vshrl.u32 %v2072_v20, 16  ;;  %v511_v30 = vrot.slane %v2069_v18, 5  ;;  %vm2242_vm0 = vmor %vm450_vm3, %vm2226_vm15 }
  0x16   : > { %1002 = vrot.lane.b32.xlu0 %v997_v13, %s1973_s6  ;;  %v1104_v31 = vshrl.u32 %v2077_v22, 16  ;;  %v1107_v32 = vshll.u32 %v2077_v22, 16  ;;  %v515_v37 = vrot.slane %v510_v24, 4  ;;  %v1096_v38 = vshrl.u32 %v2083_v25, 16  ;;  %vm2264_vm2 = vmand %vm445_vm14, %vm1032_vm5 }
  0x17   : > { %v829_v35 = vshll.u32 %v2086_v26, 16  ;;  %v849_v36 = vshrl.u32 %v2086_v26, 16  ;;  %v1099_v39 = vshll.u32 %v2083_v25, 16  ;;  %v2109_v40 = vrot.slane %v825_v27, 5  ;;  %vm1035_vm10 = vmand %vm448_vm1, %vm1034_vm8 }
  0x18   : > { %1231 = vrot.lane.b32.xlu1 %v2048_v11, %s1972_s30  ;;  %v846_v41 = vrot.slane %v844_v28, 4  ;;  %v2114_v42 = vrot.slane %v1053_v33, %v2021_v5  ;;  %v516_v43 = vrot.slane %v511_v30, 4  ;;  %v1106_v44 = vrot.slane %v1104_v31, 5  ;;  %vm2274_vm14 = vmor %vm1035_vm10, %vm2264_vm2 }
  0x19   : > { %v1109_v45 = vrot.slane %v1107_v32, 6  ;;  %v628_v46 = vcombine.high %v608_v34, %v608_v34  ;;  %v2126_v47 = vrot.slane %v829_v35, 5  ;;  %v851_v48 = vrot.slane %v849_v36, 4 }
  0x1a   : > { %1006 = vrot.lane.b32.xlu0 %v999_v17, %s1973_s6  ;;  %v2131_v50 = vrot.slane %v608_v34, %v2021_v5  ;;  %v1000_v51 = vrot.slane %v2093_v29, 7  ;;  %v1098_v52 = vrot.slane %v1096_v38, 5  ;;  %v1101_v53 = vrot.slane %v1099_v39, 6  ;;  %v342_v17 = vld [vmem:[#allocation2] sm:$0x33] }
  0x1b   : > { %v512_v54 = vrot.slane %v2048_v11, 5  ;;  %v847_v55 = vor.u32 %v846_v41, %v2109_v40  ;;  %v513_v56 = vrot.slane %v2093_v29, 5  ;;  %v1112_v57 = vshrl.u32 %v2114_v42, 16  ;;  %v348_v41 = vld [vmem:[#allocation2 + $0x10] sm:$0x33] }
  0x1c   : > { %1229 = vrot.lane.b32.xlu1 %v2069_v18, %s1972_s30  ;;  %v1110_v58 = vor.u32 %v1109_v45, %v1106_v44  ;;  %v1115_v60 = vshll.u32 %v2114_v42, 16  ;;  %v2147_v61 = vrot.slane %v628_v46, %v2021_v5  ;;  %v852_v62 = vor.u32 %v851_v48, %v2126_v47  ;;  %v1833_v19 = vld.sshfl [vmem:[%s2033_s26 + $0x10] sm:$0x3 pattern:$0x76325410] }
  0x1d   : > { %v2151_v63 = vrot.slane %v1073_v49, %v2021_v5  ;;  %v833_v0 = vshll.u32 %v2131_v50, 16  ;;  %v1102_v1 = vor.u32 %v1101_v53, %v1098_v52  ;;  %v517_v2 = vrot.slane %v512_v54, 4  ;;  %v351_v42 = vld [vmem:[#allocation2 + $0x18] sm:$0x33] }
  0x1e   : > { %1004 = vrot.lane.b32.xlu0 %v998_v23, %s1973_s6  ;;  %v854_v3 = vshrl.u32 %v2131_v50, 16  ;;  %v848_v4 = vrot.slane %v847_v55, 4  ;;  %v518_v6 = vrot.slane %v513_v56, 4  ;;  %v1001_v7 = vrot.slane %v2143_v59, 7  ;;  %v778_v50 = vld [vmem:[#allocation2 + $0x44] sm:$0xc] }
  0x1f   : > { %v2161_v8 = vrot.slane %v1112_v57, 5  ;;  %v2170_v13 = vrot.slane %v1115_v60, 6  ;;  %v2730_v14 = vshll.u32 %v2147_v61, 16  ;;  %v853_v21 = vrot.slane %v852_v62, 4 }
  0x20   : > { %1233 = vrot.lane.b32.xlu1 %v2093_v29, %s1972_s30  ;;  %v1120_v23 = vshrl.u32 %v2151_v63, 16  ;;  %v1123_v33 = vshll.u32 %v2151_v63, 16  ;;  %v2183_v34 = vrot.slane %v833_v0, 5  ;;  %v1918_v44 = vpack.i.bf16 %v2126_v47, %v2109_v40 }
  0x21   : > { %v2196_v45 = vrot.slane %v854_v3, 4  ;;  %v2198_v46 = vrot.slane %v1096_v38, 6  ;;  %v1832_v48 = vld.sshfl [vmem:[%s2027_s23 + $0x10] sm:$0x3 pattern:$0x76325410]  ;;  %v343_v22 = vsel %vm2205_vm13, %v2045_v9, %v342_v17  ;;  %v349_v62 = vsel %vm2205_vm13, %v2048_v11, %v348_v41 }
  0x22   : > { %530 = vrot.lane.b32.xlu0 %v515_v37, %s1974_s7  ;;  %v345_v37 = vld [vmem:[#allocation2 + $0x8] sm:$0x33]  ;;  %v2215_v52 = vrot.slane %v1104_v31, 6  ;;  %v433_v38 = vshrl.u32 %v1833_v19, 16  ;;  %v2220_v53 = vrot.slane %v1107_v32, 7  ;;  %v2222_v55 = vrot.slane %v1112_v57, 6 }
  0x23   : > { %v710_v31 = vld [vmem:[%s2189_s10] sm:$0xff]  ;;  %v711_v32 = vld [vmem:[%s2189_s10 + $0x8] sm:$0xff]  ;;  %344 = vst [vmem:[#allocation2] sm:$0x33] %v343_v22  ;;  %v430_v15 = vrot.slane %v1123_v33, 7  ;;  %vm759_vm3 = vcmask 1043458  }
  0x24   : > { %532 = vrot.lane.b32.xlu1 %v516_v43, %s1974_s7  ;;  %v354_v43 = vld [vmem:[#allocation2 + $0x20] sm:$0x3]  ;;  %v2261_v17 = vrot.slane %v433_v38, 6  ;;  %350 = vst [vmem:[#allocation2 + $0x10] sm:$0x33] %v349_v62  ;;  %vm762_vm8 = vcmask 1047558  }
  0x25   : > { %vm760_vm12 = vsmask.f32 3328  ;;  %v769_v38 = vld [vmem:[#allocation2 + $0x2c] sm:$0xcc]  ;;  %vm763_vm5 = vsmask.f32 7424 }
  0x26   : > { %1008 = vrot.lane.b32.xlu0 %v1000_v51, %s1973_s6  ;;  %v2211_v51 = vrot.slane %v1099_v39, 7  ;;  %v2231_v39 = vrot.slane %v1115_v60, 7  ;;  %v346_v60 = vsel %vm2205_vm13, %v2069_v18, %v345_v37  ;;  %v716_v37 = vcombine.low %v710_v31, %v710_v31  ;;  %vm2285_vm1 = vmand %vm759_vm3, %vm760_vm12  ;;  %v1838_v18 = vld.sshfl [vmem:[%s2033_s26 + $0x10] sm:$0x33 pattern:$0x76325410] }
  0x27   : > { %347 = vst [vmem:[#allocation2 + $0x8] sm:$0x33] %v346_v60  ;;  %vm1164_vm10 = vsmask.f32 7946  ;;  %vm764_vm9 = vmand %vm762_vm8, %vm763_vm5  ;;  %vm1166_vm7 = vsmask.f32 7962 }
  0x28   : > { %1137 = vrot.lane.b32.xlu1 %v1110_v58, %s1973_s6  ;;  %v436_v58 = vshll.u32 %v1833_v19, 16  ;;  %v723_v60 = vrot.slane %v716_v37, %v2021_v5  ;;  %v859_v37 = vshrl.u32 %v2147_v61, 16  ;;  %vm2305_vm12 = vmor %vm764_vm9, %vm2285_vm1  ;;  %v653_v63 = vrot.slane %v844_v28, 7  ;;  %v1941_v28 = vld [vmem:[%s2189_s10 + $0x10] ss:$0 sps:$4 sm:$0x33]  }
  0x29   : > { %vm2319_vm9 = vmand %vm759_vm3, %vm1164_vm10  ;;  %vm2764_vm5 = vcmask 1041408   ;;  %vm2767_vm10 = vcmask 1045508  }
  0x2a   : > { %1135 = vrot.lane.b32.xlu0 %v1102_v1, %s1973_s6  ;;  %v352_v1 = vsel %vm2205_vm13, %v2093_v29, %v351_v42  ;;  %v438_v41 = vrot.slane %v436_v58, 7  ;;  %v730_v42 = vrot.slane %v710_v31, %v2021_v5  ;;  %v772_v58 = vld [vmem:[#allocation2 + $0x34] sm:$0xcc]  ;;  %v407_v31 = vor.u32 %v2211_v51, %v2198_v46  ;;  %vm1167_vm3 = vmand %vm762_vm8, %vm1166_vm7  ;;  %v1260_v29 = vld [vmem:[#allocation2 + $0x74] sm:$0x33] }
  0x2b   : > { %353 = vst [vmem:[#allocation2 + $0x18] sm:$0x33] %v352_v1  ;;  %v423_v46 = vor.u32 %v2231_v39, %v2222_v55  ;;  %v2760_v39 = vmov 0  ;;  %vm2352_vm7 = vmor %vm1167_vm3, %vm2319_vm9  ;;  %v2367_v25 = vor.u32 %v825_v27, %v653_v63  ;;  %v514_v27 = vrot.slane %v2143_v59, 5  ;;  %v1040_v63 = vld [vmem:[#allocation2 + $0x50] sm:$0x66] }
  0x2c   : > { %879 = vrot.lane.b32.xlu1 %v848_v4, %s1974_s7  ;;  %v427_v4 = vrot.slane %v1120_v23, 6  ;;  %v770_v55 = vsel %vm2305_vm12, %v730_v42, %v769_v38  ;;  %v2761_v39 = vsel %vm2319_vm9, 4294967295, %v2760_v39  ;;  %v1122_v42 = vrot.slane %v1120_v23, 5 }
  0x2d   : > { %771 = vst [vmem:[#allocation2 + $0x2c] sm:$0xcc] %v770_v55  ;;  %v1125_v23 = vrot.slane %v1123_v33, 6  ;;  %v857_v33 = vor.u32 %v2196_v45, %v2183_v34  ;;  %v2765_v45 = vmov 0 }
  0x2e   : > { %534 = vrot.lane.b32.xlu0 %v517_v2, %s1974_s7  ;;  %v355_v2 = vsel %vm2165_vm11, %v1832_v48, %v354_v43  ;;  %v731_v43 = vcombine.low %v711_v32, %v711_v32  ;;  %v766_v48 = vld [vmem:[#allocation2 + $0x24] sm:$0xcc]  ;;  %v431_v51 = vor.u32 %v430_v15, %v427_v4  ;;  %v1118_v4 = vor.u32 %v2170_v13, %v2161_v8 }
  0x2f   : > { %356 = vst [vmem:[#allocation2 + $0x20] sm:$0x3] %v355_v2  ;;  %v775_v2 = vld [vmem:[#allocation2 + $0x3c] sm:$0xcc]  ;;  %v858_v20 = vrot.slane %v857_v33, 4 }
  0x30   : > { %536 = vrot.lane.b32.xlu1 %v518_v6, %s1974_s7  ;;  %v745_v6 = vrot.slane %v711_v32, %v2021_v5  ;;  %v738_v62 = vrot.slane %v731_v43, %v2021_v5  ;;  %v2291_v32 = vrot.slane %v2730_v14, 5  ;;  %v439_v43 = vor.u32 %v438_v41, %v2261_v17  ;;  %v455_v17 = vld [vmem:[#allocation2 + $0x8] sm:$0x66]  ;;  %v458_v14 = vld [vmem:[#allocation2 + $0x10] sm:$0x66] }
  0x31   : > { %v459_v47 = vsel %vm2242_vm0, %v423_v46, %v458_v14 }
  0x32   : > { %881 = vrot.lane.b32.xlu0 %v853_v21, %s1974_s7  ;;  %v415_v21 = vor.u32 %v2220_v53, %v2215_v52  ;;  %v452_v52 = vld [vmem:[#allocation2] sm:$0x66]  ;;  %v767_v53 = vsel %vm2305_vm12, %v723_v60, %v766_v48  ;;  %v773_v9 = vsel %vm2305_vm12, %v738_v62, %v772_v58  ;;  %v461_v41 = vld [vmem:[#allocation2 + $0x18] sm:$0x66]  ;;  %460 = vst [vmem:[#allocation2 + $0x10] sm:$0x66] %v459_v47 }
  0x33   : > { %v453_v15 = vsel %vm2242_vm0, %v407_v31, %v452_v52  ;;  %768 = vst [vmem:[#allocation2 + $0x24] sm:$0xcc] %v767_v53  ;;  %774 = vst [vmem:[#allocation2 + $0x34] sm:$0xcc] %v773_v9  ;;  %v462_v8 = vsel %vm2242_vm0, %v431_v51, %v461_v41  ;;  %v1131_v31 = vshll.u32 %v1838_v18, 16  ;;  %v519_v62 = vrot.slane %v514_v27, 4 }
  0x34   : > { %520 = vrot.lane.b32.xlu1 %v510_v24, %s1974_s7  ;;  %v776_v24 = vsel %vm2305_vm12, %v745_v6, %v775_v2  ;;  %454 = vst [vmem:[#allocation2] sm:$0x66] %v453_v15  ;;  %v456_v40 = vsel %vm2242_vm0, %v415_v21, %v455_v17  ;;  %463 = vst [vmem:[#allocation2 + $0x18] sm:$0x66] %v462_v8  ;;  %vm692_vm0 = vsmask.f32 7954  ;;  %v1923_v51 = vpack.i.bf16 %v2291_v32, %v2183_v34 }
  0x35   : > { %777 = vst [vmem:[#allocation2 + $0x3c] sm:$0xcc] %v776_v24  ;;  %457 = vst [vmem:[#allocation2 + $0x8] sm:$0x66] %v456_v40  ;;  %v1133_v46 = vrot.slane %v1131_v31, 6  ;;  %v1975_v53 = vmov 0  }
  0x36   : > { %1919 = vrot.lane.b32.xlu0 %v1918_v44, %s1974_s7  ;;  %v464_v13 = vld [vmem:[#allocation2 + $0x20] sm:$0x6]  ;;  %v861_v44 = vrot.slane %v859_v37, 4  ;;  %vm693_vm12 = vmand %vm2767_vm10, %vm692_vm0  ;;  %1466 = vmatprep.mubr.bf16.mxu0 %v1975_v53  ;;  %v1257_v15 = vld [vmem:[#allocation2 + $0x6c] sm:$0x33] }
  0x37   : > { %v465_v57 = vsel %vm2226_vm15, %v439_v43, %v464_v13  ;;  %vm690_vm15 = vsmask.f32 7938  ;;  %1509 = vmatprep.mubr.bf16.mxu1 %v1975_v53  ;;  %vm586_vm10 = vsmask.f32 256  ;;  %v1037_v13 = vld [vmem:[#allocation2 + $0x48] sm:$0x66] }
  0x38   : > { %1010 = vrot.lane.b32.xlu1 %v1001_v7, %s1973_s6  ;;  %466 = vst [vmem:[#allocation2 + $0x20] sm:$0x6] %v465_v57  ;;  %v667_v7 = vrot.slane %v854_v3, 7  ;;  %v1126_v3 = vor.u32 %v1125_v23, %v1122_v42  ;;  %v862_v60 = vor.u32 %v861_v44, %v2291_v32  ;;  %vm2383_vm8 = vmand %vm2764_vm5, %vm690_vm15  ;;  %vm2732_vm15 = vcmask 769024  }
  0x39   : > { %v2766_v45 = vsel %vm2383_vm8, 4294967295, %v2765_v45  ;;  %vm2393_vm3 = vmor %vm693_vm12, %vm2383_vm8  ;;  %vm2770_vm5 = vcmask 777216   ;;  %vm2772_vm12 = vcmask 1040384  }
  0x3a   : > { %522 = vrot.lane.b32.xlu0 %v511_v30, %s1974_s7  ;;  %v2371_v38 = vor.u32 %v833_v0, %v667_v7  ;;  %v753_v30 = vrot.slane %v1941_v28, %v2021_v5  ;;  %v1836_v0 = vld.sshfl [vmem:[%s2042_s29 + $0x10] sm:$0x33 pattern:$0x76325410]  ;;  %v863_v58 = vrot.slane %v862_v60, 4  ;;  %v1128_v5 = vshrl.u32 %v1838_v18, 16  ;;  %vm2435_vm0 = vmand %vm2772_vm12, %vm586_vm10 }
  0x3b   : > { %v841_v2 = vshll.u32 %v1836_v0, 16  ;;  %v864_v1 = vshrl.u32 %v1836_v0, 16  ;;  %vm2778_vm10 = vcmask 769024   ;;  %vm552_vm12 = vcmask 1039360  }
  0x3c   : > { %1139 = vrot.lane.b32.xlu1 %v1118_v4, %s1973_s6  ;;  %v779_v6 = vsel %vm2285_vm1, %v753_v30, %v778_v50  ;;  %v1130_v21 = vrot.slane %v1128_v5, 5  ;;  %vm2733_vm1 = vcmask 1043456  }
  0x3d   : > { %780 = vst [vmem:[#allocation2 + $0x44] sm:$0xc] %v779_v6  ;;  %v843_v43 = vrot.slane %v841_v2, 5  ;;  %v866_v52 = vrot.slane %v864_v1, 4 }
  0x3e   : > { %1235 = vrot.lane.b32.xlu0 %v2143_v59, %s1972_s30  ;;  %v1134_v55 = vor.u32 %v1133_v46, %v1130_v21 }
  0x3f   : > { %v867_v9 = vor.u32 %v866_v52, %v843_v43 }
  0x40   : > { %1141 = vrot.lane.b32.xlu1 %v1126_v3, %s1973_s6 }
  0x41   : > { %v868_v34 = vrot.slane %v867_v9, 4 }
  0x42   : > { %883 = vrot.lane.b32.xlu0 %v858_v20, %s1974_s7 }
  0x44   : > { %885 = vrot.lane.b32.xlu1 %v863_v58, %s1974_s7  ;;  %v1263_v58 = vld [vmem:[#allocation2 + $0x7c] sm:$0x33] }
  0x46   : > { %538 = vrot.lane.b32.xlu0 %v519_v62, %s1974_s7 }
  0x48   : > { %524 = vrot.lane.b32.xlu1 %v512_v54, %s1974_s7 }
  0x4a   : > { %1924 = vrot.lane.b32.xlu0 %v1923_v51, %s1974_s7  ;;  %v937_v51 = vld [vmem:[#allocation2 + $0x2c] sm:$0x88] }
  0x4c   : > { %1143 = vrot.lane.b32.xlu1 %v1134_v55, %s1973_s6 }
  0x4e   : > { %526 = vrot.lane.b32.xlu0 %v513_v56, %s1974_s7 }
  0x50   : > { %877 = vrot.lane.b32.xlu1 %v843_v43, %s1974_s7  ;;  %v592_v43 = vld [vmem:[#allocation2 + $0x24] sm:$0x11] }
  0x52   : > { %887 = vrot.lane.b32.xlu0 %v868_v34, %s1974_s7  ;;  %v1043_v34 = vld [vmem:[#allocation2 + $0x58] sm:$0x66] }
  0x56   : > { %528 = vrot.lane.b32.xlu0 %v514_v27, %s1974_s7 }
  0x86   : > { %v1228_v32 = vpop.permute.xlu1 %1227 }
  0x87   : > { %v1237_v14 = vrot.slane %v1228_v32, 4 }
  0x88   : > { %v1003_v11 = vpop.permute.xlu0 %1002 }
  0x89   : > { %v1012_v41 = vrot.slane %v1003_v11, 4 }
  0x8a   : > { %v1232_v54 = vpop.permute.xlu1 %1231 }
  0x8b   : > { %v1239_v4 = vrot.slane %v1232_v54, 4 }
  0x8c   : > { %v2415_v24 = vpop.permute.xlu0 %1006 }
  0x8d   : > { %v1014_v40 = vrot.slane %v2415_v24, 4 }
  0x8e   : > { %v1230_v17 = vpop.permute.xlu1 %1229 }
  0x8f   : > { %v1238_v56 = vrot.slane %v1230_v17, 4 }
  0x90   : > { %v1005_v42 = vpop.permute.xlu0 %1004 }
  0x91   : > { %v1242_v47 = vsel %vm2733_vm1, %v1237_v14, %v1238_v56  ;;  %v1245_v8 = vsel %vm2733_vm1, %v1238_v56, %v1239_v4  ;;  %v1013_v23 = vrot.slane %v1005_v42, 4 }
  0x92   : > { %v1244_v44 = vsel %vm2732_vm15, %v1228_v32, %v1242_v47  ;;  %v1246_v57 = vsel %vm2732_vm15, %v1230_v17, %v1245_v8  ;;  %v2422_v7 = vpop.permute.xlu1 %1233  ;;  %vm2771_vm15 = vmmov %vm2770_vm5 }
  0x93   : > { %v1258_v33 = vsel %vm2205_vm13, %v1244_v44, %v1257_v15  ;;  %v1261_v28 = vsel %vm2205_vm13, %v1246_v57, %v1260_v29  ;;  %v1017_v3 = vsel %vm2733_vm1, %v1012_v41, %v1013_v23  ;;  %v1020_v60 = vsel %vm2733_vm1, %v1013_v23, %v1014_v40 }
  0x94   : > { %1259 = vst [vmem:[#allocation2 + $0x6c] sm:$0x33] %v1258_v33  ;;  %1262 = vst [vmem:[#allocation2 + $0x74] sm:$0x33] %v1261_v28  ;;  %v1019_v18 = vsel %vm2770_vm5, %v1003_v11, %v1017_v3  ;;  %v1021_v30 = vsel %vm2771_vm15, %v1005_v42, %v1020_v60  ;;  %v1240_v20 = vrot.slane %v2422_v7, 4  ;;  %v531_v27 = vpop.permute.xlu0 %530  ;;  %vm2776_vm5 = vcmask 1044484  }
  0x95   : > { %v1038_v0 = vsel %vm2274_vm14, %v1019_v18, %v1037_v13  ;;  %v1041_v6 = vsel %vm2274_vm14, %v1021_v30, %v1040_v63  ;;  %vm2775_vm1 = vsmask.f32 4352  ;;  %vm2777_vm15 = vcmask 1043456   ;;  %v595_v3 = vld [vmem:[#allocation2 + $0x2c] sm:$0x11] }
  0x96   : > { %vm590_vm8 = vmand %vm2776_vm5, %vm2775_vm1  ;;  %1039 = vst [vmem:[#allocation2 + $0x48] sm:$0x66] %v1038_v0  ;;  %v1247_v5 = vsel %vm2777_vm15, %v1239_v4, %v1240_v20  ;;  %v533_v31 = vpop.permute.xlu1 %532  ;;  %v545_v2 = vrot.slane %v531_v27, 4  ;;  %v598_v60 = vld [vmem:[#allocation2 + $0x34] sm:$0x11] }
  0x97   : > { %1042 = vst [vmem:[#allocation2 + $0x50] sm:$0x66] %v1041_v6  ;;  %v1248_v62 = vsel %vm2778_vm10, %v1232_v54, %v1247_v5  ;;  %v546_v1 = vrot.slane %v533_v31, 4  ;;  %vm2455_vm1 = vmor %vm590_vm8, %vm2435_vm0  ;;  %vm2783_vm8 = vcmask 777216  }
  0x98   : > { %v1264_v21 = vsel %vm2205_vm13, %v1248_v62, %v1263_v58  ;;  %v2451_v46 = vpop.permute.xlu0 %1008  ;;  %vm2781_vm5 = vmmov %vm2777_vm15 }
  0x99   : > { %1265 = vst [vmem:[#allocation2 + $0x7c] sm:$0x33] %v1264_v21  ;;  %v561_v52 = vsel %vm2781_vm5, %v545_v2, %v546_v1  ;;  %v1015_v55 = vrot.slane %v2451_v46, 4  ;;  %vm2782_vm15 = vmmov %vm2781_vm5 }
  0x9a   : > { %v562_v9 = vsel %vm552_vm12, %v531_v27, %v561_v52  ;;  %v2462_v32 = vpop.permute.xlu1 %1137  ;;  %vm2784_vm10 = vmmov %vm2781_vm5 }
  0x9b   : > { %v1277_v11 = vld [vmem:[#allocation2 + $0x6c] sm:$0x22]  ;;  %v1280_v54 = vld [vmem:[#allocation2 + $0x74] sm:$0x22]  ;;  %v1022_v4 = vsel %vm2782_vm15, %v1014_v40, %v1015_v55  ;;  %v1146_v15 = vrot.slane %v2462_v32, 4  ;;  %v593_v17 = vsel %vm2455_vm1, %v562_v9, %v592_v43  ;;  %vm2785_vm5 = vmmov %vm2783_vm8  ;;  %v660_v43 = vrot.slane %v849_v36, 7 }
  0x9c   : > { %v1278_v14 = vsel %vm2062_vm6, 1065369472, %v1277_v11  ;;  %v1281_v29 = vsel %vm2062_vm6, 1065369472, %v1280_v54  ;;  %v1023_v56 = vsel %vm2783_vm8, %v2415_v24, %v1022_v4  ;;  %v1136_v41 = vpop.permute.xlu0 %1135  ;;  %594 = vst [vmem:[#allocation2 + $0x24] sm:$0x11] %v593_v17  ;;  %vm2786_vm15 = vmmov %vm2784_vm10 }
  0x9d   : > { %1279 = vst [vmem:[#allocation2 + $0x6c] sm:$0x22] %v1278_v14  ;;  %1282 = vst [vmem:[#allocation2 + $0x74] sm:$0x22] %v1281_v29  ;;  %v1044_v42 = vsel %vm2274_vm14, %v1023_v56, %v1043_v34  ;;  %v1145_v40 = vrot.slane %v1136_v41, 4  ;;  %v663_v17 = vor.u32 %v829_v35, %v660_v43 }
  0x9e   : > { %1045 = vst [vmem:[#allocation2 + $0x58] sm:$0x66] %v1044_v42  ;;  %v880_v47 = vpop.permute.xlu1 %879  ;;  %v1169_v23 = vld [vmem:[#allocation2 + $0x48] sm:$0xcc]  ;;  %vm931_vm8 = vsmask.f32 7966 }
  0x9f   : > { %v1150_v8 = vsel %vm2784_vm10, %v1145_v40, %v1146_v15  ;;  %v894_v18 = vrot.slane %v880_v47, 4 }
  0xa0   : > { %v1283_v13 = vld [vmem:[#allocation2 + $0x7c] sm:$0x22]  ;;  %v1151_v44 = vsel %vm2785_vm5, %v1136_v41, %v1150_v8  ;;  %v535_v57 = vpop.permute.xlu0 %534  ;;  %vm2787_vm5 = vmmov %vm2784_vm10  ;;  %v1049_v41 = vld [vmem:[#allocation2 + $0x68] sm:$0x6] }
  0xa1   : > { %v1284_v24 = vsel %vm2062_vm6, 1065369472, %v1283_v13  ;;  %v1170_v63 = vsel %vm2352_vm7, %v1151_v44, %v1169_v23  ;;  %v547_v33 = vrot.slane %v535_v57, 4  ;;  %vm2788_vm10 = vmmov %vm2787_vm5  ;;  %vm2793_vm6 = vcmask 1047559   ;;  %v1046_v8 = vld [vmem:[#allocation2 + $0x60] sm:$0x66] }
  0xa2   : > { %1285 = vst [vmem:[#allocation2 + $0x7c] sm:$0x22] %v1284_v24  ;;  %1171 = vst [vmem:[#allocation2 + $0x48] sm:$0xcc] %v1170_v63  ;;  %v2486_v28 = vpop.permute.xlu1 %536 }
  0xa3   : > { %v563_v30 = vsel %vm2786_vm15, %v546_v1, %v547_v33  ;;  %v548_v27 = vrot.slane %v2486_v28, 4  ;;  %v695_v0 = vld [vmem:[#allocation2 + $0x24] sm:$0x33]  ;;  %vm2790_vm15 = vcmask 1043459   ;;  %vm932_vm4 = vmand %vm2793_vm6, %vm931_vm8  ;;  %vm1406_vm6 = vcmask 1045504  }
  0xa4   : > { %v564_v6 = vsel %vm552_vm12, %v533_v31, %v563_v30  ;;  %v2491_v58 = vpop.permute.xlu0 %881  ;;  %v696_v5 = vsel %vm2393_vm3, %v2367_v25, %v695_v0  ;;  %vm2796_vm8 = vcmask 1043456  }
  0xa5   : > { %v565_v62 = vsel %vm2787_vm5, %v547_v33, %v548_v27  ;;  %v895_v2 = vrot.slane %v2491_v58, 4  ;;  %v596_v1 = vsel %vm2455_vm1, %v564_v6, %v595_v3  ;;  %697 = vst [vmem:[#allocation2 + $0x24] sm:$0x33] %v696_v5  ;;  %vm2789_vm5 = vsmask.f32 7950 }
  0xa6   : > { %v566_v31 = vsel %vm552_vm12, %v535_v57, %v565_v62  ;;  %v521_v21 = vpop.permute.xlu1 %520  ;;  %597 = vst [vmem:[#allocation2 + $0x2c] sm:$0x11] %v596_v1  ;;  %vm2513_vm9 = vmand %vm2790_vm15, %vm2789_vm5  ;;  %vm2798_vm5 = vcmask 777216   ;;  %v1269_v1 = vld [vmem:[#allocation2 + $0x8c] sm:$0x3] }
  0xa7   : > { %v908_v25 = vsel %vm2788_vm10, %v894_v18, %v895_v2  ;;  %v599_v52 = vsel %vm2455_vm1, %v566_v31, %v598_v60  ;;  %v540_v14 = vrot.slane %v521_v21, 4  ;;  %vm2530_vm10 = vmor %vm932_vm4, %vm2513_vm9 }
  0xa8   : > { %v909_v9 = vsel %vm552_vm12, %v880_v47, %v908_v25  ;;  %v2517_v11 = vpop.permute.xlu0 %1919  ;;  %600 = vst [vmem:[#allocation2 + $0x34] sm:$0x11] %v599_v52  ;;  %v934_v47 = vld [vmem:[#allocation2 + $0x24] sm:$0x88]  ;;  %vm2797_vm15 = vmmov %vm2796_vm8  ;;  %v1172_v25 = vld [vmem:[#allocation2 + $0x50] sm:$0xcc] }
  0xa9   : > { %949 = vst [vmem:[#allocation2 + $0x48] sm:$0x11] %v909_v9  ;;  %v1922_v36 = vunpack.i.h.bf16 %v2517_v11  ;;  %v1921_v54 = vunpack.i.l.bf16 %v2517_v11  ;;  %vm2799_vm4 = vmmov %vm2798_vm5 }
  0xaa   : > { %v1011_v4 = vpop.permute.xlu1 %1010 }
  0xab   : > { %v2526_v29 = vrot.slane %v1922_v36, 4  ;;  %v889_v56 = vrot.slane %v1921_v54, 4  ;;  %v1016_v42 = vrot.slane %v1011_v4, 4 }
  0xac   : > { %v2534_v13 = vpop.permute.xlu0 %522 }
  0xad   : > { %v899_v26 = vsel %vm2796_vm8, %v889_v56, %v2526_v29  ;;  %v1024_v35 = vsel %vm2797_vm15, %v1015_v55, %v1016_v42  ;;  %v1026_v23 = vsel %vm2798_vm5, %v1011_v4, %v1016_v42  ;;  %v541_v44 = vrot.slane %v2534_v13, 4  ;;  %v698_v57 = vld [vmem:[#allocation2 + $0x2c] sm:$0x33] }
  0xae   : > { %v900_v24 = vsel %vm552_vm12, %v1921_v54, %v899_v26  ;;  %v1025_v63 = vsel %vm2799_vm4, %v2451_v46, %v1024_v35  ;;  %v1050_v33 = vsel %vm2264_vm2, %v1026_v23, %v1049_v41  ;;  %v1140_v3 = vpop.permute.xlu1 %1139  ;;  %v699_v60 = vsel %vm2393_vm3, %v663_v17, %v698_v57  ;;  %vm2800_vm2 = vmmov %vm2796_vm8 }
  0xaf   : > { %v935_v55 = vsel %vm2530_vm10, %v900_v24, %v934_v47  ;;  %v1047_v18 = vsel %vm2274_vm14, %v1025_v63, %v1046_v8  ;;  %1051 = vst [vmem:[#allocation2 + $0x68] sm:$0x6] %v1050_v33  ;;  %v551_v30 = vsel %vm2796_vm8, %v540_v14, %v541_v44  ;;  %v1147_v0 = vrot.slane %v1140_v3, 4  ;;  %700 = vst [vmem:[#allocation2 + $0x2c] sm:$0x33] %v699_v60 }
  0xb0   : > { %v701_v46 = vld [vmem:[#allocation2 + $0x34] sm:$0x33]  ;;  %936 = vst [vmem:[#allocation2 + $0x24] sm:$0x88] %v935_v55  ;;  %1048 = vst [vmem:[#allocation2 + $0x60] sm:$0x66] %v1047_v18  ;;  %v553_v19 = vsel %vm552_vm12, %v521_v21, %v551_v30  ;;  %v1236_v6 = vpop.permute.xlu0 %1235 }
  0xb1   : > { %v1936_v5 = vld [vmem:[#allocation2 + $0x4c] ss:$36 sps:$4 sm:$0x3f]   ;;  %v702_v62 = vsel %vm2393_vm3, %v2371_v38, %v701_v46  ;;  %580 = vst [vmem:[#allocation2] sm:$0x88] %v553_v19  ;;  %v1152_v22 = vsel %vm2800_vm2, %v1146_v15, %v1147_v0  ;;  %v1241_v31 = vrot.slane %v1236_v6, 4  ;;  %vm2801_vm14 = vmmov %vm2799_vm4 }
  0xb2   : > { %v1938_v43 = vld [vmem:[#allocation2 + $0x48] ss:$36 sps:$4 sm:$0x3f]   ;;  %703 = vst [vmem:[#allocation2 + $0x34] sm:$0x33] %v702_v62  ;;  %v1153_v52 = vsel %vm2801_vm14, %v2462_v32, %v1152_v22  ;;  %v2566_v9 = vpop.permute.xlu1 %1141  ;;  %1859 = vmatprep.subr.msk.bf16.mxu0 %vm1406_vm6, %v1936_v5  ;;  %vm2802_vm15 = vmmov %vm2800_vm2  ;;  %vm2803_vm5 = vcmask 769024  }
  0xb3   : > { %v1266_v21 = vld [vmem:[#allocation2 + $0x84] sm:$0x33]  ;;  %v1173_v38 = vsel %vm2352_vm7, %v1153_v52, %v1172_v25  ;;  %v1249_v15 = vsel %vm2802_vm15, %v1240_v20, %v1241_v31  ;;  %v1251_v54 = vsel %vm2803_vm5, %v1236_v6, %v1241_v31  ;;  %v1148_v4 = vrot.slane %v2566_v9, 4  ;;  %vm2804_vm4 = vmmov %vm2803_vm5  ;;  %v1175_v8 = vld [vmem:[#allocation2 + $0x58] sm:$0xcc] }
  0xb4   : > { %1174 = vst [vmem:[#allocation2 + $0x50] sm:$0xcc] %v1173_v38  ;;  %v1250_v32 = vsel %vm2804_vm4, %v2422_v7, %v1249_v15  ;;  %v1270_v17 = vsel %vm2165_vm11, %v1251_v54, %v1269_v1  ;;  %v884_v14 = vpop.permute.xlu0 %883  ;;  %v1408_v56 = vsel %vm1406_vm6, %v1938_v43, 0  ;;  %vm2805_vm8 = vmmov %vm2800_vm2  ;;  %v604_v55 = vld [vmem:[#allocation2 + $0x44] sm:$0x1]  ;;  %vm1402_vm15 = vcmask 228352  }
  0xb5   : > { %v1267_v41 = vsel %vm2205_vm13, %v1250_v32, %v1266_v21  ;;  %1271 = vst [vmem:[#allocation2 + $0x8c] sm:$0x3] %v1270_v17  ;;  %v1154_v20 = vsel %vm2805_vm8, %v1147_v0, %v1148_v4  ;;  %v896_v42 = vrot.slane %v884_v14, 4  ;;  %1447 = vmatpush1.bf16.msra.mxu0 %v1408_v56  ;;  %vm2806_vm2 = vmmov %vm2801_vm14  ;;  %v601_v0 = vld [vmem:[#allocation2 + $0x3c] sm:$0x11]  ;;  %v674_v1 = vrot.slane %v859_v37, 7 }
  0xb6   : > { %v1835_v47 = vld.sshfl [vmem:[%s2042_s29 + $0x10] sm:$0x3 pattern:$0x76325410]  ;;  %1268 = vst [vmem:[#allocation2 + $0x84] sm:$0x33] %v1267_v41  ;;  %v1155_v7 = vsel %vm2806_vm2, %v1140_v3, %v1154_v20  ;;  %v2588_v10 = vpop.permute.xlu1 %885  ;;  %vm2807_vm11 = vmmov %vm2805_vm8  ;;  %vm2810_vm5 = vnez %v2739_v12 }
  0xb7   : > { %v1176_v26 = vsel %vm2352_vm7, %v1155_v7, %v1175_v8  ;;  %v910_v49 = vsel %vm2807_vm11, %v895_v2, %v896_v42  ;;  %v897_v35 = vrot.slane %v2588_v10, 4  ;;  %v1299_v23 = vld [vmem:[#allocation2 + $0x24] sm:$0xff]  ;;  %v679_v24 = vshrl.u32 %v1835_v47, 16  ;;  %vm2808_vm13 = vmmov %vm2805_vm8 }
  0xb8   : > { %1177 = vst [vmem:[#allocation2 + $0x58] sm:$0xcc] %v1176_v26  ;;  %v911_v57 = vsel %vm552_vm12, %v2491_v58, %v910_v49  ;;  %v539_v63 = vpop.permute.xlu0 %538  ;;  %v1294_v33 = vld [vmem:[#allocation2] sm:$0xff]  ;;  %v682_v46 = vshll.u32 %v1835_v47, 16  ;;  %v2607_v58 = vld [vmem:[%s2723_s0] sm:$0xff]   ;;  %vm2809_vm14 = vmmov %vm2805_vm8  ;;  %v2813_v41 = vshll.u32 %v2147_v61, 16 }
  0xb9   : > { %v1939_v3 = vld [vmem:[#allocation2 + $0x4] ss:$36 sps:$4 sm:$0xff]   ;;  %950 = vst [vmem:[#allocation2 + $0x50] sm:$0x11] %v911_v57  ;;  %v912_v60 = vsel %vm2808_vm13, %v896_v42, %v897_v35  ;;  %v549_v18 = vrot.slane %v539_v63, 4  ;;  %v1841_v30 = vcombine.low %v1294_v33, %v1299_v23  ;;  %v681_v31 = vrot.slane %v679_v24, 7  ;;  %vm2811_vm4 = vmmov %vm2805_vm8 }
  0xba   : > { %v913_v2 = vsel %vm552_vm12, %v884_v14, %v912_v60  ;;  %v2602_v19 = vpop.permute.xlu1 %524  ;;  %1448 = vmatprep.subr.bf16.mxu0 %v1939_v3  ;;  %vm2812_vm8 = vnez %v2741_v16  ;;  %v677_v20 = vor.u32 %v2813_v41, %v674_v1  ;;  %v1181_v42 = vld [vmem:[#allocation2 + $0x68] sm:$0xc]  ;;  %v1178_v57 = vld [vmem:[#allocation2 + $0x60] sm:$0xcc] }
  0xbb   : > { %951 = vst [vmem:[#allocation2 + $0x58] sm:$0x11] %v913_v2  ;;  %v567_v6 = vsel %vm2809_vm14, %v548_v27, %v549_v18  ;;  %v569_v5 = vsel %vm552_vm12, %v539_v63, %v549_v18  ;;  %v542_v62 = vrot.slane %v2602_v19, 4  ;;  %1449 = vmatpush1.bf16.msra.mxu0 %v1841_v30  ;;  %v684_v17 = vor.u32 %v682_v46, %v681_v31 }
  0xbc   : > { %v1289_v22 = vld [vmem:[#allocation2 + $0x8c] sm:$0x2]  ;;  %v568_v43 = vsel %vm552_vm12, %v2486_v28, %v567_v6  ;;  %v605_v25 = vsel %vm2435_vm0, %v569_v5, %v604_v55  ;;  %v2620_v52 = vpop.permute.xlu0 %1924  ;;  %vm2814_vm0 = vmmov %vm2811_vm4  ;;  %vm2819_vm14 = vnez %v2761_v39 }
  0xbd   : > { %v1286_v27 = vld [vmem:[#allocation2 + $0x84] sm:$0x22]  ;;  %v1290_v21 = vsel %vm2810_vm5, 1065369472, %v1289_v22  ;;  %v602_v38 = vsel %vm2455_vm1, %v568_v43, %v601_v0  ;;  %606 = vst [vmem:[#allocation2 + $0x44] sm:$0x1] %v605_v25  ;;  %v554_v37 = vsel %vm2811_vm4, %v541_v44, %v542_v62  ;;  %v1927_v15 = vunpack.i.h.bf16 %v2620_v52  ;;  %vm2815_vm1 = vmmov %vm2806_vm2 }
  0xbe   : > { %v1287_v50 = vsel %vm2812_vm8, 1065369472, %v1286_v27  ;;  %1291 = vst [vmem:[#allocation2 + $0x8c] sm:$0x2] %v1290_v21  ;;  %603 = vst [vmem:[#allocation2 + $0x3c] sm:$0x11] %v602_v38  ;;  %v555_v28 = vsel %vm552_vm12, %v2534_v13, %v554_v37  ;;  %v1926_v12 = vunpack.i.l.bf16 %v2620_v52  ;;  %v1144_v54 = vpop.permute.xlu1 %1143  ;;  %1860 = vmatmul.mubr.msk.bf16.vlgmr.msra.gmra.mxu0 %vm1402_vm15, %v2607_v58 }
  0xbf   : > { %1288 = vst [vmem:[#allocation2 + $0x84] sm:$0x22] %v1287_v50  ;;  %581 = vst [vmem:[#allocation2 + $0x8] sm:$0x88] %v555_v28  ;;  %v940_v44 = vld [vmem:[#allocation2 + $0x34] sm:$0x88]  ;;  %1552 = vmatprep.mubr.bf16.mxu0 %v1975_v53 }
  0xc0   : > { %v892_v32 = vrot.slane %v1927_v15, 4  ;;  %v1149_v16 = vrot.slane %v1144_v54, 4  ;;  %v891_v14 = vrot.slane %v1926_v12, 4  ;;  %v527_v56 = vpop.permute.xlu0 %526  ;;  %v1942_v13 = vld [vmem:[#allocation2 + $0x54] ss:$36 sps:$4 sm:$0x3f]   ;;  %vm2816_vm2 = vmmov %vm2814_vm0 }
  0xc1   : > { %v543_v7 = vrot.slane %v527_v56, 4  ;;  %v1944_v26 = vld [vmem:[#allocation2 + $0x50] ss:$36 sps:$4 sm:$0x3f]   ;;  %vm2817_vm11 = vmmov %vm2814_vm0  ;;  %1861 = vmatprep.subr.msk.bf16.mxu1 %vm1406_vm6, %v1942_v13 }
  0xc2   : > { %v1156_v47 = vsel %vm2814_vm0, %v1148_v4, %v1149_v16  ;;  %v1158_v8 = vsel %vm2815_vm1, %v1144_v54, %v1149_v16  ;;  %v901_v49 = vsel %vm2816_vm2, %v2526_v29, %v891_v14  ;;  %v903_v23 = vsel %vm2817_vm11, %v891_v14, %v892_v32  ;;  %vm2818_vm13 = vmmov %vm2815_vm1  ;;  %v878_v63 = vpop.permute.xlu1 %877  ;;  %v1945_v4 = vld [vmem:[#allocation2 + $0x5c] ss:$36 sps:$4 sm:$0x3f]  }
  0xc3   : > { %v1157_v24 = vsel %vm2818_vm13, %v2566_v9, %v1156_v47  ;;  %v1182_v61 = vsel %vm2819_vm14, %v1158_v8, %v1181_v42  ;;  %v902_v33 = vsel %vm552_vm12, %v1922_v36, %v901_v49  ;;  %v904_v3 = vsel %vm552_vm12, %v1926_v12, %v903_v23  ;;  %vm2820_vm5 = vmmov %vm2814_vm0  ;;  %v943_v9 = vld [vmem:[#allocation2 + $0x3c] sm:$0x88]  ;;  %v1948_v55 = vld [vmem:[#allocation2 + $0x58] ss:$36 sps:$4 sm:$0x3f]   ;;  %1863 = vmatprep.subr.msk.bf16.mxu0 %vm1406_vm6, %v1945_v4 }
  0xc4   : > { %v1179_v29 = vsel %vm2352_vm7, %v1157_v24, %v1178_v57  ;;  %1183 = vst [vmem:[#allocation2 + $0x68] sm:$0xc] %v1182_v61  ;;  %v556_v60 = vsel %vm2820_vm5, %v542_v62, %v543_v7  ;;  %v707_v39 = vld [vmem:[#allocation2 + $0x44] sm:$0x3]  ;;  %v938_v18 = vsel %vm2530_vm10, %v902_v33, %v937_v51  ;;  %v941_v30 = vsel %vm2530_vm10, %v904_v3, %v940_v44  ;;  %v946_v36 = vld [vmem:[#allocation2 + $0x44] sm:$0x8]  ;;  %v888_v48 = vpop.permute.xlu0 %887  ;;  %vm2822_vm4 = vmmov %vm2814_vm0 }
  0xc5   : > { %1180 = vst [vmem:[#allocation2 + $0x60] sm:$0xcc] %v1179_v29  ;;  %v557_v11 = vsel %vm552_vm12, %v2602_v19, %v556_v60  ;;  %v893_v2 = vrot.slane %v878_v63, 4  ;;  %v704_v0 = vld [vmem:[#allocation2 + $0x3c] sm:$0x33]  ;;  %vm2821_vm7 = vnez %v2766_v45  ;;  %v898_v6 = vrot.slane %v888_v48, 4  ;;  %vm2823_vm8 = vmmov %vm2814_vm0 }
  0xc6   : > { %v708_v46 = vsel %vm2821_vm7, %v684_v17, %v707_v39  ;;  %939 = vst [vmem:[#allocation2 + $0x2c] sm:$0x88] %v938_v18  ;;  %942 = vst [vmem:[#allocation2 + $0x34] sm:$0x88] %v941_v30  ;;  %v1414_v5 = vsel %vm1406_vm6, %v1944_v26, 0  ;;  %v1420_v62 = vsel %vm1406_vm6, %v1948_v55, 0  ;;  %v705_v19 = vsel %vm2393_vm3, %v677_v20, %v704_v0 }
  0xc7   : > { %582 = vst [vmem:[#allocation2 + $0x10] sm:$0x88] %v557_v11  ;;  %709 = vst [vmem:[#allocation2 + $0x44] sm:$0x3] %v708_v46  ;;  %v905_v22 = vsel %vm2822_vm4, %v892_v32, %v893_v2  ;;  %v907_v1 = vsel %vm552_vm12, %v878_v63, %v893_v2  ;;  %1490 = vmatpush1.bf16.msra.mxu1 %v1414_v5  ;;  %1533 = vmatpush1.bf16.msra.mxu0 %v1420_v62  ;;  %v1976_v51 = vmov 0.0  }
  0xc8   : > { %706 = vst [vmem:[#allocation2 + $0x3c] sm:$0x33] %v705_v19  ;;  %v906_v45 = vsel %vm552_vm12, %v1927_v15, %v905_v22  ;;  %v947_v31 = vsel %vm2513_vm9, %v907_v1, %v946_v36  ;;  %v914_v59 = vsel %vm2823_vm8, %v897_v35, %v898_v6  ;;  %v916_v43 = vsel %vm552_vm12, %v888_v48, %v898_v6  ;;  %v529_v52 = vpop.permute.xlu0 %528  ;;  %vm2824_vm3 = vmmov %vm2814_vm0 }
  0xc9   : > { %v944_v25 = vsel %vm2530_vm10, %v906_v45, %v943_v9  ;;  %948 = vst [vmem:[#allocation2 + $0x44] sm:$0x8] %v947_v31  ;;  %v915_v27 = vsel %vm552_vm12, %v2588_v10, %v914_v59  ;;  %953 = vst [vmem:[#allocation2 + $0x68] sm:$0x1] %v916_v43  ;;  %v544_v21 = vrot.slane %v529_v52, 4  ;;  %vm1977_vm9 = vmmov 0  }
  0xca   : > { %945 = vst [vmem:[#allocation2 + $0x3c] sm:$0x88] %v944_v25  ;;  %952 = vst [vmem:[#allocation2 + $0x60] sm:$0x11] %v915_v27 }
  0xcb   : > { %v558_v34 = vsel %vm2824_vm3, %v543_v7, %v544_v21  ;;  %v560_v38 = vsel %vm552_vm12, %v529_v52, %v544_v21 }
  0xcc   : > { %v559_v35 = vsel %vm552_vm12, %v527_v56, %v558_v34  ;;  %584 = vst [vmem:[#allocation2 + $0x20] sm:$0x8] %v560_v38 }
  0xcd   : > { %v1949_v37 = vld [vmem:[#allocation2 + $0xc] ss:$36 sps:$4 sm:$0xff]   ;;  %583 = vst [vmem:[#allocation2 + $0x18] sm:$0x88] %v559_v35 }
  0xce   : > { %v1951_v15 = vld [vmem:[#allocation2 + $0x8] ss:$36 sps:$4 sm:$0xff]   ;;  %v1952_v40 = vld [vmem:[#allocation2 + $0x10] ss:$36 sps:$4 sm:$0xff]   ;;  %1491 = vmatprep.subr.bf16.mxu1 %v1949_v37 }
  0xcf   : > { %v1954_v50 = vld [vmem:[#allocation2 + $0x14] ss:$36 sps:$4 sm:$0xff]   ;;  %1492 = vmatpush1.bf16.msra.mxu1 %v1951_v15 }
  0xd0   : > { %v1958_v10 = vld [vmem:[#allocation2 + $0x68] ss:$36 sps:$4 sm:$0x3f]   ;;  %1534 = vmatprep.subr.bf16.mxu0 %v1954_v50 }
  0xd1   : > { %v1955_v28 = vld [vmem:[#allocation2 + $0x64] ss:$36 sps:$4 sm:$0x3f]   ;;  %1535 = vmatpush1.bf16.msra.mxu0 %v1952_v40  ;;  %v1432_v54 = vsel %vm1406_vm6, %v1958_v10, 0 }
  0xd2   : > { %v1957_v12 = vld [vmem:[#allocation2 + $0x60] ss:$36 sps:$4 sm:$0x3f]   ;;  %1862 = vmatmul.mubr.msk.bf16.vlgmr.msra.gmra.mxu1 %vm1402_vm15, %v2607_v58  ;;  %1865 = vmatprep.subr.msk.bf16.mxu1 %vm1406_vm6, %v1955_v28 }
  0xd3   : > { %1893 = vmatprep.subr.bf16.mxu0 %v1976_v51  ;;  %v1426_v44 = vsel %vm1406_vm6, %v1957_v12, 0  ;;  %1595 = vmatprep.mubr.bf16.mxu1 %v1975_v53  ;;  %v1962_v17 = vld [vmem:[#allocation2 + $0x20] ss:$36 sps:$4 sm:$0xff]  }
  0xd4   : > { %1864 = vmatmul.mubr.msk.bf16.vlgmr.msra.gmra.mxu0 %vm1402_vm15, %v2607_v58  ;;  %1576 = vmatpush1.bf16.msra.mxu1 %v1426_v44  ;;  %v1959_v32 = vld [vmem:[#allocation2 + $0x18] ss:$36 sps:$4 sm:$0xff]  }
  0xd5   : > { %v1961_v16 = vld [vmem:[#allocation2 + $0x1c] ss:$36 sps:$4 sm:$0xff]   ;;  %1894 = vmatpush3.bf16.msra.mxu0 %v1432_v54  ;;  %1897 = vmatprep.mubr.msk.bf16.mxu0 %vm1977_vm9, %v1976_v51 }
  0xd6   : > { %1577 = vmatprep.subr.bf16.mxu1 %v1961_v16  ;;  %1895 = vmatprep.subr.bf16.mxu0 %v1976_v51 }
  0xd8   : > { %1578 = vmatpush1.bf16.msra.mxu1 %v1959_v32 }
  0xd9   : > { %1896 = vmatpush3.bf16.msra.mxu0 %v1962_v17 }
  0xdb   : > { %1866 = vmatmul.mubr.msk.bf16.vlgmr.msra.gmra.mxu1 %vm1402_vm15, %v2607_v58 }
  0xdc   : > { %1898 = vmatmul.mubr.msk.bf16.vlgmr.msra.gmra.mxu0 %vm1402_vm15, %v2607_v58 }
 0x17e   : > { %v1468_v53 = vpop.f32.mrf.mxu0 }
 0x17f   : > { %v1647_v14 = vmax.f32 %v1468_v53, 0.0 }
 0x180   : > { %v1470_v56 = vpop.f32.mrf.mxu0 }
 0x181   : > { %v1648_v13 = vmax.f32 %v1470_v56, 0.0 }
 0x182   : > { %v1472_v41 = vpop.f32.mrf.mxu0 }
 0x183   : > { %v1880_v20 = vpack.c.bf16 %v1648_v13, %v1647_v14  ;;  %v1656_v42 = vmax.f32 %v1472_v41, 0.0 }
 0x184   : > { %v1474_v47 = vpop.f32.mrf.mxu0 }
 0x185   : > { %1721 = vst [vmem:[%s2708_s16] sm:$0xff] %v1880_v20  ;;  %v1657_v8 = vmax.f32 %v1474_v47, 0.0 }
 0x187   : > { %v1885_v58 = vpack.c.bf16 %v1657_v8, %v1656_v42 }
 0x189   : > { %1726 = vst [vmem:[%s2708_s16 + $0x24] sm:$0xff] %v1885_v58 }
 0x192   : > { %v1511_v7 = vpop.f32.mrf.mxu1 }
 0x193   : > { %v1649_v26 = vmax.f32 %v1511_v7, 0.0 }
 0x194   : > { %v1554_v49 = vpop.f32.mrf.mxu0  ;;  %v1513_v23 = vpop.f32.mrf.mxu1 }
 0x195   : > { %v1651_v57 = vmax.f32 %v1554_v49, 0.0  ;;  %v1650_v24 = vmax.f32 %v1513_v23, 0.0 }
 0x196   : > { %v1556_v61 = vpop.f32.mrf.mxu0  ;;  %v1515_v63 = vpop.f32.mrf.mxu1 }
 0x197   : > { %v1881_v4 = vpack.c.bf16 %v1650_v24, %v1649_v26  ;;  %v1652_v33 = vmax.f32 %v1556_v61, 0.0  ;;  %v1658_v9 = vmax.f32 %v1515_v63, 0.0 }
 0x198   : > { %v1558_v3 = vpop.f32.mrf.mxu0  ;;  %v1517_v29 = vpop.f32.mrf.mxu1 }
 0x199   : > { %1722 = vst [vmem:[%s2708_s16 + $0x8] sm:$0xff] %v1881_v4  ;;  %v1882_v60 = vpack.c.bf16 %v1652_v33, %v1651_v57  ;;  %v1659_v55 = vmax.f32 %v1517_v29, 0.0  ;;  %v1660_v18 = vmax.f32 %v1558_v3, 0.0 }
 0x19a   : > { %v1560_v39 = vpop.f32.mrf.mxu0 }
 0x19b   : > { %1723 = vst [vmem:[%s2708_s16 + $0x10] sm:$0xff] %v1882_v60  ;;  %v1886_v30 = vpack.c.bf16 %v1659_v55, %v1658_v9  ;;  %v1661_v11 = vmax.f32 %v1560_v39, 0.0  ;;  %v1597_v36 = vpop.f32.mrf.mxu1 }
 0x19c   : > { %v1640_v2 = vpop.f32.mrf.mxu0  ;;  %v1653_v6 = vmax.f32 %v1597_v36, 0.0 }
 0x19d   : > { %1727 = vst [vmem:[%s2708_s16 + $0x2c] sm:$0xff] %v1886_v30  ;;  %v1887_v48 = vpack.c.bf16 %v1661_v11, %v1660_v18  ;;  %v1655_v0 = vmax.f32 %v1640_v2, 0.0  ;;  %v1599_v46 = vpop.f32.mrf.mxu1 }
 0x19e   : > { %v1654_v5 = vmax.f32 %v1599_v46, 0.0  ;;  %v1899_v62 = vpop.f32.mrf.mxu0 }
 0x19f   : > { %1728 = vst [vmem:[%s2708_s16 + $0x34] sm:$0xff] %v1887_v48  ;;  %v1884_v19 = vpack.c.bf16 %v1655_v0, %v1655_v0  ;;  %v1601_v22 = vpop.f32.mrf.mxu1 }
 0x1a0   : > { %v1883_v1 = vpack.c.bf16 %v1654_v5, %v1653_v6  ;;  %v1643_v45 = vpop.f32.mrf.mxu0  ;;  %v1662_v43 = vmax.f32 %v1601_v22, 0.0 }
 0x1a1   : > { %1725 = vst [vmem:[%s2708_s16 + $0x20] sm:$0xf] %v1884_v19  ;;  %v1664_v31 = vmax.f32 %v1643_v45, 0.0  ;;  %v1603_v59 = vpop.f32.mrf.mxu1 }
 0x1a2   : > { %1724 = vst [vmem:[%s2708_s16 + $0x18] sm:$0xff] %v1883_v1  ;;  %v1663_v25 = vmax.f32 %v1603_v59, 0.0  ;;  %v1900_v27 = vpop.f32.mrf.mxu0 }
 0x1a3   : > { %v1889_v52 = vpack.c.bf16 %v1664_v31, %v1664_v31 }
 0x1a4   : > { %v1888_v21 = vpack.c.bf16 %v1663_v25, %v1662_v43 }
 0x1a5   : > { %1730 = vst [vmem:[%s2708_s16 + $0x44] sm:$0xf] %v1889_v52 }
 0x1a6   : > { %1729 = vst [vmem:[%s2708_s16 + $0x3c] sm:$0xff] %v1888_v21 }
 0x1a7 PF: > { %s15_s18 = sadd.s32 1, %s1969_s18  }
 0x1a8   : > { %p12_p4 = scmp.ge.s32.totalorder %s15_s18, 4  }
 0x1aa   :  { %14 = sbr.rel (!%p12_p4) target bundleno = 1 (0x1), region = 79 }

// kernel: hrtlab_forward.6
= control target key start
LH: loop header
LB: loop body
LE: loop exit
PB: predicated region body
PF: predicated region fallthrough
CT: control target
= control target key end

     0   :  { %s1145_s18 = smov 0   ;;  %s1326_s0 = inlined_call_operand.vmem [shape: bf16[32,145], index: 0, kind: input, shape index: {}]   ;;  %s1327_s1 = inlined_call_operand.vmem [shape: bf16[2,16,512], index: 1, kind: input, shape index: {}]   ;;  %s1328_s2 = inlined_call_operand.vmem [shape: bf16[2,16,512], index: 2, kind: input, shape index: {}]   ;;  %s1329_s3 = inlined_call_operand.vmem [shape: bf16[2,16,512], index: 3, kind: input, shape index: {}]   ;;  %s1330_s4 = inlined_call_operand.vmem [shape: bf16[2,16,512], index: 4, kind: input, shape index: {}]   ;;  %s1331_s5 = inlined_call_operand.vmem [shape: bf16[2,32,384], index: 5, kind: output, shape index: {}]  }
   0x1 LB: > { %s990_s19 = sadd.s32 4294967295, %s1109_s18   ;;  %p994_p0 = scmp.ge.s32.totalorder %s1109_s18, 1  ;;  %s1109_s18 = sphi %s1145_s18, %s15_s18  }
   0x2   : > { %p217_p1 = scmp.lt.s32.totalorder %s1109_s18, 3 }
   0x4   : > { %p218_p2 = pnand %p994_p0, %p217_p1 }
   0x5   : > { %p260_p3 = scmp.lt.s32.totalorder (!%p218_p2), %s990_s19, 1  ;;  %s1111_s30 = smov (!%p218_p2), 111  }
   0x6   : > { %221 = sbr.rel (%p218_p2) target bundleno = 403 (0x193), region = 40  ;;  %s1113_s9 = smov (!%p218_p2), 127  }
   0x7   : > { %s1114_s10 = smov (!%p218_p2), 110  }
   0xb   : > { %s1335_s19 = smov (!%p260_p3, %s990_s19), 1  ;;  %v1112_v12 = vmov 0   ;;  %vm493_vm0 = vcmask 1040384   ;;  %vm494_vm1 = vsmask.f32 256  ;;  %vm496_vm2 = vcmask 1044484  }
   0xc   : > { %s1052_s20 = sshll.u32 %s1335_s19, 5  ;;  %790 = vmatprep.subr.bf16.mxu1 %v1112_v12  ;;  %vm1206_vm3 = vmand %vm493_vm0, %vm494_vm1  ;;  %vm497_vm4 = vsmask.f32 4352  ;;  %v500_v26 = vld [vmem:[#allocation2 + $0xd8] sm:$0x11]  ;;  %vm718_vm7 = vcmask 138240  }
   0xd   : > { %s269_s23 = scalar_lea.vmem %s1328_s2, %s1052_s20  ;;  %s279_s26 = scalar_lea.vmem %s1330_s4, %s1052_s20  ;;  %vm498_vm5 = vmand %vm496_vm2, %vm497_vm4  ;;  %v503_v32 = vld [vmem:[#allocation2 + $0xe0] sm:$0x1]  ;;  %v1099_v36 = vld [vmem:[%s1326_s0 + $0x4] ss:$8 sps:$4 sm:$0xff]   ;;  %vm323_vm8 = vcmask 1043456   ;;  %vm410_vm9 = vcmask 908288  }
   0xe   : > { %v1162_v0 = vld [vmem:[%s279_s26] sm:$0xff]  ;;  %v348_v1 = vld [vmem:[%s279_s26 + $0x8] sm:$0xf]  ;;  %v1164_v2 = vld [vmem:[%s279_s26 + $0x10] sm:$0xff]  ;;  %s1171_s29 = scalar_lea.vmem %s1327_s1, %s1052_s20  ;;  %s274_s8 = scalar_lea.vmem %s1329_s3, %s1052_s20  ;;  %v504_v34 = vsel %vm1206_vm3, 1065369472, %v503_v32  ;;  %1040 = vmatprep.mubr.msk.bf16.mxu1 %vm718_vm7, %v1099_v36  ;;  %1038 = vmatprep.mubr.msk.bf16.mxu0 %vm718_vm7, %v1099_v36 }
   0xf   : > { %v350_v3 = vld [vmem:[%s279_s26 + $0x18] sm:$0xf]  ;;  %352 = vst [vmem:[#allocation2 + $0x68] sm:$0xf] %v348_v1  ;;  %v1166_v4 = vld [vmem:[%s269_s23 + $0x10] sm:$0xff]  ;;  %v1173_v5 = vld [vmem:[%s269_s23] sm:$0xff]  ;;  %v1021_v20 = vcombine.high %v1162_v0, %v1164_v2  ;;  %v1020_v21 = vcombine.low %v1162_v0, %v1164_v2 }
  0x10   : > { %354 = vst [vmem:[#allocation2 + $0x74] sm:$0xf] %v350_v3  ;;  %436 = vrot.lane.b32.xlu1 %v1166_v4, %s1111_s30  ;;  %v296_v6 = vld [vmem:[%s269_s23 + $0x8] sm:$0xf]  ;;  %v298_v7 = vld [vmem:[%s269_s23 + $0x18] sm:$0xf]  ;;  %432 = vrot.lane.b32.xlu0 %v1173_v5, %s1111_s30  ;;  %vm499_vm6 = vmor %vm498_vm5, %vm1206_vm3  ;;  %v1012_v28 = vcombine.high %v1173_v5, %v1166_v4  ;;  %v1011_v29 = vcombine.low %v1173_v5, %v1166_v4 }
  0x11   : > { %300 = vst [vmem:[#allocation2 + $0x20] sm:$0xf] %v296_v6  ;;  %302 = vst [vmem:[#allocation2 + $0x2c] sm:$0xf] %v298_v7  ;;  %v427_v8 = vld [vmem:[%s269_s23 + $0x18] sm:$0xff]  ;;  %v425_v9 = vld [vmem:[%s269_s23 + $0x8] sm:$0xff] }
  0x12   : > { %v1181_v10 = vld [vmem:[%s1171_s29] sm:$0xff]  ;;  %v1184_v11 = vld [vmem:[%s1171_s29 + $0x10] sm:$0xff]  ;;  %v340_v14 = vld [vmem:[%s274_s8 + $0x8] sm:$0xf]  ;;  %v501_v27 = vsel %vm499_vm6, 1065369472, %v500_v26 }
  0x13   : > { %v1187_v13 = vld [vmem:[%s274_s8] sm:$0xff]  ;;  %v1189_v15 = vld [vmem:[%s274_s8 + $0x10] sm:$0xff]  ;;  %v342_v16 = vld [vmem:[%s274_s8 + $0x18] sm:$0xf]  ;;  %344 = vst [vmem:[#allocation2 + $0x50] sm:$0xf] %v340_v14  ;;  %v1009_v33 = vcombine.high %v1181_v10, %v1184_v11  ;;  %v1008_v35 = vcombine.low %v1181_v10, %v1184_v11 }
  0x14   : > { %438 = vrot.lane.b32.xlu1 %v427_v8, %s1111_s30  ;;  %434 = vrot.lane.b32.xlu0 %v425_v9, %s1111_s30  ;;  %v390_v17 = vld [vmem:[%s1171_s29 + $0x8] sm:$0xff]  ;;  %346 = vst [vmem:[#allocation2 + $0x5c] sm:$0xf] %v342_v16  ;;  %v392_v18 = vld [vmem:[%s1171_s29 + $0x18] sm:$0xff]  ;;  %v1018_v23 = vcombine.high %v1187_v13, %v1189_v15  ;;  %v1017_v24 = vcombine.low %v1187_v13, %v1189_v15  ;;  %502 = vst [vmem:[#allocation2 + $0xd8] sm:$0x11] %v501_v27 }
  0x15   : > { %v356_v19 = vld [vmem:[%s274_s8 + $0x8] sm:$0xff]  ;;  %v358_v22 = vld [vmem:[%s274_s8 + $0x18] sm:$0xff]  ;;  %505 = vst [vmem:[#allocation2 + $0xe0] sm:$0x1] %v504_v34  ;;  %vm325_vm10 = vcmask 1039360   ;;  %vm479_vm11 = vcmask 900096  }
  0x16   : > { %v288_v30 = vld [vmem:[%s1171_s29 + $0x8] sm:$0xf]  ;;  %v290_v31 = vld [vmem:[%s1171_s29 + $0x18] sm:$0xf]  ;;  %s1064_s21 = smul.u32 48, %s1335_s19 }
  0x17   : > { %292 = vst [vmem:[#allocation2 + $0x8] sm:$0xf] %v288_v30  ;;  %294 = vst [vmem:[#allocation2 + $0x14] sm:$0xf] %v290_v31 }
  0x18   : > { %399 = vrot.lane.b32.xlu1 %v390_v17, %s1111_s30  ;;  %397 = vrot.lane.b32.xlu0 %v1181_v10, %s1111_s30  ;;  %s1313_s24 = scalar_lea.vmem %s1331_s5, %s1064_s21 }
  0x1c   : > { %403 = vrot.lane.b32.xlu1 %v392_v18, %s1111_s30  ;;  %401 = vrot.lane.b32.xlu0 %v1184_v11, %s1111_s30 }
  0x20   : > { %365 = vrot.lane.b32.xlu1 %v356_v19, %s1113_s9  ;;  %363 = vrot.lane.b32.xlu0 %v1187_v13, %s1113_s9 }
  0x24   : > { %369 = vrot.lane.b32.xlu1 %v358_v22, %s1113_s9  ;;  %367 = vrot.lane.b32.xlu0 %v1189_v15, %s1113_s9  ;;  %v727_v15 = vsel %vm493_vm0, 65535, %v1112_v12 }
  0x28   : > { %313 = vrot.lane.b32.xlu1 %v390_v17, %s1113_s9  ;;  %311 = vrot.lane.b32.xlu0 %v1181_v10, %s1113_s9 }
  0x2c   : > { %317 = vrot.lane.b32.xlu1 %v392_v18, %s1113_s9  ;;  %315 = vrot.lane.b32.xlu0 %v1184_v11, %s1113_s9 }
  0x30   : > { %468 = vrot.lane.b32.xlu1 %v390_v17, %s1114_s10  ;;  %466 = vrot.lane.b32.xlu0 %v1181_v10, %s1114_s10  ;;  %v1097_v10 = vld [vmem:[%s1326_s0] ss:$8 sps:$4 sm:$0xff]  }
  0x34   : > { %472 = vrot.lane.b32.xlu1 %v392_v18, %s1114_s10  ;;  %470 = vrot.lane.b32.xlu0 %v1184_v11, %s1114_s10  ;;  %v1100_v11 = vld [vmem:[%s1326_s0 + $0x14] ss:$8 sps:$4 sm:$0xff]  }
  0x82   : > { %v437_v37 = vpop.permute.xlu1 %436  ;;  %v433_v38 = vpop.permute.xlu0 %432 }
  0x83   : > { %v440_v39 = vrot.slane %v433_v38, 4  ;;  %v442_v42 = vrot.slane %v437_v37, 4 }
  0x86   : > { %v439_v40 = vpop.permute.xlu1 %438  ;;  %v435_v41 = vpop.permute.xlu0 %434 }
  0x87   : > { %v443_v43 = vrot.slane %v439_v40, 4  ;;  %v441_v44 = vrot.slane %v435_v41, 4 }
  0x89   : > { %v447_v45 = vsel %vm323_vm8, %v442_v42, %v443_v43  ;;  %v449_v46 = vsel %vm410_vm9, %v439_v40, %v443_v43  ;;  %v444_v47 = vsel %vm323_vm8, %v440_v39, %v441_v44  ;;  %v446_v48 = vsel %vm410_vm9, %v435_v41, %v441_v44 }
  0x8a   : > { %v448_v49 = vsel %vm410_vm9, %v437_v37, %v447_v45  ;;  %457 = vst [vmem:[#allocation2 + $0xbc] sm:$0xf] %v449_v46  ;;  %v445_v50 = vsel %vm410_vm9, %v433_v38, %v444_v47  ;;  %455 = vst [vmem:[#allocation2 + $0xb0] sm:$0xf] %v446_v48  ;;  %v400_v51 = vpop.permute.xlu1 %399  ;;  %v398_v52 = vpop.permute.xlu0 %397 }
  0x8b   : > { %v406_v53 = vrot.slane %v400_v51, 4  ;;  %v405_v54 = vrot.slane %v398_v52, 4  ;;  %v1030_v55 = vcombine.high %v445_v50, %v448_v49  ;;  %v1029_v56 = vcombine.low %v445_v50, %v448_v49 }
  0x8d   : > { %v412_v57 = vsel %vm410_vm9, %v400_v51, %v406_v53  ;;  %v409_v58 = vsel %vm323_vm8, %v405_v54, %v406_v53  ;;  %737 = vmatprep.subr.bf16.mxu0 %v1030_v55 }
  0x8e   : > { %421 = vst [vmem:[#allocation2 + $0x98] sm:$0xf] %v412_v57  ;;  %v411_v59 = vsel %vm410_vm9, %v398_v52, %v409_v58  ;;  %v404_v60 = vpop.permute.xlu1 %403  ;;  %v402_v61 = vpop.permute.xlu0 %401  ;;  %738 = vmatpush1.bf16.msra.mxu0 %v1029_v56 }
  0x8f   : > { %v408_v62 = vrot.slane %v404_v60, 4  ;;  %v407_v63 = vrot.slane %v402_v61, 4 }
  0x91   : > { %v415_v1 = vsel %vm410_vm9, %v404_v60, %v408_v62  ;;  %v413_v3 = vsel %vm323_vm8, %v407_v63, %v408_v62  ;;  %v1077_v6 = vld [vmem:[#allocation2 + $0xb0] ss:$12 sps:$4 sm:$0xff]  }
  0x92   : > { %423 = vst [vmem:[#allocation2 + $0xa4] sm:$0xf] %v415_v1  ;;  %v414_v7 = vsel %vm410_vm9, %v402_v61, %v413_v3  ;;  %v366_v8 = vpop.permute.xlu1 %365  ;;  %v364_v9 = vpop.permute.xlu0 %363  ;;  %791 = vmatpush1.bf16.msra.mxu1 %v1077_v6  ;;  %v546_v3 = vld [vmem:[#allocation2 + $0xd8] sm:$0x11] }
  0x93   : > { %v372_v14 = vrot.slane %v366_v8, 4  ;;  %v371_v16 = vrot.slane %v364_v9, 4  ;;  %v1027_v17 = vcombine.high %v411_v59, %v414_v7  ;;  %v1026_v18 = vcombine.low %v411_v59, %v414_v7  ;;  %792 = vmatprep.subr.bf16.mxu1 %v1112_v12  ;;  %v1080_v59 = vld [vmem:[#allocation2 + $0x68] ss:$12 sps:$4 sm:$0xff]  }
  0x94   : > { %v1036_v13 = vcombine.high %v546_v3, %v546_v3 }
  0x95   : > { %v377_v19 = vsel %vm325_vm10, %v366_v8, %v372_v14  ;;  %v375_v22 = vsel %vm323_vm8, %v371_v16, %v372_v14  ;;  %739 = vmatprep.subr.bf16.mxu0 %v1027_v17  ;;  %v1087_v14 = vld [vmem:[#allocation2 + $0x20] ss:$12 sps:$4 sm:$0xff]   ;;  %v1090_v17 = vld [vmem:[#allocation2 + $0x8] ss:$12 sps:$4 sm:$0xff]  }
  0x96   : > { %386 = vst [vmem:[#allocation2 + $0x80] sm:$0xf] %v377_v19  ;;  %v376_v25 = vsel %vm325_vm10, %v364_v9, %v375_v22  ;;  %v370_v26 = vpop.permute.xlu1 %369  ;;  %v368_v27 = vpop.permute.xlu0 %367  ;;  %740 = vmatpush1.bf16.msra.mxu0 %v1026_v18  ;;  %v1035_v9 = vcombine.low %v546_v3, %v546_v3  ;;  %v732_v16 = vand.u32 %v1036_v13, %v727_v15  ;;  %v1093_v18 = vld [vmem:[#allocation2 + $0xe0] ss:$0 sps:$4 sm:$0x11]  }
  0x97   : > { %v374_v30 = vrot.slane %v370_v26, 4  ;;  %v373_v31 = vrot.slane %v368_v27, 4  ;;  %v735_v5 = vand.u32 %v1093_v18, %v727_v15 }
  0x99   : > { %v380_v32 = vsel %vm325_vm10, %v370_v26, %v374_v30  ;;  %v378_v34 = vsel %vm323_vm8, %v373_v31, %v374_v30  ;;  %v1078_v36 = vld [vmem:[#allocation2 + $0x98] ss:$12 sps:$4 sm:$0xff]  }
  0x9a   : > { %388 = vst [vmem:[#allocation2 + $0x8c] sm:$0xf] %v380_v32  ;;  %v379_v37 = vsel %vm325_vm10, %v368_v27, %v378_v34  ;;  %v314_v38 = vpop.permute.xlu1 %313  ;;  %v312_v39 = vpop.permute.xlu0 %311  ;;  %793 = vmatpush1.bf16.msra.mxu1 %v1078_v36 }
  0x9b   : > { %v320_v40 = vrot.slane %v314_v38, 4  ;;  %v319_v41 = vrot.slane %v312_v39, 4  ;;  %v1024_v42 = vcombine.high %v376_v25, %v379_v37  ;;  %v1023_v43 = vcombine.low %v376_v25, %v379_v37  ;;  %794 = vmatprep.subr.bf16.mxu1 %v1112_v12 }
  0x9d   : > { %v327_v44 = vsel %vm325_vm10, %v314_v38, %v320_v40  ;;  %v324_v45 = vsel %vm323_vm8, %v319_v41, %v320_v40  ;;  %741 = vmatprep.subr.bf16.mxu0 %v1024_v42 }
  0x9e   : > { %336 = vst [vmem:[#allocation2 + $0x38] sm:$0xf] %v327_v44  ;;  %v326_v46 = vsel %vm325_vm10, %v312_v39, %v324_v45  ;;  %v318_v47 = vpop.permute.xlu1 %317  ;;  %v316_v48 = vpop.permute.xlu0 %315  ;;  %742 = vmatpush1.bf16.msra.mxu0 %v1023_v43 }
  0x9f   : > { %v322_v49 = vrot.slane %v318_v47, 4  ;;  %v321_v50 = vrot.slane %v316_v48, 4  ;;  %743 = vmatprep.subr.bf16.mxu0 %v1021_v20 }
  0xa1   : > { %v330_v51 = vsel %vm325_vm10, %v318_v47, %v322_v49  ;;  %v328_v52 = vsel %vm323_vm8, %v321_v50, %v322_v49  ;;  %v1079_v53 = vld [vmem:[#allocation2 + $0x80] ss:$12 sps:$4 sm:$0xff]  }
  0xa2   : > { %338 = vst [vmem:[#allocation2 + $0x44] sm:$0xf] %v330_v51  ;;  %v329_v54 = vsel %vm325_vm10, %v316_v48, %v328_v52  ;;  %v469_v55 = vpop.permute.xlu1 %468  ;;  %v467_v56 = vpop.permute.xlu0 %466  ;;  %744 = vmatpush1.bf16.msra.mxu0 %v1020_v21  ;;  %795 = vmatpush1.bf16.msra.mxu1 %v1079_v53 }
  0xa3   : > { %v475_v57 = vrot.slane %v469_v55, 4  ;;  %v474_v58 = vrot.slane %v467_v56, 4  ;;  %745 = vmatprep.subr.bf16.mxu0 %v1018_v23  ;;  %796 = vmatprep.subr.bf16.mxu1 %v1112_v12  ;;  %v1015_v61 = vcombine.high %v326_v46, %v329_v54  ;;  %v1083_v23 = vld [vmem:[#allocation2 + $0x50] ss:$12 sps:$4 sm:$0xff]   ;;  %v1014_v1 = vcombine.low %v326_v46, %v329_v54 }
  0xa5   : > { %v481_v20 = vsel %vm479_vm11, %v469_v55, %v475_v57  ;;  %v478_v60 = vsel %vm323_vm8, %v474_v58, %v475_v57 }
  0xa6   : > { %490 = vst [vmem:[#allocation2 + $0xc8] sm:$0xf] %v481_v20  ;;  %v480_v62 = vsel %vm479_vm11, %v467_v56, %v478_v60  ;;  %v473_v0 = vpop.permute.xlu1 %472  ;;  %v471_v2 = vpop.permute.xlu0 %470  ;;  %746 = vmatpush1.bf16.msra.mxu0 %v1017_v24  ;;  %797 = vmatpush1.bf16.msra.mxu1 %v1080_v59 }
  0xa7   : > { %v477_v21 = vrot.slane %v473_v0, 4  ;;  %v476_v63 = vrot.slane %v471_v2, 4  ;;  %747 = vmatprep.subr.bf16.mxu0 %v1015_v61  ;;  %798 = vmatprep.subr.bf16.mxu1 %v1112_v12 }
  0xa9   : > { %v484_v6 = vsel %vm479_vm11, %v473_v0, %v477_v21  ;;  %v482_v7 = vsel %vm323_vm8, %v476_v63, %v477_v21  ;;  %v1086_v24 = vld [vmem:[#allocation2 + $0x38] ss:$12 sps:$4 sm:$0xff]  }
  0xaa   : > { %492 = vst [vmem:[#allocation2 + $0xd4] sm:$0xf] %v484_v6  ;;  %v483_v8 = vsel %vm479_vm11, %v471_v2, %v482_v7  ;;  %748 = vmatpush1.bf16.msra.mxu0 %v1014_v1  ;;  %799 = vmatpush1.bf16.msra.mxu1 %v1083_v23 }
  0xab   : > { %749 = vmatprep.subr.bf16.mxu0 %v1012_v28  ;;  %800 = vmatprep.subr.bf16.mxu1 %v1112_v12  ;;  %v729_v28 = vand.u32 %v1035_v9, %v727_v15  ;;  %v1033_v4 = vcombine.high %v480_v62, %v483_v8 }
  0xae   : > { %750 = vmatpush1.bf16.msra.mxu0 %v1011_v29  ;;  %801 = vmatpush1.bf16.msra.mxu1 %v1086_v24  ;;  %v1032_v29 = vcombine.low %v480_v62, %v483_v8 }
  0xaf   : > { %751 = vmatprep.subr.bf16.mxu0 %v1009_v33  ;;  %802 = vmatprep.subr.bf16.mxu1 %v1112_v12 }
  0xb1   : > { %v1096_v33 = vld [vmem:[#allocation2 + $0xc8] ss:$12 sps:$4 sm:$0xff]  }
  0xb2   : > { %752 = vmatpush1.bf16.msra.mxu0 %v1008_v35  ;;  %803 = vmatpush1.bf16.msra.mxu1 %v1087_v14  ;;  %v1102_v35 = vld [vmem:[%s1326_s0 + $0x10] ss:$8 sps:$4 sm:$0xff]  }
  0xb3   : > { %765 = vmatprep.subr.bf16.mxu0 %v732_v16  ;;  %804 = vmatprep.subr.bf16.mxu1 %v1112_v12 }
  0xb6   : > { %766 = vmatpush2.bf16.msra.mxu0 %v729_v28  ;;  %805 = vmatpush1.bf16.msra.mxu1 %v1090_v17 }
  0xb7   : > { %767 = vmatprep.subr.bf16.mxu0 %v1033_v4  ;;  %818 = vmatprep.subr.bf16.mxu1 %v1112_v12 }
  0xba   : > { %768 = vmatpush2.bf16.msra.mxu0 %v1032_v29  ;;  %819 = vmatpush2.bf16.msra.mxu1 %v735_v5 }
  0xbb   : > { %820 = vmatprep.subr.bf16.mxu1 %v1112_v12 }
  0xbd   : > { %770 = vmatmul.mubr.bf16.vlgmr.msra.gmra.mxu0 %v1097_v10 }
  0xbe   : > { %1039 = vmatprep.mubr.msk.bf16.mxu0 %vm718_vm7, %v1100_v11  ;;  %821 = vmatpush2.bf16.msra.mxu1 %v1096_v33 }
  0xc1   : > { %823 = vmatmul.mubr.bf16.vlgmr.msra.gmra.mxu1 %v1097_v10 }
  0xc2   : > { %1041 = vmatprep.mubr.msk.bf16.mxu1 %vm718_vm7, %v1100_v11 }
  0xc5   : > { %780 = vmatmul.mubr.bf16.gmra.mxu0 %v1102_v35 }
  0xc9   : > { %831 = vmatmul.mubr.bf16.gmra.mxu1 %v1102_v35 }
 0x17d   : > { %v771_v19 = vpop.f32.mrf.mxu0 }
 0x17e   : > { %v839_v22 = vmax.f32 %v771_v19, 0.0 }
 0x17f   : > { %v773_v25 = vpop.f32.mrf.mxu0 }
 0x180   : > { %v840_v26 = vmax.f32 %v773_v25, 0.0 }
 0x181   : > { %v775_v12 = vpop.f32.mrf.mxu0  ;;  %v824_v27 = vpop.f32.mrf.mxu1 }
 0x182   : > { %v1056_v30 = vpack.c.bf16 %v840_v26, %v839_v22  ;;  %v841_v31 = vmax.f32 %v824_v27, 0.0  ;;  %v842_v36 = vmax.f32 %v775_v12, 0.0 }
 0x183   : > { %v777_v32 = vpop.f32.mrf.mxu0  ;;  %v826_v34 = vpop.f32.mrf.mxu1 }
 0x184   : > { %891 = vst [vmem:[%s1313_s24] sm:$0xff] %v1056_v30  ;;  %v843_v37 = vmax.f32 %v777_v32, 0.0  ;;  %v1057_v38 = vpack.c.bf16 %v841_v31, %v841_v31 }
 0x185   : > { %v781_v39 = vpop.f32.mrf.mxu0  ;;  %v827_v40 = vpop.f32.mrf.mxu1 }
 0x186   : > { %v1058_v41 = vpack.c.bf16 %v843_v37, %v842_v36  ;;  %v845_v42 = vmax.f32 %v781_v39, 0.0  ;;  %892 = vst [vmem:[%s1313_s24 + $0x8] sm:$0xf] %v1057_v38  ;;  %v844_v43 = vmax.f32 %v827_v40, 0.0 }
 0x187   : > { %v783_v44 = vpop.f32.mrf.mxu0  ;;  %v829_v45 = vpop.f32.mrf.mxu1 }
 0x188   : > { %893 = vst [vmem:[%s1313_s24 + $0xc] sm:$0xff] %v1058_v41  ;;  %v846_v46 = vmax.f32 %v783_v44, 0.0  ;;  %v1059_v47 = vpack.c.bf16 %v844_v43, %v844_v43 }
 0x189   : > { %v785_v48 = vpop.f32.mrf.mxu0  ;;  %v832_v49 = vpop.f32.mrf.mxu1 }
 0x18a   : > { %v1060_v50 = vpack.c.bf16 %v846_v46, %v845_v42  ;;  %894 = vst [vmem:[%s1313_s24 + $0x14] sm:$0xf] %v1059_v47  ;;  %v847_v51 = vmax.f32 %v832_v49, 0.0  ;;  %v848_v54 = vmax.f32 %v785_v48, 0.0 }
 0x18b   : > { %v787_v52 = vpop.f32.mrf.mxu0  ;;  %v834_v53 = vpop.f32.mrf.mxu1 }
 0x18c   : > { %895 = vst [vmem:[%s1313_s24 + $0x18] sm:$0xff] %v1060_v50  ;;  %v849_v55 = vmax.f32 %v787_v52, 0.0  ;;  %v1061_v56 = vpack.c.bf16 %v847_v51, %v847_v51 }
 0x18d   : > { %v835_v57 = vpop.f32.mrf.mxu1 }
 0x18e   : > { %v1062_v58 = vpack.c.bf16 %v849_v55, %v848_v54  ;;  %896 = vst [vmem:[%s1313_s24 + $0x20] sm:$0xf] %v1061_v56  ;;  %v850_v59 = vmax.f32 %v835_v57, 0.0 }
 0x18f   : > { %v837_v20 = vpop.f32.mrf.mxu1 }
 0x190   : > { %897 = vst [vmem:[%s1313_s24 + $0x24] sm:$0xff] %v1062_v58  ;;  %v1063_v60 = vpack.c.bf16 %v850_v59, %v850_v59 }
 0x192   : > { %898 = vst [vmem:[%s1313_s24 + $0x2c] sm:$0xf] %v1063_v60 }
 0x193 PF: > { %s15_s18 = sadd.s32 1, %s1109_s18  }
 0x194   : > { %p12_p4 = scmp.ge.s32.totalorder %s15_s18, 4  }
 0x196   :  { %14 = sbr.rel (!%p12_p4) target bundleno = 1 (0x1), region = 79 }

// kernel: hrtlab_forward.7
= control target key start
LH: loop header
LB: loop body
LE: loop exit
PB: predicated region body
PF: predicated region fallthrough
CT: control target
= control target key end

     0   :  { %s1246_s18 = smov 0   ;;  %s1383_s0 = inlined_call_operand.vmem [shape: bf16[64,289], index: 0, kind: input, shape index: {}]   ;;  %s1384_s1 = inlined_call_operand.vmem [shape: bf16[2,32,256], index: 1, kind: input, shape index: {}]   ;;  %s1385_s2 = inlined_call_operand.vmem [shape: bf16[2,32,256], index: 2, kind: input, shape index: {}]   ;;  %s1386_s3 = inlined_call_operand.vmem [shape: bf16[2,32,256], index: 3, kind: input, shape index: {}]   ;;  %s1387_s4 = inlined_call_operand.vmem [shape: bf16[2,32,256], index: 4, kind: input, shape index: {}]   ;;  %s1388_s5 = inlined_call_operand.vmem [shape: bf16[2,64,128], index: 5, kind: output, shape index: {}]  }
   0x1 LB: > { %s1000_s19 = sadd.s32 4294967295, %s1210_s18   ;;  %p1004_p0 = scmp.ge.s32.totalorder %s1210_s18, 1  ;;  %s1210_s18 = sphi %s1246_s18, %s15_s18  }
   0x2   : > { %p217_p1 = scmp.lt.s32.totalorder %s1210_s18, 3 }
   0x4   : > { %p218_p2 = pnand %p1004_p0, %p217_p1 }
   0x5   : > { %p260_p3 = scmp.lt.s32.totalorder (!%p218_p2), %s1000_s19, 1  ;;  %s1212_s27 = smov (!%p218_p2), 119  }
   0x6   : > { %221 = sbr.rel (%p218_p2) target bundleno = 418 (0x1a2), region = 40  ;;  %s1213_s9 = smov (!%p218_p2), 127  }
   0x7   : > { %s1215_s10 = smov (!%p218_p2), 118  }
   0xb   : > { %s1390_s19 = smov (!%p260_p3, %s1000_s19), 1  ;;  %vm482_vm0 = vcmask 1040384   ;;  %vm483_vm1 = vsmask.f32 256  ;;  %v485_v20 = vld [vmem:[#allocation2 + $0x90] sm:$0x1] }
   0xc   : > { %s1254_s20 = sshll.u32 %s1390_s19, 5  ;;  %vm484_vm2 = vmand %vm482_vm0, %vm483_vm1  ;;  %v1214_v29 = vmov 0   ;;  %v1190_v34 = vld [vmem:[%s1383_s0 + $0x4] ss:$12 sps:$4 sm:$0xff]   ;;  %v1191_v35 = vld [vmem:[%s1383_s0 + $0x8] ss:$12 sps:$4 sm:$0xff]  }
   0xd   : > { %s269_s23 = scalar_lea.vmem %s1385_s2, %s1254_s20  ;;  %s279_s26 = scalar_lea.vmem %s1387_s4, %s1254_s20  ;;  %v486_v21 = vsel %vm484_vm2, 1065369472, %v485_v20  ;;  %v727_v30 = vsel %vm482_vm0, 65535, %v1214_v29  ;;  %763 = vmatprep.mubr.bf16.mxu0 %v1190_v34  ;;  %vm712_vm3 = vcmask 269312   ;;  %vm404_vm4 = vcmask 973824  }
   0xe   : > { %v344_v0 = vld [vmem:[%s279_s26] sm:$0xf]  ;;  %v345_v1 = vld [vmem:[%s279_s26 + $0x8] sm:$0xf]  ;;  %v346_v2 = vld [vmem:[%s279_s26 + $0x10] sm:$0xf]  ;;  %s1269_s30 = scalar_lea.vmem %s1384_s1, %s1254_s20  ;;  %s1276_s8 = scalar_lea.vmem %s1386_s3, %s1254_s20  ;;  %1149 = vmatprep.mubr.msk.bf16.mxu1 %vm712_vm3, %v1191_v35 }
   0xf   : > { %v347_v3 = vld [vmem:[%s279_s26 + $0x18] sm:$0xf]  ;;  %348 = vst [vmem:[#allocation2 + $0x40] sm:$0xf] %v344_v0  ;;  %349 = vst [vmem:[#allocation2 + $0x44] sm:$0xf] %v345_v1  ;;  %s1374_s14 = scalar_lea.vmem %s1388_s5, %s1254_s20 }
  0x10   : > { %350 = vst [vmem:[#allocation2 + $0x48] sm:$0xf] %v346_v2  ;;  %v419_v4 = vld [vmem:[%s269_s23 + $0x10] sm:$0xff]  ;;  %v295_v5 = vld [vmem:[%s269_s23] sm:$0xf]  ;;  %v420_v10 = vld [vmem:[%s269_s23 + $0x18] sm:$0xff] }
  0x11   : > { %351 = vst [vmem:[#allocation2 + $0x4c] sm:$0xf] %v347_v3  ;;  %429 = vrot.lane.b32.xlu0 %v419_v4, %s1212_s27  ;;  %v296_v6 = vld [vmem:[%s269_s23 + $0x8] sm:$0xf]  ;;  %v297_v7 = vld [vmem:[%s269_s23 + $0x10] sm:$0xf] }
  0x12   : > { %v298_v8 = vld [vmem:[%s269_s23 + $0x18] sm:$0xf]  ;;  %299 = vst [vmem:[#allocation2 + $0x10] sm:$0xf] %v295_v5  ;;  %300 = vst [vmem:[#allocation2 + $0x14] sm:$0xf] %v296_v6 }
  0x13   : > { %301 = vst [vmem:[#allocation2 + $0x18] sm:$0xf] %v297_v7  ;;  %302 = vst [vmem:[#allocation2 + $0x1c] sm:$0xf] %v298_v8  ;;  %v417_v9 = vld [vmem:[%s269_s23] sm:$0xff]  ;;  %v418_v11 = vld [vmem:[%s269_s23 + $0x8] sm:$0xff] }
  0x14   : > { %425 = vrot.lane.b32.xlu1 %v417_v9, %s1212_s27  ;;  %v336_v12 = vld [vmem:[%s1276_s8] sm:$0xf]  ;;  %v337_v13 = vld [vmem:[%s1276_s8 + $0x8] sm:$0xf]  ;;  %v338_v14 = vld [vmem:[%s1276_s8 + $0x10] sm:$0xf] }
  0x15   : > { %431 = vrot.lane.b32.xlu0 %v420_v10, %s1212_s27  ;;  %v339_v15 = vld [vmem:[%s1276_s8 + $0x18] sm:$0xf]  ;;  %340 = vst [vmem:[#allocation2 + $0x30] sm:$0xf] %v336_v12  ;;  %341 = vst [vmem:[#allocation2 + $0x34] sm:$0xf] %v337_v13 }
  0x16   : > { %v386_v16 = vld [vmem:[%s1269_s30 + $0x10] sm:$0xff]  ;;  %342 = vst [vmem:[#allocation2 + $0x38] sm:$0xf] %v338_v14  ;;  %343 = vst [vmem:[#allocation2 + $0x3c] sm:$0xf] %v339_v15  ;;  %v387_v17 = vld [vmem:[%s1269_s30 + $0x18] sm:$0xff] }
  0x17   : > { %v384_v18 = vld [vmem:[%s1269_s30] sm:$0xff]  ;;  %v385_v19 = vld [vmem:[%s1269_s30 + $0x8] sm:$0xff]  ;;  %487 = vst [vmem:[#allocation2 + $0x90] sm:$0x1] %v486_v21  ;;  %v354_v22 = vld [vmem:[%s1276_s8 + $0x10] sm:$0xff]  ;;  %vm323_vm5 = vcmask 1039360  }
  0x18   : > { %427 = vrot.lane.b32.xlu1 %v418_v11, %s1212_s27  ;;  %v355_v23 = vld [vmem:[%s1276_s8 + $0x18] sm:$0xff]  ;;  %v289_v24 = vld [vmem:[%s1269_s30 + $0x10] sm:$0xf]  ;;  %v352_v26 = vld [vmem:[%s1276_s8] sm:$0xff]  ;;  %vm469_vm6 = vcmask 965632  }
  0x19   : > { %396 = vrot.lane.b32.xlu0 %v386_v16, %s1212_s27  ;;  %v290_v25 = vld [vmem:[%s1269_s30 + $0x18] sm:$0xf]  ;;  %293 = vst [vmem:[#allocation2 + $0x8] sm:$0xf] %v289_v24  ;;  %v353_v27 = vld [vmem:[%s1276_s8 + $0x8] sm:$0xff] }
  0x1a   : > { %294 = vst [vmem:[#allocation2 + $0xc] sm:$0xf] %v290_v25  ;;  %v287_v31 = vld [vmem:[%s1269_s30] sm:$0xf]  ;;  %v288_v32 = vld [vmem:[%s1269_s30 + $0x8] sm:$0xf] }
  0x1b   : > { %291 = vst [vmem:[#allocation2] sm:$0xf] %v287_v31  ;;  %292 = vst [vmem:[#allocation2 + $0x4] sm:$0xf] %v288_v32  ;;  %v1178_v34 = vld [vmem:[#allocation2 + $0x18] sm:$0xff]  }
  0x1c   : > { %398 = vrot.lane.b32.xlu1 %v387_v17, %s1212_s27  ;;  %v1172_v2 = vld [vmem:[#allocation2 + $0x30] sm:$0xff]  }
  0x1d   : > { %315 = vrot.lane.b32.xlu0 %v386_v16, %s1213_s9  ;;  %v1170_v57 = vld [vmem:[#allocation2 + $0x38] sm:$0xff]  }
  0x1e   : > { %v1181_v28 = vld [vmem:[#allocation2 + $0x90] ss:$0 sps:$4 sm:$0x11]  }
  0x1f   : > { %v729_v33 = vand.u32 %v1181_v28, %v727_v30 }
  0x20   : > { %317 = vrot.lane.b32.xlu1 %v387_v17, %s1213_s9 }
  0x21   : > { %392 = vrot.lane.b32.xlu0 %v384_v18, %s1212_s27  ;;  %1143 = vmatprep.subr.bf16.mxu1 %v729_v33 }
  0x22   : > { %1144 = vmatpush3.bf16.msra.mxu1 %v729_v33 }
  0x24   : > { %394 = vrot.lane.b32.xlu1 %v385_v19, %s1212_s27 }
  0x25   : > { %311 = vrot.lane.b32.xlu0 %v384_v18, %s1213_s9 }
  0x28   : > { %313 = vrot.lane.b32.xlu1 %v385_v19, %s1213_s9 }
  0x29   : > { %364 = vrot.lane.b32.xlu0 %v354_v22, %s1213_s9 }
  0x2c   : > { %366 = vrot.lane.b32.xlu1 %v355_v23, %s1213_s9 }
  0x2d   : > { %360 = vrot.lane.b32.xlu0 %v352_v26, %s1213_s9 }
  0x30   : > { %362 = vrot.lane.b32.xlu1 %v353_v27, %s1213_s9 }
  0x31   : > { %461 = vrot.lane.b32.xlu0 %v386_v16, %s1215_s10 }
  0x34   : > { %463 = vrot.lane.b32.xlu1 %v387_v17, %s1215_s10 }
  0x35   : > { %457 = vrot.lane.b32.xlu0 %v384_v18, %s1215_s10 }
  0x38   : > { %459 = vrot.lane.b32.xlu1 %v385_v19, %s1215_s10 }
  0x83   : > { %v430_v36 = vpop.permute.xlu0 %429 }
  0x84   : > { %v435_v37 = vrot.slane %v430_v36, 4 }
  0x86   : > { %v426_v38 = vpop.permute.xlu1 %425  ;;  %v439_v39 = vsel %vm404_vm4, %v430_v36, %v435_v37 }
  0x87   : > { %v433_v40 = vrot.slane %v426_v38, 4  ;;  %447 = vst [vmem:[#allocation2 + $0x78] sm:$0xf] %v439_v39  ;;  %v432_v41 = vpop.permute.xlu0 %431 }
  0x88   : > { %v436_v43 = vrot.slane %v432_v41, 4 }
  0x89   : > { %v437_v42 = vsel %vm404_vm4, %v426_v38, %v433_v40 }
  0x8a   : > { %445 = vst [vmem:[#allocation2 + $0x70] sm:$0xf] %v437_v42  ;;  %v428_v44 = vpop.permute.xlu1 %427  ;;  %v440_v45 = vsel %vm404_vm4, %v432_v41, %v436_v43  ;;  %v1180_v41 = vld [vmem:[#allocation2 + $0x10] sm:$0xff]  }
  0x8b   : > { %v434_v46 = vrot.slane %v428_v44, 4  ;;  %448 = vst [vmem:[#allocation2 + $0x7c] sm:$0xf] %v440_v45  ;;  %v397_v47 = vpop.permute.xlu0 %396  ;;  %v1183_v45 = vld [vmem:[#allocation2 + $0x8] sm:$0xff]  }
  0x8c   : > { %v402_v49 = vrot.slane %v397_v47, 4 }
  0x8d   : > { %v438_v48 = vsel %vm404_vm4, %v428_v44, %v434_v46  ;;  %v1182_v44 = vld [vmem:[#allocation2 + $0x48] sm:$0xff]  }
  0x8e   : > { %446 = vst [vmem:[#allocation2 + $0x74] sm:$0xf] %v438_v48  ;;  %v399_v50 = vpop.permute.xlu1 %398  ;;  %v407_v52 = vsel %vm404_vm4, %v397_v47, %v402_v49  ;;  %v1185_v47 = vld [vmem:[#allocation2 + $0x40] sm:$0xff]  }
  0x8f   : > { %v403_v51 = vrot.slane %v399_v50, 4  ;;  %415 = vst [vmem:[#allocation2 + $0x68] sm:$0xf] %v407_v52  ;;  %v316_v53 = vpop.permute.xlu0 %315  ;;  %v1186_v48 = vld [vmem:[#allocation2] sm:$0xff]  }
  0x90   : > { %v321_v55 = vrot.slane %v316_v53, 4  ;;  %v1193_v52 = vld [vmem:[%s1383_s0 + $0x1c] ss:$12 sps:$4 sm:$0xff]  }
  0x91   : > { %v408_v54 = vsel %vm404_vm4, %v399_v50, %v403_v51  ;;  %v1188_v50 = vld [vmem:[%s1383_s0] ss:$12 sps:$4 sm:$0xff]  }
  0x92   : > { %416 = vst [vmem:[#allocation2 + $0x6c] sm:$0xf] %v408_v54  ;;  %v318_v56 = vpop.permute.xlu1 %317  ;;  %v326_v59 = vsel %vm323_vm5, %v316_v53, %v321_v55  ;;  %v1169_v60 = vld [vmem:[#allocation2 + $0x78] sm:$0xff]   ;;  %v1192_v51 = vld [vmem:[%s1383_s0 + $0x20] ss:$12 sps:$4 sm:$0xff]  }
  0x93   : > { %v322_v58 = vrot.slane %v318_v56, 4  ;;  %334 = vst [vmem:[#allocation2 + $0x28] sm:$0xf] %v326_v59  ;;  %v393_v61 = vpop.permute.xlu0 %392  ;;  %1096 = vmatprep.subr.bf16.mxu0 %v1169_v60  ;;  %v1199_v53 = vld [vmem:[%s1383_s0 + $0x38] ss:$12 sps:$4 sm:$0xff]  }
  0x94   : > { %v400_v63 = vrot.slane %v393_v61, 4  ;;  %1097 = vmatpush3.bf16.msra.mxu0 %v1170_v57  ;;  %v1195_v54 = vld [vmem:[%s1383_s0 + $0x18] ss:$12 sps:$4 sm:$0xff]   ;;  %v1200_v55 = vld [vmem:[%s1383_s0 + $0x50] ss:$12 sps:$4 sm:$0xff]  }
  0x95   : > { %v327_v62 = vsel %vm323_vm5, %v318_v56, %v322_v58  ;;  %v1171_v0 = vld [vmem:[#allocation2 + $0x70] sm:$0xff]   ;;  %v1196_v56 = vld [vmem:[%s1383_s0 + $0x34] ss:$12 sps:$4 sm:$0xff]   ;;  %v1198_v57 = vld [vmem:[%s1383_s0 + $0x30] ss:$12 sps:$4 sm:$0xff]  }
  0x96   : > { %335 = vst [vmem:[#allocation2 + $0x2c] sm:$0xf] %v327_v62  ;;  %v395_v1 = vpop.permute.xlu1 %394  ;;  %v405_v4 = vsel %vm404_vm4, %v393_v61, %v400_v63  ;;  %1098 = vmatprep.subr.bf16.mxu0 %v1171_v0  ;;  %v1201_v58 = vld [vmem:[%s1383_s0 + $0x4c] ss:$12 sps:$4 sm:$0xff]   ;;  %v1203_v59 = vld [vmem:[%s1383_s0 + $0x48] ss:$12 sps:$4 sm:$0xff]  }
  0x97   : > { %v401_v3 = vrot.slane %v395_v1, 4  ;;  %413 = vst [vmem:[#allocation2 + $0x60] sm:$0xf] %v405_v4  ;;  %v312_v5 = vpop.permute.xlu0 %311 }
  0x98   : > { %v319_v7 = vrot.slane %v312_v5, 4  ;;  %1099 = vmatpush3.bf16.msra.mxu0 %v1172_v2 }
  0x99   : > { %v406_v6 = vsel %vm404_vm4, %v395_v1, %v401_v3  ;;  %v1173_v8 = vld [vmem:[#allocation2 + $0x68] sm:$0xff]  }
  0x9a   : > { %414 = vst [vmem:[#allocation2 + $0x64] sm:$0xf] %v406_v6  ;;  %v314_v9 = vpop.permute.xlu1 %313  ;;  %v324_v11 = vsel %vm323_vm5, %v312_v5, %v319_v7  ;;  %1100 = vmatprep.subr.bf16.mxu0 %v1173_v8 }
  0x9b   : > { %v320_v10 = vrot.slane %v314_v9, 4  ;;  %332 = vst [vmem:[#allocation2 + $0x20] sm:$0xf] %v324_v11  ;;  %v365_v12 = vpop.permute.xlu0 %364 }
  0x9c   : > { %v370_v14 = vrot.slane %v365_v12, 4 }
  0x9d   : > { %v325_v13 = vsel %vm323_vm5, %v314_v9, %v320_v10  ;;  %v1174_v15 = vld [vmem:[#allocation2 + $0x28] sm:$0xff]  }
  0x9e   : > { %333 = vst [vmem:[#allocation2 + $0x24] sm:$0xf] %v325_v13  ;;  %v367_v16 = vpop.permute.xlu1 %366  ;;  %v374_v18 = vsel %vm323_vm5, %v365_v12, %v370_v14  ;;  %1101 = vmatpush3.bf16.msra.mxu0 %v1174_v15 }
  0x9f   : > { %v371_v17 = vrot.slane %v367_v16, 4  ;;  %382 = vst [vmem:[#allocation2 + $0x58] sm:$0xf] %v374_v18  ;;  %v361_v19 = vpop.permute.xlu0 %360 }
  0xa0   : > { %v368_v21 = vrot.slane %v361_v19, 4 }
  0xa1   : > { %v375_v20 = vsel %vm323_vm5, %v367_v16, %v371_v17  ;;  %v1175_v22 = vld [vmem:[#allocation2 + $0x60] sm:$0xff]  }
  0xa2   : > { %383 = vst [vmem:[#allocation2 + $0x5c] sm:$0xf] %v375_v20  ;;  %v363_v23 = vpop.permute.xlu1 %362  ;;  %v372_v25 = vsel %vm323_vm5, %v361_v19, %v368_v21  ;;  %1102 = vmatprep.subr.bf16.mxu0 %v1175_v22 }
  0xa3   : > { %v369_v24 = vrot.slane %v363_v23, 4  ;;  %380 = vst [vmem:[#allocation2 + $0x50] sm:$0xf] %v372_v25  ;;  %v462_v26 = vpop.permute.xlu0 %461 }
  0xa4   : > { %v467_v29 = vrot.slane %v462_v26, 4 }
  0xa5   : > { %v373_v27 = vsel %vm323_vm5, %v363_v23, %v369_v24  ;;  %v1176_v28 = vld [vmem:[#allocation2 + $0x20] sm:$0xff]  }
  0xa6   : > { %381 = vst [vmem:[#allocation2 + $0x54] sm:$0xf] %v373_v27  ;;  %v464_v30 = vpop.permute.xlu1 %463  ;;  %1103 = vmatpush3.bf16.msra.mxu0 %v1176_v28  ;;  %v472_v32 = vsel %vm469_vm6, %v462_v26, %v467_v29 }
  0xa7   : > { %v468_v31 = vrot.slane %v464_v30, 4  ;;  %480 = vst [vmem:[#allocation2 + $0x88] sm:$0xf] %v472_v32  ;;  %v458_v33 = vpop.permute.xlu0 %457 }
  0xa8   : > { %v465_v37 = vrot.slane %v458_v33, 4 }
  0xa9   : > { %v473_v35 = vsel %vm469_vm6, %v464_v30, %v468_v31  ;;  %v1177_v36 = vld [vmem:[#allocation2 + $0x58] sm:$0xff]  }
  0xaa   : > { %481 = vst [vmem:[#allocation2 + $0x8c] sm:$0xf] %v473_v35  ;;  %v460_v38 = vpop.permute.xlu1 %459  ;;  %1104 = vmatprep.subr.bf16.mxu0 %v1177_v36  ;;  %v470_v40 = vsel %vm469_vm6, %v458_v33, %v465_v37 }
  0xab   : > { %v466_v39 = vrot.slane %v460_v38, 4  ;;  %478 = vst [vmem:[#allocation2 + $0x80] sm:$0xf] %v470_v40  ;;  %1105 = vmatpush3.bf16.msra.mxu0 %v1178_v34 }
  0xad   : > { %v471_v42 = vsel %vm469_vm6, %v460_v38, %v466_v39  ;;  %v1179_v43 = vld [vmem:[#allocation2 + $0x50] sm:$0xff]  }
  0xae   : > { %479 = vst [vmem:[#allocation2 + $0x84] sm:$0xf] %v471_v42  ;;  %1106 = vmatprep.subr.bf16.mxu0 %v1179_v43 }
  0xaf   : > { %1107 = vmatpush3.bf16.msra.mxu0 %v1180_v41 }
  0xb0   : > { %1108 = vmatprep.subr.bf16.mxu0 %v1182_v44 }
  0xb1   : > { %v1184_v46 = vld [vmem:[#allocation2 + $0x88] sm:$0xff]  }
  0xb2   : > { %1145 = vmatprep.subr.bf16.mxu1 %v1184_v46 }
  0xb3   : > { %1109 = vmatpush3.bf16.msra.mxu0 %v1183_v45  ;;  %1146 = vmatpush3.bf16.msra.mxu1 %v1184_v46 }
  0xb4   : > { %1110 = vmatprep.subr.bf16.mxu0 %v1185_v47 }
  0xb5   : > { %v1187_v49 = vld [vmem:[#allocation2 + $0x80] sm:$0xff]  }
  0xb6   : > { %1147 = vmatprep.subr.bf16.mxu1 %v1187_v49 }
  0xb7   : > { %1111 = vmatpush3.bf16.msra.mxu0 %v1186_v48  ;;  %1148 = vmatpush3.bf16.msra.mxu1 %v1187_v49 }
  0xba   : > { %764 = vmatmul.mubr.bf16.vlgmr.msra.gmra.mxu0 %v1188_v50  ;;  %1150 = vmatmul.mubr.msk.bf16.vlgmr.msra.gmra.mxu1 %vm712_vm3, %v1192_v51 }
  0xbb   : > { %771 = vmatprep.mubr.bf16.mxu0 %v1193_v52  ;;  %1153 = vmatprep.mubr.msk.bf16.mxu1 %vm712_vm3, %v1199_v53 }
  0xc2   : > { %772 = vmatmul.mubr.bf16.gmra.mxu0 %v1195_v54  ;;  %1154 = vmatmul.mubr.msk.bf16.gmra.mxu1 %vm712_vm3, %v1200_v55 }
  0xc3   : > { %779 = vmatprep.mubr.bf16.mxu0 %v1196_v56 }
  0xca   : > { %780 = vmatmul.mubr.bf16.gmra.mxu0 %v1198_v57 }
  0xcb   : > { %787 = vmatprep.mubr.bf16.mxu0 %v1201_v58 }
  0xd2   : > { %788 = vmatmul.mubr.bf16.gmra.mxu0 %v1203_v59 }
 0x17a   : > { %v1112_v60 = vpop.f32.mrf.mxu0  ;;  %v1151_v61 = vpop.f32.mrf.mxu1 }
 0x17c   : > { %v1113_v62 = vpop.f32.mrf.mxu0  ;;  %v830_v63 = vpop.f32.mrf.mxu1 }
 0x17d   : > { %v1114_v0 = vadd.f32 %v1113_v62, %v1112_v60 }
 0x17e   : > { %v1115_v1 = vpop.f32.mrf.mxu0  ;;  %v1152_v2 = vpop.f32.mrf.mxu1 }
 0x17f   : > { %v831_v5 = vadd.f32 %v1114_v0, %v830_v63 }
 0x180   : > { %v1116_v3 = vpop.f32.mrf.mxu0  ;;  %v833_v4 = vpop.f32.mrf.mxu1 }
 0x181   : > { %v1117_v6 = vadd.f32 %v1116_v3, %v1115_v1  ;;  %v861_v11 = vmax.f32 %v831_v5, 0.0 }
 0x182   : > { %v1118_v7 = vpop.f32.mrf.mxu0  ;;  %v1155_v10 = vpop.f32.mrf.mxu1 }
 0x183   : > { %v834_v8 = vadd.f32 %v1117_v6, %v833_v4 }
 0x184   : > { %v1119_v9 = vpop.f32.mrf.mxu0  ;;  %v846_v17 = vpop.f32.mrf.mxu1 }
 0x185   : > { %v862_v12 = vmax.f32 %v834_v8, 0.0  ;;  %v1120_v13 = vadd.f32 %v1119_v9, %v1118_v7 }
 0x186   : > { %v1121_v14 = vpop.f32.mrf.mxu0  ;;  %v1156_v23 = vpop.f32.mrf.mxu1 }
 0x187   : > { %v1076_v15 = vpack.c.bf16 %v862_v12, %v861_v11  ;;  %v839_v18 = vadd.f32 %v1151_v61, %v1120_v13 }
 0x188   : > { %v1122_v16 = vpop.f32.mrf.mxu0  ;;  %v849_v30 = vpop.f32.mrf.mxu1 }
 0x189   : > { %1077 = vst [vmem:[%s1374_s14] sm:$0xff] %v1076_v15   ;;  %v1123_v19 = vadd.f32 %v1122_v16, %v1121_v14  ;;  %v863_v24 = vmax.f32 %v839_v18, 0.0 }
 0x18a   : > { %v1124_v20 = vpop.f32.mrf.mxu0 }
 0x18b   : > { %v842_v21 = vadd.f32 %v1152_v2, %v1123_v19 }
 0x18c   : > { %v1125_v22 = vpop.f32.mrf.mxu0 }
 0x18d   : > { %v864_v25 = vmax.f32 %v842_v21, 0.0  ;;  %v1126_v26 = vadd.f32 %v1125_v22, %v1124_v20 }
 0x18e   : > { %v1127_v27 = vpop.f32.mrf.mxu0 }
 0x18f   : > { %v1081_v28 = vpack.c.bf16 %v864_v25, %v863_v24  ;;  %v847_v31 = vadd.f32 %v1126_v26, %v846_v17 }
 0x190   : > { %v1128_v29 = vpop.f32.mrf.mxu0 }
 0x191   : > { %1093 = vst [vmem:[%s1374_s14 + $0x8] sm:$0xff] %v1081_v28   ;;  %v1129_v32 = vadd.f32 %v1128_v29, %v1127_v27  ;;  %v865_v36 = vmax.f32 %v847_v31, 0.0 }
 0x192   : > { %v1130_v33 = vpop.f32.mrf.mxu0 }
 0x193   : > { %v850_v34 = vadd.f32 %v1129_v32, %v849_v30 }
 0x194   : > { %v1131_v35 = vpop.f32.mrf.mxu0 }
 0x195   : > { %v866_v37 = vmax.f32 %v850_v34, 0.0  ;;  %v1132_v38 = vadd.f32 %v1131_v35, %v1130_v33 }
 0x196   : > { %v1133_v39 = vpop.f32.mrf.mxu0 }
 0x197   : > { %v1086_v40 = vpack.c.bf16 %v866_v37, %v865_v36  ;;  %v855_v42 = vadd.f32 %v1155_v10, %v1132_v38 }
 0x198   : > { %v1134_v41 = vpop.f32.mrf.mxu0 }
 0x199   : > { %1094 = vst [vmem:[%s1374_s14 + $0x10] sm:$0xff] %v1086_v40   ;;  %v1135_v43 = vadd.f32 %v1134_v41, %v1133_v39  ;;  %v867_v45 = vmax.f32 %v855_v42, 0.0 }
 0x19b   : > { %v858_v44 = vadd.f32 %v1156_v23, %v1135_v43 }
 0x19d   : > { %v868_v46 = vmax.f32 %v858_v44, 0.0 }
 0x19f   : > { %v1091_v47 = vpack.c.bf16 %v868_v46, %v867_v45 }
 0x1a1   : > { %1095 = vst [vmem:[%s1374_s14 + $0x18] sm:$0xff] %v1091_v47  }
 0x1a2 PF: > { %s15_s18 = sadd.s32 1, %s1210_s18  }
 0x1a3   : > { %p12_p4 = scmp.ge.s32.totalorder %s15_s18, 4  }
 0x1a5   :  { %14 = sbr.rel (!%p12_p4) target bundleno = 1 (0x1), region = 79 }

// kernel: hrtlab_forward.9
= control target key start
LH: loop header
LB: loop body
LE: loop exit
PB: predicated region body
PF: predicated region fallthrough
CT: control target
= control target key end

     0   :  { %8 = vsyncpa [#allocation3], 0  ;;  %s2648_s0 = inlined_call_operand.vmem [shape: bf16[64,8], index: 0, kind: input, shape index: {}]   ;;  %s2649_s1 = inlined_call_operand.vmem [shape: bf16[8,64], index: 1, kind: input, shape index: {}]   ;;  %s2650_s2 = inlined_call_operand.vmem [shape: bf16[2,152,8], index: 2, kind: input, shape index: {}]   ;;  %s2651_s3 = inlined_call_operand.hbm [shape: f32[2,19,64,64], index: 3, kind: output, shape index: {}]  }
   0x1   :  { %10 = vsyncpa [#allocation3 + $0x1], 0  ;;  %s2220_s12 = smov 0   ;;  %s2222_s13 = smov 0  }
   0x2   :  { %s2224_s14 = smov 0   ;;  %s2226_s15 = smov 0  }
   0x3   :  { %s2228_s16 = smov 0   ;;  %s2230_s17 = smov 0  }
   0x4   :  { %s2232_s18 = smov 0   ;;  %s2234_s19 = smov 0  }
   0x5 LB: > { %s1692_s20 = sadd.s32 4294967295, %s2191_s19   ;;  %s1693_s21 = sadd.s32 4294967294, %s2191_s19   ;;  %s2191_s19 = sphi %s2234_s19, %s16_s19   ;;  %s2187_s18 = sphi %s2232_s18, %s2660_s18   ;;  %s2183_s17 = sphi %s2230_s17, %s2659_s17   ;;  %s2179_s16 = sphi %s2228_s16, %s2658_s16   ;;  %s2175_s15 = sphi %s2226_s15, %s2657_s15   ;;  %s2171_s14 = sphi %s2224_s14, %s2656_s14   ;;  %s2167_s13 = sphi %s2222_s13, %s2655_s13   ;;  %s2163_s12 = sphi %s2220_s12, %s2654_s12  }
   0x6   : > { %s25_s22 = sadd.s32 1, %s2183_s17  ;;  %s28_s23 = sadd.s32 1, %s2187_s18 }
   0x7   : > { %p26_p0 = scmp.ge.s32.totalorder %s25_s22, 2  ;;  %p120_p1 = scmp.ne.s32.totalorder %s2171_s14, %s2167_s13 }
   0x8   : > { %p121_p2 = scmp.eq.s32.totalorder %s1692_s20, 3  ;;  %p126_p5 = scmp.ne.s32.totalorder %s2167_s13, %s2163_s12 }
   0x9   : > { %s2662_s22 = smov (%p26_p0, %s25_s22), 0  ;;  %s2664_s23 = smov (!%p26_p0, %s28_s23), %s2187_s18 }
   0xa   : > { %s106_s24 = ssub.s32 %s2183_s17, %s2662_s22  ;;  %p2271_p3 = por %p121_p2, %p120_p1 }
   0xb   : > { %p30_p4 = scmp.ge.s32.totalorder %s2664_s23, 2  ;;  %p127_p6 = scmp.eq.s32.totalorder %s1693_s21, 3 }
   0xc   : > { %p1696_p7 = scmp.ge.s32.totalorder %s2191_s19, 1  ;;  %p165_p9 = scmp.lt.s32.totalorder %s2191_s19, 5 }
   0xd   : > { %s2666_s23 = smov (%p30_p4, %s2664_s23), 0  ;;  %p2280_p8 = por %p127_p6, %p126_p5 }
   0xe   : > { %s105_s27 = ssub.s32 %s2187_s18, %s2666_s23  ;;  %s110_s28 = sadd.s32 1, %s2171_s14 }
   0xf   : > { %s107_s29 = sor.u32 %s106_s24, %s105_s27  ;;  %p166_p10 = pnand %p1696_p7, %p165_p9 }
  0x10   : > { %p108_p11 = scmp.eq.s32.totalorder %s107_s29, 0  ;;  %p200_p12 = scmp.lt.s32.totalorder (!%p166_p10), %s2179_s16, 1 }
  0x11   : > { %169 = sbr.rel (%p166_p10) target bundleno = 528 (0x210), region = 32  ;;  %s2312_s11 = sshll.u32 (!%p166_p10), %s2175_s15, 2 }
  0x12   : > { %s2289_s30 = scalar_select %p108_p11, %s2171_s14, %s110_s28  }
  0x13   : > { %p195_p13 = scmp.lt.s32.totalorder (!%p166_p10), %s2312_s11, 7  ;;  %s191_s15 = sand.u32 (!%p166_p10), 1, %s2167_s13  }
  0x14   : > { %s2026_s29 = smul.u32 (!%p166_p10), 608, %s191_s15  ;;  %s1566_s5 = scalar_lea.sflag (!%p166_p10), [#allocation3], %s191_s15 }
  0x16   : > { %v226_v0 = vld [vmem:[%s2649_s1] sm:$0xf]  ;;  %vm306_vm0 = vcmask 1043456   ;;  %s201_s6 = scalar_select %p200_p12, %s2179_s16, 1  ;;  %vm275_vm1 = vcmask 64512   ;;  %vm1488_vm2 = vcmask 523264  }
  0x17   : > { %2006 = vmatprep.subr.msk.bf16.mxu0 %vm306_vm0, %v226_v0  ;;  %v308_v1 = vsel %vm306_vm0, %v226_v0, 0  ;;  %s196_s20 = scalar_select %p195_p13, %s2312_s11, 7 }
  0x18   : > { %1871 = vmatpush3.bf16.msra.mxu0 %v308_v1  ;;  %s2027_s7 = smul.u32 76, %s201_s6  ;;  %s2444_s4 = scalar_lea.vmem [#allocation2], %s2026_s29 }
  0x19   : > { %s1698_s21 = sshll.u32 %s196_s20, 2 }
  0x1a   : > { %s204_s10 = scalar_lea.vmem %s2650_s2, %s2027_s7  ;;  %s198_s28 = scalar_lea.vmem %s2648_s0, %s1698_s21 }
  0x1b   : > { %v2113_v2 = vld [vmem:[%s204_s10] sm:$0xff]   ;;  %v2114_v3 = vld [vmem:[%s204_s10 + $0x8] sm:$0xff]   ;;  %v2115_v4 = vld [vmem:[%s204_s10 + $0x10] sm:$0xff]  }
  0x1c   : > { %1872 = vmatprep.mubr.msk.bf16.mxu0 %vm275_vm1, %v2113_v2  ;;  %v2116_v5 = vld [vmem:[%s204_s10 + $0x18] sm:$0xff]   ;;  %v2117_v6 = vld [vmem:[%s204_s10 + $0x20] sm:$0xff]   ;;  %v2118_v7 = vld [vmem:[%s204_s10 + $0x28] sm:$0xff]  }
  0x1d   : > { %1873 = vmatmul.mubr.msk.bf16.vlgmr.msra.gmra.mxu0 %vm275_vm1, %v2114_v3  ;;  %v2119_v8 = vld [vmem:[%s204_s10 + $0x30] sm:$0xff]   ;;  %v2120_v9 = vld [vmem:[%s204_s10 + $0x38] sm:$0xff]   ;;  %v2121_v10 = vld [vmem:[%s204_s10 + $0x40] sm:$0xff]  }
  0x1e   : > { %1876 = vmatprep.mubr.msk.bf16.mxu0 %vm275_vm1, %v2115_v4  ;;  %v2122_v11 = vld [vmem:[%s204_s10 + $0x48] ss:$0 sps:$4 sm:$0xff]   ;;  %v2319_v12 = vld [vmem:[%s198_s28] sm:$0xff]  }
  0x1f   : > { %1894 = vmatprep.mubr.msk.bf16.mxu1 %vm275_vm1, %v2319_v12  ;;  %v2327_v18 = vld [vmem:[%s198_s28 + $0x8] sm:$0xff]  }
  0x25   : > { %1877 = vmatmul.mubr.msk.bf16.gmra.mxu0 %vm275_vm1, %v2116_v5 }
  0x26   : > { %1880 = vmatprep.mubr.msk.bf16.mxu0 %vm275_vm1, %v2117_v6 }
  0x2d   : > { %1881 = vmatmul.mubr.msk.bf16.gmra.mxu0 %vm275_vm1, %v2118_v7 }
  0x2e   : > { %1884 = vmatprep.mubr.msk.bf16.mxu0 %vm275_vm1, %v2119_v8 }
  0x35   : > { %1885 = vmatmul.mubr.msk.bf16.gmra.mxu0 %vm275_vm1, %v2120_v9 }
  0x36   : > { %1888 = vmatprep.mubr.msk.bf16.mxu0 %vm275_vm1, %v2121_v10 }
  0x3d   : > { %1889 = vmatmul.mubr.msk.bf16.gmra.mxu0 %vm275_vm1, %v2122_v11 }
  0x3e   : > { %1924 = vmatprep.mubr.msk.bf16.mxu0 %vm275_vm1, %v2319_v12 }
  0xdd   : > { %v1874_v13 = vpop.f32.mrf.mxu0 }
  0xde   : > { %v1785_v22 = vpack.c.bf16 %v1874_v13, %v1874_v13 }
  0xdf   : > { %v344_v14 = vpop.f32.mrf.mxu0 }
  0xe0   : > { %v1783_v15 = vpack.c.bf16 %v344_v14, %v344_v14  ;;  %v605_v30 = vsel %vm306_vm0, %v1785_v22, 0 }
  0xe1   : > { %v1875_v16 = vpop.f32.mrf.mxu0 }
  0xe2   : > { %2007 = vmatprep.subr.msk.bf16.mxu1 %vm306_vm0, %v1783_v15  ;;  %v501_v17 = vsel %vm306_vm0, %v1783_v15, 0  ;;  %v1786_v31 = vpack.c.bf16 %v1875_v16, %v1875_v16 }
  0xe3   : > { %v347_v19 = vpop.f32.mrf.mxu0  ;;  %1893 = vmatpush3.bf16.msra.mxu1 %v501_v17 }
  0xe4   : > { %v1784_v20 = vpack.c.bf16 %v347_v19, %v347_v19  ;;  %v657_v40 = vsel %vm306_vm0, %v1786_v31, 0 }
  0xe5   : > { %v1878_v21 = vpop.f32.mrf.mxu0 }
  0xe6   : > { %v553_v23 = vsel %vm306_vm0, %v1784_v20, 0  ;;  %1895 = vmatmul.mubr.msk.bf16.vlgmr.msra.gmra.mxu1 %vm275_vm1, %v2327_v18  ;;  %2008 = vmatprep.subr.msk.bf16.mxu1 %vm306_vm0, %v1784_v20  ;;  %v1789_v46 = vpack.c.bf16 %v1878_v21, %v1878_v21 }
  0xe7   : > { %v360_v24 = vpop.f32.mrf.mxu0  ;;  %1899 = vmatpush3.bf16.msra.mxu1 %v553_v23  ;;  %1900 = vmatprep.mubr.msk.bf16.mxu1 %vm275_vm1, %v2319_v12 }
  0xe8   : > { %2009 = vmatprep.subr.msk.bf16.mxu1 %vm306_vm0, %v1785_v22  ;;  %v1787_v37 = vpack.c.bf16 %v360_v24, %v360_v24  ;;  %v813_v54 = vsel %vm306_vm0, %v1789_v46, 0 }
  0xe9   : > { %v1879_v25 = vpop.f32.mrf.mxu0 }
  0xea   : > { %v1790_v27 = vpack.c.bf16 %v1879_v25, %v1879_v25  ;;  %v709_v47 = vsel %vm306_vm0, %v1787_v37, 0 }
  0xeb   : > { %v363_v26 = vpop.f32.mrf.mxu0 }
  0xec   : > { %v1788_v28 = vpack.c.bf16 %v363_v26, %v363_v26  ;;  %v865_v34 = vsel %vm306_vm0, %v1790_v27, 0 }
  0xed   : > { %v1882_v29 = vpop.f32.mrf.mxu0 }
  0xee   : > { %v761_v32 = vsel %vm306_vm0, %v1788_v28, 0  ;;  %1901 = vmatmul.mubr.msk.bf16.vlgmr.msra.gmra.mxu1 %vm275_vm1, %v2327_v18  ;;  %2012 = vmatprep.subr.msk.bf16.mxu0 %vm306_vm0, %v1788_v28  ;;  %v1793_v57 = vpack.c.bf16 %v1882_v29, %v1882_v29 }
  0xef   : > { %1905 = vmatpush3.bf16.msra.mxu1 %v605_v30  ;;  %1923 = vmatpush3.bf16.msra.mxu0 %v761_v32  ;;  %v376_v33 = vpop.f32.mrf.mxu0 }
  0xf0   : > { %2010 = vmatprep.subr.msk.bf16.mxu1 %vm306_vm0, %v1786_v31  ;;  %2014 = vmatprep.subr.msk.bf16.mxu0 %vm306_vm0, %v1790_v27  ;;  %v1791_v53 = vpack.c.bf16 %v376_v33, %v376_v33  ;;  %v1021_v63 = vsel %vm306_vm0, %v1793_v57, 0 }
  0xf1   : > { %1906 = vmatprep.mubr.msk.bf16.mxu1 %vm275_vm1, %v2319_v12  ;;  %v1883_v35 = vpop.f32.mrf.mxu0 }
  0xf2   : > { %1925 = vmatmul.mubr.msk.bf16.vlgmr.msra.gmra.mxu0 %vm275_vm1, %v2327_v18  ;;  %v1794_v42 = vpack.c.bf16 %v1883_v35, %v1883_v35  ;;  %v917_v58 = vsel %vm306_vm0, %v1791_v53, 0 }
  0xf3   : > { %1935 = vmatpush3.bf16.msra.mxu0 %v865_v34  ;;  %1936 = vmatprep.mubr.msk.bf16.mxu0 %vm275_vm1, %v2319_v12  ;;  %v379_v36 = vpop.f32.mrf.mxu0 }
  0xf4   : > { %v1792_v38 = vpack.c.bf16 %v379_v36, %v379_v36  ;;  %v1073_v50 = vsel %vm306_vm0, %v1794_v42, 0 }
  0xf5   : > { %v2350_v39 = vpop.f32.mrf.mxu0 }
  0xf6   : > { %1907 = vmatmul.mubr.msk.bf16.vlgmr.msra.gmra.mxu1 %vm275_vm1, %v2327_v18  ;;  %2016 = vmatprep.subr.msk.bf16.mxu0 %vm306_vm0, %v1792_v38  ;;  %v969_v43 = vsel %vm306_vm0, %v1792_v38, 0  ;;  %v1797_v1 = vpack.c.bf16 %v2350_v39, %v2350_v39 }
  0xf7   : > { %1911 = vmatpush3.bf16.msra.mxu1 %v657_v40  ;;  %1912 = vmatprep.mubr.msk.bf16.mxu1 %vm275_vm1, %v2319_v12  ;;  %v392_v41 = vpop.f32.mrf.mxu0 }
  0xf8   : > { %2011 = vmatprep.subr.msk.bf16.mxu1 %vm306_vm0, %v1787_v37  ;;  %v1795_v62 = vpack.c.bf16 %v392_v41, %v392_v41  ;;  %v1229_v4 = vsel %vm306_vm0, %v1797_v1, 0 }
  0xf9   : > { %v1887_v44 = vpop.f32.mrf.mxu0 }
  0xfa   : > { %1937 = vmatmul.mubr.msk.bf16.vlgmr.msra.gmra.mxu0 %vm275_vm1, %v2327_v18  ;;  %v1798_v55 = vpack.c.bf16 %v1887_v44, %v1887_v44  ;;  %v1125_v2 = vsel %vm306_vm0, %v1795_v62, 0 }
  0xfb   : > { %1947 = vmatpush3.bf16.msra.mxu0 %v969_v43  ;;  %1948 = vmatprep.mubr.msk.bf16.mxu0 %vm275_vm1, %v2319_v12  ;;  %v395_v45 = vpop.f32.mrf.mxu0 }
  0xfc   : > { %2018 = vmatprep.subr.msk.bf16.mxu0 %vm306_vm0, %v1794_v42  ;;  %v1796_v51 = vpack.c.bf16 %v395_v45, %v395_v45  ;;  %v1281_v60 = vsel %vm306_vm0, %v1798_v55, 0 }
  0xfd   : > { %v1890_v48 = vpop.f32.mrf.mxu0 }
  0xfe   : > { %1913 = vmatmul.mubr.msk.bf16.vlgmr.msra.gmra.mxu1 %vm275_vm1, %v2327_v18  ;;  %v1177_v56 = vsel %vm306_vm0, %v1796_v51, 0  ;;  %v1801_v5 = vpack.c.bf16 %v1890_v48, %v1890_v48 }
  0xff   : > { %1917 = vmatpush3.bf16.msra.mxu1 %v709_v47  ;;  %1918 = vmatprep.mubr.msk.bf16.mxu1 %vm275_vm1, %v2319_v12  ;;  %v408_v49 = vpop.f32.mrf.mxu0 }
 0x100   : > { %2013 = vmatprep.subr.msk.bf16.mxu1 %vm306_vm0, %v1789_v46  ;;  %v1799_v3 = vpack.c.bf16 %v408_v49, %v408_v49  ;;  %v1437_v7 = vsel %vm306_vm0, %v1801_v5, 0 }
 0x101   : > { %v1891_v52 = vpop.f32.mrf.mxu0 }
 0x102   : > { %1949 = vmatmul.mubr.msk.bf16.vlgmr.msra.gmra.mxu0 %vm275_vm1, %v2327_v18  ;;  %v1333_v6 = vsel %vm306_vm0, %v1799_v3, 0 }
 0x103   : > { %1959 = vmatpush3.bf16.msra.mxu0 %v1073_v50  ;;  %1960 = vmatprep.mubr.msk.bf16.mxu0 %vm275_vm1, %v2319_v12  ;;  %v411_v59 = vpop.f32.mrf.mxu0 }
 0x104   : > { %2020 = vmatprep.subr.msk.bf16.mxu0 %vm306_vm0, %v1796_v51  ;;  %v1800_v61 = vpack.c.bf16 %v411_v59, %v411_v59 }
 0x106   : > { %1919 = vmatmul.mubr.msk.bf16.vlgmr.msra.gmra.mxu1 %vm275_vm1, %v2327_v18  ;;  %v1385_v0 = vsel %vm306_vm0, %v1800_v61, 0 }
 0x107   : > { %1929 = vmatpush3.bf16.msra.mxu1 %v813_v54  ;;  %1930 = vmatprep.mubr.msk.bf16.mxu1 %vm275_vm1, %v2319_v12 }
 0x108   : > { %2015 = vmatprep.subr.msk.bf16.mxu1 %vm306_vm0, %v1791_v53 }
 0x10a   : > { %1961 = vmatmul.mubr.msk.bf16.vlgmr.msra.gmra.mxu0 %vm275_vm1, %v2327_v18 }
 0x10b   : > { %1971 = vmatpush3.bf16.msra.mxu0 %v1177_v56  ;;  %1972 = vmatprep.mubr.msk.bf16.mxu0 %vm275_vm1, %v2319_v12 }
 0x10c   : > { %2022 = vmatprep.subr.msk.bf16.mxu0 %vm306_vm0, %v1798_v55 }
 0x10e   : > { %1931 = vmatmul.mubr.msk.bf16.vlgmr.msra.gmra.mxu1 %vm275_vm1, %v2327_v18 }
 0x10f   : > { %1941 = vmatpush3.bf16.msra.mxu1 %v917_v58  ;;  %1942 = vmatprep.mubr.msk.bf16.mxu1 %vm275_vm1, %v2319_v12 }
 0x110   : > { %2017 = vmatprep.subr.msk.bf16.mxu1 %vm306_vm0, %v1793_v57 }
 0x112   : > { %1973 = vmatmul.mubr.msk.bf16.vlgmr.msra.gmra.mxu0 %vm275_vm1, %v2327_v18 }
 0x113   : > { %1983 = vmatpush3.bf16.msra.mxu0 %v1281_v60  ;;  %1984 = vmatprep.mubr.msk.bf16.mxu0 %vm275_vm1, %v2319_v12 }
 0x114   : > { %2024 = vmatprep.subr.msk.bf16.mxu0 %vm306_vm0, %v1800_v61 }
 0x116   : > { %1943 = vmatmul.mubr.msk.bf16.vlgmr.msra.gmra.mxu1 %vm275_vm1, %v2327_v18 }
 0x117   : > { %1953 = vmatpush3.bf16.msra.mxu1 %v1021_v63  ;;  %1954 = vmatprep.mubr.msk.bf16.mxu1 %vm275_vm1, %v2319_v12 }
 0x118   : > { %2019 = vmatprep.subr.msk.bf16.mxu1 %vm306_vm0, %v1795_v62 }
 0x11a   : > { %1985 = vmatmul.mubr.msk.bf16.vlgmr.msra.gmra.mxu0 %vm275_vm1, %v2327_v18 }
 0x11b   : > { %1995 = vmatpush3.bf16.msra.mxu0 %v1385_v0  ;;  %1996 = vmatprep.mubr.msk.bf16.mxu0 %vm275_vm1, %v2319_v12 }
 0x11e   : > { %1955 = vmatmul.mubr.msk.bf16.vlgmr.msra.gmra.mxu1 %vm275_vm1, %v2327_v18 }
 0x11f   : > { %1965 = vmatpush3.bf16.msra.mxu1 %v1125_v2  ;;  %1966 = vmatprep.mubr.msk.bf16.mxu1 %vm275_vm1, %v2319_v12 }
 0x120   : > { %2021 = vmatprep.subr.msk.bf16.mxu1 %vm306_vm0, %v1797_v1 }
 0x122   : > { %1997 = vmatmul.mubr.msk.bf16.vlgmr.msra.gmra.mxu0 %vm275_vm1, %v2327_v18 }
 0x126   : > { %1967 = vmatmul.mubr.msk.bf16.vlgmr.msra.gmra.mxu1 %vm275_vm1, %v2327_v18 }
 0x127   : > { %1977 = vmatpush3.bf16.msra.mxu1 %v1229_v4  ;;  %1978 = vmatprep.mubr.msk.bf16.mxu1 %vm275_vm1, %v2319_v12 }
 0x128   : > { %2023 = vmatprep.subr.msk.bf16.mxu1 %vm306_vm0, %v1799_v3 }
 0x12e   : > { %1979 = vmatmul.mubr.msk.bf16.vlgmr.msra.gmra.mxu1 %vm275_vm1, %v2327_v18 }
 0x12f   : > { %1989 = vmatpush3.bf16.msra.mxu1 %v1333_v6  ;;  %1990 = vmatprep.mubr.msk.bf16.mxu1 %vm275_vm1, %v2319_v12 }
 0x130   : > { %2025 = vmatprep.subr.msk.bf16.mxu1 %vm306_vm0, %v1801_v5 }
 0x136   : > { %1991 = vmatmul.mubr.msk.bf16.vlgmr.msra.gmra.mxu1 %vm275_vm1, %v2327_v18 }
 0x137   : > { %2001 = vmatpush3.bf16.msra.mxu1 %v1437_v7  ;;  %2002 = vmatprep.mubr.msk.bf16.mxu1 %vm275_vm1, %v2319_v12 }
 0x13e   : > { %2003 = vmatmul.mubr.msk.bf16.vlgmr.msra.gmra.mxu1 %vm275_vm1, %v2327_v18 }
 0x1a6   : > { %v1896_v8 = vpop.f32.mrf.mxu1 }
 0x1a7   : > { %1491 = vst.msk [vmem:[%s2444_s4 + $0x10] sm:$0xff] %vm1488_vm2, %v1896_v8 }
 0x1a8   : > { %v537_v9 = vpop.f32.mrf.mxu1 }
 0x1a9   : > { %1489 = vst.msk [vmem:[%s2444_s4] sm:$0xff] %vm1488_vm2, %v537_v9 }
 0x1aa   : > { %v1897_v10 = vpop.f32.mrf.mxu1 }
 0x1ab   : > { %1492 = vst.msk [vmem:[%s2444_s4 + $0x18] sm:$0xff] %vm1488_vm2, %v1897_v10 }
 0x1ac   : > { %v540_v11 = vpop.f32.mrf.mxu1 }
 0x1ad   : > { %1490 = vst.msk [vmem:[%s2444_s4 + $0x8] sm:$0xff] %vm1488_vm2, %v540_v11 }
 0x1ae   : > { %v1902_v12 = vpop.f32.mrf.mxu1 }
 0x1af   : > { %1495 = vst.msk [vmem:[%s2444_s4 + $0x30] sm:$0xff] %vm1488_vm2, %v1902_v12 }
 0x1b0   : > { %v589_v13 = vpop.f32.mrf.mxu1 }
 0x1b1   : > { %1493 = vst.msk [vmem:[%s2444_s4 + $0x20] sm:$0xff] %vm1488_vm2, %v589_v13 }
 0x1b2   : > { %v1903_v14 = vpop.f32.mrf.mxu1  ;;  %v1926_v15 = vpop.f32.mrf.mxu0 }
 0x1b3   : > { %1496 = vst.msk [vmem:[%s2444_s4 + $0x38] sm:$0xff] %vm1488_vm2, %v1903_v14  ;;  %1511 = vst.msk [vmem:[%s2444_s4 + $0xb0] sm:$0xff] %vm1488_vm2, %v1926_v15 }
 0x1b4   : > { %v592_v16 = vpop.f32.mrf.mxu1  ;;  %v797_v17 = vpop.f32.mrf.mxu0 }
 0x1b5   : > { %1494 = vst.msk [vmem:[%s2444_s4 + $0x28] sm:$0xff] %vm1488_vm2, %v592_v16  ;;  %1509 = vst.msk [vmem:[%s2444_s4 + $0xa0] sm:$0xff] %vm1488_vm2, %v797_v17 }
 0x1b6   : > { %v1908_v18 = vpop.f32.mrf.mxu1  ;;  %v1927_v19 = vpop.f32.mrf.mxu0 }
 0x1b7   : > { %1499 = vst.msk [vmem:[%s2444_s4 + $0x50] sm:$0xff] %vm1488_vm2, %v1908_v18  ;;  %1512 = vst.msk [vmem:[%s2444_s4 + $0xb8] sm:$0xff] %vm1488_vm2, %v1927_v19 }
 0x1b8   : > { %v641_v20 = vpop.f32.mrf.mxu1  ;;  %v800_v21 = vpop.f32.mrf.mxu0 }
 0x1b9   : > { %1497 = vst.msk [vmem:[%s2444_s4 + $0x40] sm:$0xff] %vm1488_vm2, %v641_v20  ;;  %1510 = vst.msk [vmem:[%s2444_s4 + $0xa8] sm:$0xff] %vm1488_vm2, %v800_v21 }
 0x1ba   : > { %v1909_v22 = vpop.f32.mrf.mxu1  ;;  %v1938_v23 = vpop.f32.mrf.mxu0 }
 0x1bb   : > { %1500 = vst.msk [vmem:[%s2444_s4 + $0x58] sm:$0xff] %vm1488_vm2, %v1909_v22  ;;  %1519 = vst.msk [vmem:[%s2444_s4 + $0xf0] sm:$0xff] %vm1488_vm2, %v1938_v23 }
 0x1bc   : > { %v644_v24 = vpop.f32.mrf.mxu1  ;;  %v901_v25 = vpop.f32.mrf.mxu0 }
 0x1bd   : > { %1498 = vst.msk [vmem:[%s2444_s4 + $0x48] sm:$0xff] %vm1488_vm2, %v644_v24  ;;  %1517 = vst.msk [vmem:[%s2444_s4 + $0xe0] sm:$0xff] %vm1488_vm2, %v901_v25 }
 0x1be   : > { %v1914_v26 = vpop.f32.mrf.mxu1  ;;  %v1939_v27 = vpop.f32.mrf.mxu0 }
 0x1bf   : > { %1503 = vst.msk [vmem:[%s2444_s4 + $0x70] sm:$0xff] %vm1488_vm2, %v1914_v26  ;;  %1520 = vst.msk [vmem:[%s2444_s4 + $0xf8] sm:$0xff] %vm1488_vm2, %v1939_v27 }
 0x1c0   : > { %v693_v28 = vpop.f32.mrf.mxu1  ;;  %v904_v29 = vpop.f32.mrf.mxu0 }
 0x1c1   : > { %1501 = vst.msk [vmem:[%s2444_s4 + $0x60] sm:$0xff] %vm1488_vm2, %v693_v28  ;;  %1518 = vst.msk [vmem:[%s2444_s4 + $0xe8] sm:$0xff] %vm1488_vm2, %v904_v29 }
 0x1c2   : > { %v1915_v30 = vpop.f32.mrf.mxu1  ;;  %v1950_v31 = vpop.f32.mrf.mxu0 }
 0x1c3   : > { %1504 = vst.msk [vmem:[%s2444_s4 + $0x78] sm:$0xff] %vm1488_vm2, %v1915_v30  ;;  %1527 = vst.msk [vmem:[%s2444_s4 + $0x130] sm:$0xff] %vm1488_vm2, %v1950_v31 }
 0x1c4   : > { %v696_v32 = vpop.f32.mrf.mxu1  ;;  %v1005_v33 = vpop.f32.mrf.mxu0 }
 0x1c5   : > { %1502 = vst.msk [vmem:[%s2444_s4 + $0x68] sm:$0xff] %vm1488_vm2, %v696_v32  ;;  %1525 = vst.msk [vmem:[%s2444_s4 + $0x120] sm:$0xff] %vm1488_vm2, %v1005_v33 }
 0x1c6   : > { %v1920_v34 = vpop.f32.mrf.mxu1  ;;  %v1951_v35 = vpop.f32.mrf.mxu0 }
 0x1c7   : > { %1507 = vst.msk [vmem:[%s2444_s4 + $0x90] sm:$0xff] %vm1488_vm2, %v1920_v34  ;;  %1528 = vst.msk [vmem:[%s2444_s4 + $0x138] sm:$0xff] %vm1488_vm2, %v1951_v35 }
 0x1c8   : > { %v745_v36 = vpop.f32.mrf.mxu1  ;;  %v1008_v37 = vpop.f32.mrf.mxu0 }
 0x1c9   : > { %1505 = vst.msk [vmem:[%s2444_s4 + $0x80] sm:$0xff] %vm1488_vm2, %v745_v36  ;;  %1526 = vst.msk [vmem:[%s2444_s4 + $0x128] sm:$0xff] %vm1488_vm2, %v1008_v37 }
 0x1ca   : > { %v1921_v38 = vpop.f32.mrf.mxu1  ;;  %v1962_v39 = vpop.f32.mrf.mxu0 }
 0x1cb   : > { %1508 = vst.msk [vmem:[%s2444_s4 + $0x98] sm:$0xff] %vm1488_vm2, %v1921_v38  ;;  %1535 = vst.msk [vmem:[%s2444_s4 + $0x170] sm:$0xff] %vm1488_vm2, %v1962_v39 }
 0x1cc   : > { %v748_v40 = vpop.f32.mrf.mxu1  ;;  %v1109_v41 = vpop.f32.mrf.mxu0 }
 0x1cd   : > { %1506 = vst.msk [vmem:[%s2444_s4 + $0x88] sm:$0xff] %vm1488_vm2, %v748_v40  ;;  %1533 = vst.msk [vmem:[%s2444_s4 + $0x160] sm:$0xff] %vm1488_vm2, %v1109_v41 }
 0x1ce   : > { %v1932_v42 = vpop.f32.mrf.mxu1  ;;  %v1963_v43 = vpop.f32.mrf.mxu0 }
 0x1cf   : > { %1515 = vst.msk [vmem:[%s2444_s4 + $0xd0] sm:$0xff] %vm1488_vm2, %v1932_v42  ;;  %1536 = vst.msk [vmem:[%s2444_s4 + $0x178] sm:$0xff] %vm1488_vm2, %v1963_v43 }
 0x1d0   : > { %v849_v44 = vpop.f32.mrf.mxu1  ;;  %v1112_v45 = vpop.f32.mrf.mxu0 }
 0x1d1   : > { %1513 = vst.msk [vmem:[%s2444_s4 + $0xc0] sm:$0xff] %vm1488_vm2, %v849_v44  ;;  %1534 = vst.msk [vmem:[%s2444_s4 + $0x168] sm:$0xff] %vm1488_vm2, %v1112_v45 }
 0x1d2   : > { %v1933_v46 = vpop.f32.mrf.mxu1  ;;  %v1974_v47 = vpop.f32.mrf.mxu0 }
 0x1d3   : > { %1516 = vst.msk [vmem:[%s2444_s4 + $0xd8] sm:$0xff] %vm1488_vm2, %v1933_v46  ;;  %1543 = vst.msk [vmem:[%s2444_s4 + $0x1b0] sm:$0xff] %vm1488_vm2, %v1974_v47 }
 0x1d4   : > { %v852_v48 = vpop.f32.mrf.mxu1  ;;  %v1213_v49 = vpop.f32.mrf.mxu0 }
 0x1d5   : > { %1514 = vst.msk [vmem:[%s2444_s4 + $0xc8] sm:$0xff] %vm1488_vm2, %v852_v48  ;;  %1541 = vst.msk [vmem:[%s2444_s4 + $0x1a0] sm:$0xff] %vm1488_vm2, %v1213_v49 }
 0x1d6   : > { %v1944_v50 = vpop.f32.mrf.mxu1  ;;  %v1975_v51 = vpop.f32.mrf.mxu0 }
 0x1d7   : > { %1523 = vst.msk [vmem:[%s2444_s4 + $0x110] sm:$0xff] %vm1488_vm2, %v1944_v50  ;;  %1544 = vst.msk [vmem:[%s2444_s4 + $0x1b8] sm:$0xff] %vm1488_vm2, %v1975_v51 }
 0x1d8   : > { %v953_v52 = vpop.f32.mrf.mxu1  ;;  %v1216_v53 = vpop.f32.mrf.mxu0 }
 0x1d9   : > { %1521 = vst.msk [vmem:[%s2444_s4 + $0x100] sm:$0xff] %vm1488_vm2, %v953_v52  ;;  %1542 = vst.msk [vmem:[%s2444_s4 + $0x1a8] sm:$0xff] %vm1488_vm2, %v1216_v53 }
 0x1da   : > { %v1945_v54 = vpop.f32.mrf.mxu1  ;;  %v1986_v55 = vpop.f32.mrf.mxu0 }
 0x1db   : > { %1524 = vst.msk [vmem:[%s2444_s4 + $0x118] sm:$0xff] %vm1488_vm2, %v1945_v54  ;;  %1551 = vst.msk [vmem:[%s2444_s4 + $0x1f0] sm:$0xff] %vm1488_vm2, %v1986_v55 }
 0x1dc   : > { %v956_v56 = vpop.f32.mrf.mxu1  ;;  %v1317_v57 = vpop.f32.mrf.mxu0 }
 0x1dd   : > { %1522 = vst.msk [vmem:[%s2444_s4 + $0x108] sm:$0xff] %vm1488_vm2, %v956_v56  ;;  %1549 = vst.msk [vmem:[%s2444_s4 + $0x1e0] sm:$0xff] %vm1488_vm2, %v1317_v57 }
 0x1de   : > { %v1956_v58 = vpop.f32.mrf.mxu1  ;;  %v1987_v59 = vpop.f32.mrf.mxu0 }
 0x1df   : > { %1531 = vst.msk [vmem:[%s2444_s4 + $0x150] sm:$0xff] %vm1488_vm2, %v1956_v58  ;;  %1552 = vst.msk [vmem:[%s2444_s4 + $0x1f8] sm:$0xff] %vm1488_vm2, %v1987_v59 }
 0x1e0   : > { %v1057_v60 = vpop.f32.mrf.mxu1  ;;  %v1320_v61 = vpop.f32.mrf.mxu0 }
 0x1e1   : > { %1529 = vst.msk [vmem:[%s2444_s4 + $0x140] sm:$0xff] %vm1488_vm2, %v1057_v60  ;;  %1550 = vst.msk [vmem:[%s2444_s4 + $0x1e8] sm:$0xff] %vm1488_vm2, %v1320_v61 }
 0x1e2   : > { %v1957_v62 = vpop.f32.mrf.mxu1  ;;  %v1998_v63 = vpop.f32.mrf.mxu0 }
 0x1e3   : > { %1532 = vst.msk [vmem:[%s2444_s4 + $0x158] sm:$0xff] %vm1488_vm2, %v1957_v62  ;;  %1559 = vst.msk [vmem:[%s2444_s4 + $0x230] sm:$0xff] %vm1488_vm2, %v1998_v63 }
 0x1e4   : > { %v1060_v0 = vpop.f32.mrf.mxu1  ;;  %v1421_v1 = vpop.f32.mrf.mxu0 }
 0x1e5   : > { %1530 = vst.msk [vmem:[%s2444_s4 + $0x148] sm:$0xff] %vm1488_vm2, %v1060_v0  ;;  %1557 = vst.msk [vmem:[%s2444_s4 + $0x220] sm:$0xff] %vm1488_vm2, %v1421_v1 }
 0x1e6   : > { %v1968_v2 = vpop.f32.mrf.mxu1  ;;  %v1999_v3 = vpop.f32.mrf.mxu0 }
 0x1e7   : > { %1539 = vst.msk [vmem:[%s2444_s4 + $0x190] sm:$0xff] %vm1488_vm2, %v1968_v2  ;;  %1560 = vst.msk [vmem:[%s2444_s4 + $0x238] sm:$0xff] %vm1488_vm2, %v1999_v3 }
 0x1e8   : > { %v1161_v4 = vpop.f32.mrf.mxu1  ;;  %v1424_v5 = vpop.f32.mrf.mxu0 }
 0x1e9   : > { %1537 = vst.msk [vmem:[%s2444_s4 + $0x180] sm:$0xff] %vm1488_vm2, %v1161_v4  ;;  %1558 = vst.msk [vmem:[%s2444_s4 + $0x228] sm:$0xff] %vm1488_vm2, %v1424_v5 }
 0x1ea   : > { %v1969_v6 = vpop.f32.mrf.mxu1 }
 0x1eb   : > { %1540 = vst.msk [vmem:[%s2444_s4 + $0x198] sm:$0xff] %vm1488_vm2, %v1969_v6 }
 0x1ec   : > { %v1164_v7 = vpop.f32.mrf.mxu1 }
 0x1ed   : > { %1538 = vst.msk [vmem:[%s2444_s4 + $0x188] sm:$0xff] %vm1488_vm2, %v1164_v7 }
 0x1ee   : > { %v1980_v8 = vpop.f32.mrf.mxu1 }
 0x1ef   : > { %1547 = vst.msk [vmem:[%s2444_s4 + $0x1d0] sm:$0xff] %vm1488_vm2, %v1980_v8 }
 0x1f0   : > { %v1265_v9 = vpop.f32.mrf.mxu1 }
 0x1f1   : > { %1545 = vst.msk [vmem:[%s2444_s4 + $0x1c0] sm:$0xff] %vm1488_vm2, %v1265_v9 }
 0x1f2   : > { %v1981_v10 = vpop.f32.mrf.mxu1 }
 0x1f3   : > { %1548 = vst.msk [vmem:[%s2444_s4 + $0x1d8] sm:$0xff] %vm1488_vm2, %v1981_v10 }
 0x1f4   : > { %v1268_v11 = vpop.f32.mrf.mxu1 }
 0x1f5   : > { %1546 = vst.msk [vmem:[%s2444_s4 + $0x1c8] sm:$0xff] %vm1488_vm2, %v1268_v11 }
 0x1f6   : > { %v1992_v12 = vpop.f32.mrf.mxu1 }
 0x1f7   : > { %1555 = vst.msk [vmem:[%s2444_s4 + $0x210] sm:$0xff] %vm1488_vm2, %v1992_v12 }
 0x1f8   : > { %v1369_v13 = vpop.f32.mrf.mxu1 }
 0x1f9   : > { %1553 = vst.msk [vmem:[%s2444_s4 + $0x200] sm:$0xff] %vm1488_vm2, %v1369_v13 }
 0x1fa   : > { %v1993_v14 = vpop.f32.mrf.mxu1 }
 0x1fb   : > { %1556 = vst.msk [vmem:[%s2444_s4 + $0x218] sm:$0xff] %vm1488_vm2, %v1993_v14 }
 0x1fc   : > { %v1372_v15 = vpop.f32.mrf.mxu1 }
 0x1fd   : > { %1554 = vst.msk [vmem:[%s2444_s4 + $0x208] sm:$0xff] %vm1488_vm2, %v1372_v15 }
 0x1fe   : > { %v2004_v16 = vpop.f32.mrf.mxu1 }
 0x1ff   : > { %1563 = vst.msk [vmem:[%s2444_s4 + $0x250] sm:$0xff] %vm1488_vm2, %v2004_v16 }
 0x200   : > { %v1473_v17 = vpop.f32.mrf.mxu1 }
 0x201   : > { %1561 = vst.msk [vmem:[%s2444_s4 + $0x240] sm:$0xff] %vm1488_vm2, %v1473_v17 }
 0x202   : > { %v2005_v18 = vpop.f32.mrf.mxu1 }
 0x203   : > { %1564 = vst.msk [vmem:[%s2444_s4 + $0x258] sm:$0xff] %vm1488_vm2, %v2005_v18 }
 0x204   : > { %v1476_v19 = vpop.f32.mrf.mxu1 }
 0x205   : > { %1562 = vst.msk [vmem:[%s2444_s4 + $0x248] sm:$0xff] %vm1488_vm2, %v1476_v19 }
 0x206   : > { %s2028_s6 = smul.u32 152, %s2179_s16  ;;  %s1591_s7 = sshll.u32 %s2444_s4, 4  ;;  %s1592_s7 = int_to_ptr.vmem [resolvable:$true] %s1591_s7 }
 0x207   : > { %s2193_s9 = smov 512   ;;  %s2194_s27 = smov 1024  }
 0x208   : > { %s1578_s8 = sadd.s32 %s2028_s6, %s2312_s11  ;;  %2029 = sst [smem:[#allocation5]] (%p2271_p3), %s2193_s9 }
 0x209   : > { %s1780_s10 = sshll.u32 %s1578_s8, 7  ;;  %2030 = sst [smem:[#allocation5 + $0x1]] (%p2271_p3), %s2194_s27 }
 0x20a   : > { %s1580_s24 = scalar_lea.hbm %s2651_s3, %s1780_s10  ;;  %s2195_s28 = smov 4  }
 0x20b   : > { %2031 = sst [smem:[#allocation5 + $0x2]] (%p2271_p3), %s2195_s28  ;;  %s2196_s16 = smov 128  }
 0x20c   : > { %2032 = sst [smem:[#allocation5 + $0x3]] (%p2271_p3), %s2196_s16  ;;  %s2197_s11 = smov 8  }
 0x20d   : > { %2033 = sst [smem:[#allocation5 + $0x4]] (%p2271_p3), %s2196_s16  ;;  %s2198_s15 = smov 131072  }
 0x20e   : > { %2034 = sst [smem:[#allocation5 + $0x5]] (%p2271_p3), %s2197_s11  ;;  %s2199_s29 = smov 0  }
 0x20f   : > { %2035 = dma.general (%p2271_p3), %s1592_s7, 9728, %s1580_s24, %s1566_s5, %s2198_s15, [#allocation5], %s2199_s29, 0  }
 0x210 PF: > { %p2041_p0 = scmp.ge.s32.totalorder %s2191_s19, 2  ;;  %s1619_s4 = sand.u32 1, %s2163_s12  }
 0x211   : > { %s1620_s6 = scalar_lea.sflag [#allocation3], %s1619_s4 }
 0x212   : > { %p2038_p1 = pnand %p2041_p0, %p2280_p8 }
 0x214   : > { %p2039_p2 = pneg %p2038_p1 }
 0x216   : > { %2158 = dma.done.wait (%p2039_p2), %s1620_s6, 9728  }
 0x217   : > { %2160 = vsyncadd (%p2039_p2), %s1620_s6, 4294957568  ;;  %s16_s19 = sadd.s32 1, %s2191_s19   ;;  %s2654_s12 = smov %s2167_s13 }
 0x218   : > { %p13_p4 = scmp.ge.s32.totalorder %s16_s19, 6   ;;  %s2655_s13 = smov %s2171_s14 }
 0x219   : > { %s2656_s14 = smov %s2289_s30  ;;  %s2657_s15 = smov %s2183_s17 }
 0x21a   : > { %s2658_s16 = smov %s2187_s18  ;;  %s2659_s17 = smov %s2662_s22 }
 0x21b   : > { %s2660_s18 = smov %s2666_s23  ;;  %15 = sbr.rel (!%p13_p4) target bundleno = 5 (0x5), region = 75 }
 0x220   :  { %1625 = vsyncpa [#allocation3], 1 }
 0x221   :  { %1627 = vsyncpa [#allocation3 + $0x1], 1 }

// kernel: hrtlab_forward.8
= control target key start
LH: loop header
LB: loop body
LE: loop exit
PB: predicated region body
PF: predicated region fallthrough
CT: control target
= control target key end

     0   :  { %s1856_s15 = smov 0   ;;  %s2161_s0 = inlined_call_operand.vmem [shape: bf16[64,577], index: 0, kind: input, shape index: {}]   ;;  %s2162_s1 = inlined_call_operand.vmem [shape: bf16[24,64], index: 1, kind: input, shape index: {}]   ;;  %s2163_s2 = inlined_call_operand.vmem [shape: f32[24,1], index: 2, kind: input, shape index: {}]   ;;  %s2164_s3 = inlined_call_operand.vmem [shape: bf16[2,64,256], index: 3, kind: input, shape index: {}]   ;;  %s2165_s4 = inlined_call_operand.vmem [shape: f32[2,24,128], index: 4, kind: output, shape index: {}]  }
   0x1 LB: > { %s1526_s16 = sadd.s32 4294967295, %s1820_s15   ;;  %p1530_p0 = scmp.ge.s32.totalorder %s1820_s15, 1  ;;  %s1820_s15 = sphi %s1856_s15, %s14_s15  }
   0x2   : > { %p162_p1 = scmp.lt.s32.totalorder %s1820_s15, 3 }
   0x4   : > { %p163_p2 = pnand %p1530_p0, %p162_p1 }
   0x5   : > { %p188_p3 = scmp.lt.s32.totalorder (!%p163_p2), %s1526_s16, 1  ;;  %s1822_s21 = smov (!%p163_p2), 118  }
   0x6   : > { %166 = sbr.rel (%p163_p2) target bundleno = 703 (0x2bf), region = 36  ;;  %s1823_s22 = smov (!%p163_p2), 127  }
   0x7   : > { %s1824_s23 = smov (!%p163_p2), 107   ;;  %s1825_s24 = smov (!%p163_p2), 116  }
   0x8   : > { %s1826_s25 = smov (!%p163_p2), 126   ;;  %s1827_s26 = smov (!%p163_p2), 108  }
   0x9   : > { %s1828_s27 = smov (!%p163_p2), 117   ;;  %s1830_s6 = smov (!%p163_p2), 106  }
   0xb   : > { %s2167_s16 = smov (!%p188_p3, %s1526_s16), 1  ;;  %v1777_v16 = vld [vmem:[%s2161_s0 + $0x4] ss:$20 sps:$4 sm:$0xff]   ;;  %vm736_vm0 = vcmask 1040384   ;;  %vm737_vm1 = vsmask.f32 256 }
   0xc   : > { %s1601_s17 = sshll.u32 %s2167_s16, 6  ;;  %1209 = vmatprep.mubr.bf16.mxu0 %v1777_v16  ;;  %vm738_vm2 = vmand %vm736_vm0, %vm737_vm1  ;;  %v739_v17 = vld [vmem:[#allocation2 + $0x120] sm:$0x1]  ;;  %v1829_v19 = vmov 0   ;;  %v1788_v21 = vld [vmem:[%s2161_s0 + $0xc] ss:$20 sps:$4 sm:$0xff]  }
   0xd   : > { %s1870_s20 = scalar_lea.vmem %s2164_s3, %s1601_s17  ;;  %v740_v18 = vsel %vm738_vm2, 1065369472, %v739_v17  ;;  %v1991_v20 = vsel %vm736_vm0, 65535, %v1829_v19  ;;  %1746 = vset.pattern.permute.xlu1 %v1829_v19  ;;  %1745 = vset.pattern.permute.xlu0 %v1829_v19  ;;  %vm386_vm3 = vcmask 965632   ;;  %vm256_vm4 = vcmask 1039360   ;;  %s1727_s5 = smul.u32 24, %s2167_s16 }
   0xe   : > { %v1873_v0 = vld [vmem:[%s1870_s20 + $0x30] sm:$0xff]  ;;  %v1878_v1 = vld [vmem:[%s1870_s20 + $0x38] sm:$0xff]  ;;  %v1881_v2 = vld [vmem:[%s1870_s20 + $0x20] sm:$0xff]  ;;  %741 = vst [vmem:[#allocation2 + $0x120] sm:$0x1] %v740_v18  ;;  %1274 = vmatprep.mubr.bf16.mxu1 %v1788_v21  ;;  %vm646_vm5 = vcmask 875520  }
   0xf   : > { %374 = vrot.lane.b32.xlu0 %v1873_v0, %s1822_s21  ;;  %244 = vrot.lane.b32.xlu1 %v1873_v0, %s1823_s22  ;;  %v1886_v3 = vld [vmem:[%s1870_s20 + $0x28] sm:$0xff]  ;;  %v1893_v4 = vld [vmem:[%s1870_s20 + $0x18] sm:$0xff]  ;;  %vm516_vm6 = vcmask 949248   ;;  %vm321_vm7 = vcmask 1031168   ;;  %vm581_vm8 = vcmask 883712   ;;  %vm451_vm9 = vcmask 957440   ;;  %s197_s8 = scalar_lea.vmem %s2165_s4, %s1727_s5 }
  0x10   : > { %v1896_v5 = vld [vmem:[%s1870_s20 + $0x10] sm:$0xff]  ;;  %v1911_v6 = vld [vmem:[%s1870_s20 + $0x8] sm:$0xff]  ;;  %v1914_v7 = vld [vmem:[%s1870_s20] sm:$0xff]  ;;  %vm711_vm10 = vcmask 867328   ;;  %vm1158_vm11 = vcmask 531456   ;;  %vm1413_vm12 = vcmask 523264  }
  0x11   : > { %v206_v8 = vld [vmem:[%s1870_s20 + $0x30] sm:$0xf]  ;;  %v207_v9 = vld [vmem:[%s1870_s20 + $0x38] sm:$0xf]  ;;  %v204_v10 = vld [vmem:[%s1870_s20 + $0x20] sm:$0xf] }
  0x12   : > { %214 = vst [vmem:[#allocation2 + $0x18] sm:$0xf] %v206_v8  ;;  %215 = vst [vmem:[#allocation2 + $0x1c] sm:$0xf] %v207_v9  ;;  %v205_v11 = vld [vmem:[%s1870_s20 + $0x28] sm:$0xf] }
  0x13   : > { %376 = vrot.lane.b32.xlu0 %v1878_v1, %s1822_s21  ;;  %246 = vrot.lane.b32.xlu1 %v1878_v1, %s1823_s22  ;;  %212 = vst [vmem:[#allocation2 + $0x10] sm:$0xf] %v204_v10  ;;  %213 = vst [vmem:[#allocation2 + $0x14] sm:$0xf] %v205_v11  ;;  %v202_v12 = vld [vmem:[%s1870_s20 + $0x10] sm:$0xf] }
  0x14   : > { %v203_v13 = vld [vmem:[%s1870_s20 + $0x18] sm:$0xf]  ;;  %210 = vst [vmem:[#allocation2 + $0x8] sm:$0xf] %v202_v12  ;;  %v200_v14 = vld [vmem:[%s1870_s20] sm:$0xf] }
  0x15   : > { %211 = vst [vmem:[#allocation2 + $0xc] sm:$0xf] %v203_v13  ;;  %v201_v15 = vld [vmem:[%s1870_s20 + $0x8] sm:$0xf]  ;;  %208 = vst [vmem:[#allocation2] sm:$0xf] %v200_v14 }
  0x16   : > { %209 = vst [vmem:[#allocation2 + $0x4] sm:$0xf] %v201_v15 }
  0x17   : > { %370 = vrot.lane.b32.xlu0 %v1881_v2, %s1822_s21  ;;  %372 = vrot.lane.b32.xlu1 %v1886_v3, %s1822_s21 }
  0x1b   : > { %242 = vrot.lane.b32.xlu1 %v1886_v3, %s1823_s22  ;;  %240 = vrot.lane.b32.xlu0 %v1881_v2, %s1823_s22 }
  0x1f   : > { %368 = vrot.lane.b32.xlu1 %v1893_v4, %s1822_s21  ;;  %366 = vrot.lane.b32.xlu0 %v1896_v5, %s1822_s21 }
  0x23   : > { %238 = vrot.lane.b32.xlu1 %v1893_v4, %s1823_s22  ;;  %236 = vrot.lane.b32.xlu0 %v1896_v5, %s1823_s22 }
  0x27   : > { %636 = vrot.lane.b32.xlu1 %v1878_v1, %s1824_s23  ;;  %634 = vrot.lane.b32.xlu0 %v1873_v0, %s1824_s23 }
  0x2b   : > { %506 = vrot.lane.b32.xlu1 %v1878_v1, %s1825_s24  ;;  %504 = vrot.lane.b32.xlu0 %v1873_v0, %s1825_s24 }
  0x2f   : > { %364 = vrot.lane.b32.xlu1 %v1911_v6, %s1822_s21  ;;  %362 = vrot.lane.b32.xlu0 %v1914_v7, %s1822_s21 }
  0x33   : > { %234 = vrot.lane.b32.xlu1 %v1911_v6, %s1823_s22  ;;  %232 = vrot.lane.b32.xlu0 %v1914_v7, %s1823_s22 }
  0x37   : > { %632 = vrot.lane.b32.xlu1 %v1886_v3, %s1824_s23  ;;  %630 = vrot.lane.b32.xlu0 %v1881_v2, %s1824_s23 }
  0x3b   : > { %502 = vrot.lane.b32.xlu1 %v1886_v3, %s1825_s24  ;;  %500 = vrot.lane.b32.xlu0 %v1881_v2, %s1825_s24 }
  0x3f   : > { %311 = vrot.lane.b32.xlu1 %v1878_v1, %s1826_s25  ;;  %309 = vrot.lane.b32.xlu0 %v1873_v0, %s1826_s25 }
  0x43   : > { %628 = vrot.lane.b32.xlu1 %v1893_v4, %s1824_s23  ;;  %626 = vrot.lane.b32.xlu0 %v1896_v5, %s1824_s23 }
  0x47   : > { %498 = vrot.lane.b32.xlu1 %v1893_v4, %s1825_s24  ;;  %496 = vrot.lane.b32.xlu0 %v1896_v5, %s1825_s24 }
  0x4b   : > { %307 = vrot.lane.b32.xlu1 %v1886_v3, %s1826_s25  ;;  %305 = vrot.lane.b32.xlu0 %v1881_v2, %s1826_s25 }
  0x4f   : > { %624 = vrot.lane.b32.xlu1 %v1911_v6, %s1824_s23  ;;  %622 = vrot.lane.b32.xlu0 %v1914_v7, %s1824_s23 }
  0x53   : > { %494 = vrot.lane.b32.xlu1 %v1911_v6, %s1825_s24  ;;  %492 = vrot.lane.b32.xlu0 %v1914_v7, %s1825_s24 }
  0x57   : > { %303 = vrot.lane.b32.xlu1 %v1893_v4, %s1826_s25  ;;  %301 = vrot.lane.b32.xlu0 %v1896_v5, %s1826_s25 }
  0x5b   : > { %571 = vrot.lane.b32.xlu1 %v1878_v1, %s1827_s26  ;;  %569 = vrot.lane.b32.xlu0 %v1873_v0, %s1827_s26 }
  0x5f   : > { %441 = vrot.lane.b32.xlu1 %v1878_v1, %s1828_s27  ;;  %439 = vrot.lane.b32.xlu0 %v1873_v0, %s1828_s27 }
  0x63   : > { %299 = vrot.lane.b32.xlu1 %v1911_v6, %s1826_s25  ;;  %297 = vrot.lane.b32.xlu0 %v1914_v7, %s1826_s25 }
  0x67   : > { %567 = vrot.lane.b32.xlu1 %v1886_v3, %s1827_s26  ;;  %565 = vrot.lane.b32.xlu0 %v1881_v2, %s1827_s26 }
  0x6b   : > { %437 = vrot.lane.b32.xlu1 %v1886_v3, %s1828_s27  ;;  %435 = vrot.lane.b32.xlu0 %v1881_v2, %s1828_s27 }
  0x6f   : > { %563 = vrot.lane.b32.xlu1 %v1893_v4, %s1827_s26  ;;  %561 = vrot.lane.b32.xlu0 %v1896_v5, %s1827_s26 }
  0x73   : > { %433 = vrot.lane.b32.xlu1 %v1893_v4, %s1828_s27  ;;  %431 = vrot.lane.b32.xlu0 %v1896_v5, %s1828_s27 }
  0x77   : > { %559 = vrot.lane.b32.xlu1 %v1911_v6, %s1827_s26  ;;  %557 = vrot.lane.b32.xlu0 %v1914_v7, %s1827_s26 }
  0x7b   : > { %429 = vrot.lane.b32.xlu1 %v1911_v6, %s1828_s27  ;;  %427 = vrot.lane.b32.xlu0 %v1914_v7, %s1828_s27 }
  0x7f   : > { %701 = vrot.lane.b32.xlu1 %v1878_v1, %s1830_s6  ;;  %699 = vrot.lane.b32.xlu0 %v1873_v0, %s1830_s6 }
  0x81   : > { %v375_v22 = vpop.permute.xlu0 %374  ;;  %v245_v23 = vpop.permute.xlu1 %244 }
  0x82   : > { %v384_v24 = vrot.slane %v375_v22, 4  ;;  %v254_v25 = vrot.slane %v245_v23, 4 }
  0x83   : > { %697 = vrot.lane.b32.xlu1 %v1886_v3, %s1830_s6  ;;  %695 = vrot.lane.b32.xlu0 %v1881_v2, %s1830_s6 }
  0x84   : > { %v393_v26 = vsel %vm386_vm3, %v375_v22, %v384_v24  ;;  %v263_v27 = vsel %vm256_vm4, %v245_v23, %v254_v25 }
  0x85   : > { %409 = vst [vmem:[#allocation2 + $0x78] sm:$0xf] %v393_v26  ;;  %279 = vst [vmem:[#allocation2 + $0x38] sm:$0xf] %v263_v27  ;;  %v377_v28 = vpop.permute.xlu0 %376  ;;  %v247_v29 = vpop.permute.xlu1 %246 }
  0x86   : > { %v385_v30 = vrot.slane %v377_v28, 4  ;;  %v255_v31 = vrot.slane %v247_v29, 4 }
  0x87   : > { %693 = vrot.lane.b32.xlu1 %v1893_v4, %s1830_s6  ;;  %691 = vrot.lane.b32.xlu0 %v1896_v5, %s1830_s6 }
  0x88   : > { %v394_v32 = vsel %vm386_vm3, %v377_v28, %v385_v30  ;;  %v264_v33 = vsel %vm256_vm4, %v247_v29, %v255_v31 }
  0x89   : > { %410 = vst [vmem:[#allocation2 + $0x7c] sm:$0xf] %v394_v32  ;;  %280 = vst [vmem:[#allocation2 + $0x3c] sm:$0xf] %v264_v33  ;;  %v371_v34 = vpop.permute.xlu0 %370  ;;  %v373_v35 = vpop.permute.xlu1 %372 }
  0x8a   : > { %v382_v36 = vrot.slane %v371_v34, 4  ;;  %v383_v37 = vrot.slane %v373_v35, 4 }
  0x8b   : > { %689 = vrot.lane.b32.xlu1 %v1911_v6, %s1830_s6  ;;  %687 = vrot.lane.b32.xlu0 %v1914_v7, %s1830_s6 }
  0x8c   : > { %v391_v38 = vsel %vm386_vm3, %v371_v34, %v382_v36  ;;  %v392_v39 = vsel %vm386_vm3, %v373_v35, %v383_v37 }
  0x8d   : > { %407 = vst [vmem:[#allocation2 + $0x70] sm:$0xf] %v391_v38  ;;  %408 = vst [vmem:[#allocation2 + $0x74] sm:$0xf] %v392_v39  ;;  %v243_v40 = vpop.permute.xlu1 %242  ;;  %v241_v41 = vpop.permute.xlu0 %240 }
  0x8e   : > { %v253_v42 = vrot.slane %v243_v40, 4  ;;  %v252_v43 = vrot.slane %v241_v41, 4 }
  0x90   : > { %v262_v44 = vsel %vm256_vm4, %v243_v40, %v253_v42  ;;  %v261_v45 = vsel %vm256_vm4, %v241_v41, %v252_v43  ;;  %v1747_v46 = vld [vmem:[#allocation2 + $0x78] sm:$0xff]  }
  0x91   : > { %278 = vst [vmem:[#allocation2 + $0x34] sm:$0xf] %v262_v44  ;;  %277 = vst [vmem:[#allocation2 + $0x30] sm:$0xf] %v261_v45  ;;  %v369_v47 = vpop.permute.xlu1 %368  ;;  %v367_v48 = vpop.permute.xlu0 %366  ;;  %v1748_v49 = vld [vmem:[#allocation2 + $0x38] sm:$0xff]   ;;  %1602 = vmatprep.subr.bf16.mxu0 %v1747_v46 }
  0x92   : > { %v381_v50 = vrot.slane %v369_v47, 4  ;;  %v380_v51 = vrot.slane %v367_v48, 4  ;;  %1603 = vmatpush3.bf16.msra.mxu0 %v1748_v49 }
  0x94   : > { %v390_v52 = vsel %vm386_vm3, %v369_v47, %v381_v50  ;;  %v389_v53 = vsel %vm386_vm3, %v367_v48, %v380_v51  ;;  %v1749_v54 = vld [vmem:[#allocation2 + $0x70] sm:$0xff]  }
  0x95   : > { %406 = vst [vmem:[#allocation2 + $0x6c] sm:$0xf] %v390_v52  ;;  %405 = vst [vmem:[#allocation2 + $0x68] sm:$0xf] %v389_v53  ;;  %v239_v55 = vpop.permute.xlu1 %238  ;;  %v237_v56 = vpop.permute.xlu0 %236  ;;  %1604 = vmatprep.subr.bf16.mxu0 %v1749_v54 }
  0x96   : > { %v251_v57 = vrot.slane %v239_v55, 4  ;;  %v250_v58 = vrot.slane %v237_v56, 4 }
  0x98   : > { %v260_v59 = vsel %vm256_vm4, %v239_v55, %v251_v57  ;;  %v259_v60 = vsel %vm256_vm4, %v237_v56, %v250_v58  ;;  %v1750_v61 = vld [vmem:[#allocation2 + $0x30] sm:$0xff]  }
  0x99   : > { %276 = vst [vmem:[#allocation2 + $0x2c] sm:$0xf] %v260_v59  ;;  %275 = vst [vmem:[#allocation2 + $0x28] sm:$0xf] %v259_v60  ;;  %v637_v62 = vpop.permute.xlu1 %636  ;;  %v635_v63 = vpop.permute.xlu0 %634  ;;  %1605 = vmatpush3.bf16.msra.mxu0 %v1750_v61  ;;  %v1762_v59 = vld [vmem:[#allocation2 + $0x18] sm:$0xff]  }
  0x9a   : > { %v645_v0 = vrot.slane %v637_v62, 4  ;;  %v644_v1 = vrot.slane %v635_v63, 4 }
  0x9c   : > { %v654_v2 = vsel %vm646_vm5, %v637_v62, %v645_v0  ;;  %v653_v3 = vsel %vm646_vm5, %v635_v63, %v644_v1  ;;  %v1751_v4 = vld [vmem:[#allocation2 + $0x68] sm:$0xff]  }
  0x9d   : > { %670 = vst [vmem:[#allocation2 + $0xfc] sm:$0xf] %v654_v2  ;;  %669 = vst [vmem:[#allocation2 + $0xf8] sm:$0xf] %v653_v3  ;;  %v507_v5 = vpop.permute.xlu1 %506  ;;  %v505_v6 = vpop.permute.xlu0 %504  ;;  %1606 = vmatprep.subr.bf16.mxu0 %v1751_v4 }
  0x9e   : > { %v515_v7 = vrot.slane %v507_v5, 4  ;;  %v514_v8 = vrot.slane %v505_v6, 4 }
  0xa0   : > { %v524_v9 = vsel %vm516_vm6, %v507_v5, %v515_v7  ;;  %v523_v10 = vsel %vm516_vm6, %v505_v6, %v514_v8  ;;  %v1752_v11 = vld [vmem:[#allocation2 + $0x28] sm:$0xff]  }
  0xa1   : > { %540 = vst [vmem:[#allocation2 + $0xbc] sm:$0xf] %v524_v9  ;;  %539 = vst [vmem:[#allocation2 + $0xb8] sm:$0xf] %v523_v10  ;;  %v365_v12 = vpop.permute.xlu1 %364  ;;  %v363_v13 = vpop.permute.xlu0 %362  ;;  %1607 = vmatpush3.bf16.msra.mxu0 %v1752_v11 }
  0xa2   : > { %v379_v14 = vrot.slane %v365_v12, 4  ;;  %v378_v15 = vrot.slane %v363_v13, 4 }
  0xa4   : > { %v388_v16 = vsel %vm386_vm3, %v365_v12, %v379_v14  ;;  %v387_v17 = vsel %vm386_vm3, %v363_v13, %v378_v15  ;;  %v1753_v18 = vld [vmem:[#allocation2 + $0xf8] sm:$0xff]  }
  0xa5   : > { %404 = vst [vmem:[#allocation2 + $0x64] sm:$0xf] %v388_v16  ;;  %403 = vst [vmem:[#allocation2 + $0x60] sm:$0xf] %v387_v17  ;;  %v235_v19 = vpop.permute.xlu1 %234  ;;  %v233_v21 = vpop.permute.xlu0 %232  ;;  %1642 = vmatprep.subr.bf16.mxu1 %v1753_v18  ;;  %v1766_v17 = vld [vmem:[#allocation2 + $0x10] sm:$0xff]  }
  0xa6   : > { %v249_v22 = vrot.slane %v235_v19, 4  ;;  %v248_v23 = vrot.slane %v233_v21, 4 }
  0xa8   : > { %v258_v24 = vsel %vm256_vm4, %v235_v19, %v249_v22  ;;  %v257_v25 = vsel %vm256_vm4, %v233_v21, %v248_v23  ;;  %v1754_v26 = vld [vmem:[#allocation2 + $0xb8] sm:$0xff]  }
  0xa9   : > { %274 = vst [vmem:[#allocation2 + $0x24] sm:$0xf] %v258_v24  ;;  %273 = vst [vmem:[#allocation2 + $0x20] sm:$0xf] %v257_v25  ;;  %v633_v27 = vpop.permute.xlu1 %632  ;;  %v631_v28 = vpop.permute.xlu0 %630  ;;  %1643 = vmatpush3.bf16.msra.mxu1 %v1754_v26 }
  0xaa   : > { %v643_v29 = vrot.slane %v633_v27, 4  ;;  %v642_v30 = vrot.slane %v631_v28, 4 }
  0xac   : > { %v652_v31 = vsel %vm646_vm5, %v633_v27, %v643_v29  ;;  %v651_v32 = vsel %vm646_vm5, %v631_v28, %v642_v30  ;;  %v1755_v33 = vld [vmem:[#allocation2 + $0x60] sm:$0xff]  }
  0xad   : > { %668 = vst [vmem:[#allocation2 + $0xf4] sm:$0xf] %v652_v31  ;;  %667 = vst [vmem:[#allocation2 + $0xf0] sm:$0xf] %v651_v32  ;;  %v503_v34 = vpop.permute.xlu1 %502  ;;  %v501_v35 = vpop.permute.xlu0 %500  ;;  %1608 = vmatprep.subr.bf16.mxu0 %v1755_v33 }
  0xae   : > { %v513_v36 = vrot.slane %v503_v34, 4  ;;  %v512_v37 = vrot.slane %v501_v35, 4 }
  0xb0   : > { %v522_v38 = vsel %vm516_vm6, %v503_v34, %v513_v36  ;;  %v521_v39 = vsel %vm516_vm6, %v501_v35, %v512_v37  ;;  %v1756_v40 = vld [vmem:[#allocation2 + $0x20] sm:$0xff]  }
  0xb1   : > { %538 = vst [vmem:[#allocation2 + $0xb4] sm:$0xf] %v522_v38  ;;  %537 = vst [vmem:[#allocation2 + $0xb0] sm:$0xf] %v521_v39  ;;  %v312_v41 = vpop.permute.xlu1 %311  ;;  %v310_v42 = vpop.permute.xlu0 %309  ;;  %1609 = vmatpush3.bf16.msra.mxu0 %v1756_v40  ;;  %v1770_v40 = vld [vmem:[#allocation2 + $0x8] sm:$0xff]  }
  0xb2   : > { %v320_v43 = vrot.slane %v312_v41, 4  ;;  %v319_v44 = vrot.slane %v310_v42, 4 }
  0xb4   : > { %v329_v45 = vsel %vm321_vm7, %v312_v41, %v320_v43  ;;  %v328_v46 = vsel %vm321_vm7, %v310_v42, %v319_v44  ;;  %v1757_v47 = vld [vmem:[#allocation2 + $0xf0] sm:$0xff]  }
  0xb5   : > { %345 = vst [vmem:[#allocation2 + $0x5c] sm:$0xf] %v329_v45  ;;  %344 = vst [vmem:[#allocation2 + $0x58] sm:$0xf] %v328_v46  ;;  %v629_v48 = vpop.permute.xlu1 %628  ;;  %v627_v49 = vpop.permute.xlu0 %626  ;;  %1644 = vmatprep.subr.bf16.mxu1 %v1757_v47 }
  0xb6   : > { %v641_v50 = vrot.slane %v629_v48, 4  ;;  %v640_v51 = vrot.slane %v627_v49, 4 }
  0xb8   : > { %v650_v52 = vsel %vm646_vm5, %v629_v48, %v641_v50  ;;  %v649_v53 = vsel %vm646_vm5, %v627_v49, %v640_v51  ;;  %v1758_v54 = vld [vmem:[#allocation2 + $0xb0] sm:$0xff]  }
  0xb9   : > { %666 = vst [vmem:[#allocation2 + $0xec] sm:$0xf] %v650_v52  ;;  %665 = vst [vmem:[#allocation2 + $0xe8] sm:$0xf] %v649_v53  ;;  %v499_v55 = vpop.permute.xlu1 %498  ;;  %v497_v56 = vpop.permute.xlu0 %496  ;;  %1645 = vmatpush3.bf16.msra.mxu1 %v1758_v54 }
  0xba   : > { %v511_v57 = vrot.slane %v499_v55, 4  ;;  %v510_v58 = vrot.slane %v497_v56, 4 }
  0xbc   : > { %v520_v60 = vsel %vm516_vm6, %v499_v55, %v511_v57  ;;  %v519_v61 = vsel %vm516_vm6, %v497_v56, %v510_v58  ;;  %v1759_v62 = vld [vmem:[#allocation2 + $0x58] sm:$0xff]   ;;  %v1785_v55 = vld [vmem:[#allocation2 + $0x120] ss:$0 sps:$4 sm:$0x11]  }
  0xbd   : > { %536 = vst [vmem:[#allocation2 + $0xac] sm:$0xf] %v520_v60  ;;  %535 = vst [vmem:[#allocation2 + $0xa8] sm:$0xf] %v519_v61  ;;  %v308_v63 = vpop.permute.xlu1 %307  ;;  %v306_v0 = vpop.permute.xlu0 %305  ;;  %1610 = vmatprep.subr.bf16.mxu0 %v1759_v62 }
  0xbe   : > { %v318_v1 = vrot.slane %v308_v63, 4  ;;  %v317_v2 = vrot.slane %v306_v0, 4  ;;  %1611 = vmatpush3.bf16.msra.mxu0 %v1762_v59 }
  0xc0   : > { %v327_v3 = vsel %vm321_vm7, %v308_v63, %v318_v1  ;;  %v326_v4 = vsel %vm321_vm7, %v306_v0, %v317_v2  ;;  %v1760_v5 = vld [vmem:[#allocation2 + $0xe8] sm:$0xff]   ;;  %v1773_v63 = vld [vmem:[#allocation2] sm:$0xff]  }
  0xc1   : > { %343 = vst [vmem:[#allocation2 + $0x54] sm:$0xf] %v327_v3  ;;  %342 = vst [vmem:[#allocation2 + $0x50] sm:$0xf] %v326_v4  ;;  %v625_v6 = vpop.permute.xlu1 %624  ;;  %v623_v7 = vpop.permute.xlu0 %622  ;;  %1646 = vmatprep.subr.bf16.mxu1 %v1760_v5  ;;  %v1175_v3 = vand.u32 %v1785_v55, %v1991_v20 }
  0xc2   : > { %v639_v8 = vrot.slane %v625_v6, 4  ;;  %v638_v9 = vrot.slane %v623_v7, 4 }
  0xc4   : > { %v648_v10 = vsel %vm646_vm5, %v625_v6, %v639_v8  ;;  %v647_v11 = vsel %vm646_vm5, %v623_v7, %v638_v9  ;;  %v1761_v12 = vld [vmem:[#allocation2 + $0xa8] sm:$0xff]  }
  0xc5   : > { %664 = vst [vmem:[#allocation2 + $0xe4] sm:$0xf] %v648_v10  ;;  %663 = vst [vmem:[#allocation2 + $0xe0] sm:$0xf] %v647_v11  ;;  %v495_v13 = vpop.permute.xlu1 %494  ;;  %v493_v14 = vpop.permute.xlu0 %492  ;;  %1647 = vmatpush3.bf16.msra.mxu1 %v1761_v12  ;;  %v1775_v8 = vld [vmem:[%s2161_s0] ss:$20 sps:$4 sm:$0xff]  }
  0xc6   : > { %v509_v15 = vrot.slane %v495_v13, 4  ;;  %v508_v16 = vrot.slane %v493_v14, 4  ;;  %v1780_v9 = vld [vmem:[%s2161_s0 + $0x2c] ss:$20 sps:$4 sm:$0xff]  }
  0xc8   : > { %v518_v18 = vsel %vm516_vm6, %v495_v13, %v509_v15  ;;  %v517_v19 = vsel %vm516_vm6, %v493_v14, %v508_v16  ;;  %v1763_v21 = vld [vmem:[#allocation2 + $0x50] sm:$0xff]  }
  0xc9   : > { %534 = vst [vmem:[#allocation2 + $0xa4] sm:$0xf] %v518_v18  ;;  %533 = vst [vmem:[#allocation2 + $0xa0] sm:$0xf] %v517_v19  ;;  %v304_v22 = vpop.permute.xlu1 %303  ;;  %v302_v23 = vpop.permute.xlu0 %301  ;;  %1612 = vmatprep.subr.bf16.mxu0 %v1763_v21 }
  0xca   : > { %v316_v24 = vrot.slane %v304_v22, 4  ;;  %v315_v25 = vrot.slane %v302_v23, 4  ;;  %1613 = vmatpush3.bf16.msra.mxu0 %v1766_v17 }
  0xcc   : > { %v325_v26 = vsel %vm321_vm7, %v304_v22, %v316_v24  ;;  %v324_v27 = vsel %vm321_vm7, %v302_v23, %v315_v25  ;;  %v1764_v28 = vld [vmem:[#allocation2 + $0xe0] sm:$0xff]   ;;  %v1789_v25 = vld [vmem:[%s2161_s0 + $0x54] ss:$20 sps:$4 sm:$0xff]  }
  0xcd   : > { %341 = vst [vmem:[#allocation2 + $0x4c] sm:$0xf] %v325_v26  ;;  %340 = vst [vmem:[#allocation2 + $0x48] sm:$0xf] %v324_v27  ;;  %v572_v29 = vpop.permute.xlu1 %571  ;;  %v570_v30 = vpop.permute.xlu0 %569  ;;  %1648 = vmatprep.subr.bf16.mxu1 %v1764_v28  ;;  %v1782_v24 = vld [vmem:[%s2161_s0 + $0x28] ss:$20 sps:$4 sm:$0xff]  }
  0xce   : > { %v580_v31 = vrot.slane %v572_v29, 4  ;;  %v579_v32 = vrot.slane %v570_v30, 4 }
  0xd0   : > { %v589_v33 = vsel %vm581_vm8, %v572_v29, %v580_v31  ;;  %v588_v34 = vsel %vm581_vm8, %v570_v30, %v579_v32  ;;  %v1765_v35 = vld [vmem:[#allocation2 + $0xa0] sm:$0xff]  }
  0xd1   : > { %605 = vst [vmem:[#allocation2 + $0xdc] sm:$0xf] %v589_v33  ;;  %604 = vst [vmem:[#allocation2 + $0xd8] sm:$0xf] %v588_v34  ;;  %v442_v36 = vpop.permute.xlu1 %441  ;;  %v440_v37 = vpop.permute.xlu0 %439  ;;  %1649 = vmatpush3.bf16.msra.mxu1 %v1765_v35 }
  0xd2   : > { %v450_v38 = vrot.slane %v442_v36, 4  ;;  %v449_v39 = vrot.slane %v440_v37, 4 }
  0xd4   : > { %v459_v41 = vsel %vm451_vm9, %v442_v36, %v450_v38  ;;  %v458_v42 = vsel %vm451_vm9, %v440_v37, %v449_v39  ;;  %v1767_v43 = vld [vmem:[#allocation2 + $0x48] sm:$0xff]  }
  0xd5   : > { %475 = vst [vmem:[#allocation2 + $0x9c] sm:$0xf] %v459_v41  ;;  %474 = vst [vmem:[#allocation2 + $0x98] sm:$0xf] %v458_v42  ;;  %v300_v44 = vpop.permute.xlu1 %299  ;;  %v298_v45 = vpop.permute.xlu0 %297  ;;  %1614 = vmatprep.subr.bf16.mxu0 %v1767_v43  ;;  %v1794_v41 = vld [vmem:[%s2161_s0 + $0x7c] ss:$20 sps:$4 sm:$0xff]  }
  0xd6   : > { %v314_v46 = vrot.slane %v300_v44, 4  ;;  %v313_v47 = vrot.slane %v298_v45, 4  ;;  %1615 = vmatpush3.bf16.msra.mxu0 %v1770_v40  ;;  %v1791_v40 = vld [vmem:[%s2161_s0 + $0x50] ss:$20 sps:$4 sm:$0xff]  }
  0xd8   : > { %v323_v48 = vsel %vm321_vm7, %v300_v44, %v314_v46  ;;  %v322_v49 = vsel %vm321_vm7, %v298_v45, %v313_v47  ;;  %v1768_v50 = vld [vmem:[#allocation2 + $0xd8] sm:$0xff]  }
  0xd9   : > { %339 = vst [vmem:[#allocation2 + $0x44] sm:$0xf] %v323_v48  ;;  %338 = vst [vmem:[#allocation2 + $0x40] sm:$0xf] %v322_v49  ;;  %v568_v51 = vpop.permute.xlu1 %567  ;;  %v566_v52 = vpop.permute.xlu0 %565  ;;  %1650 = vmatprep.subr.bf16.mxu1 %v1768_v50 }
  0xda   : > { %v578_v53 = vrot.slane %v568_v51, 4  ;;  %v577_v54 = vrot.slane %v566_v52, 4 }
  0xdc   : > { %v587_v56 = vsel %vm581_vm8, %v568_v51, %v578_v53  ;;  %v586_v57 = vsel %vm581_vm8, %v566_v52, %v577_v54  ;;  %v1769_v58 = vld [vmem:[#allocation2 + $0x98] sm:$0xff]   ;;  %v1786_v54 = vld [vmem:[%s2161_s0 + $0x8] ss:$20 sps:$4 sm:$0xff]  }
  0xdd   : > { %603 = vst [vmem:[#allocation2 + $0xd4] sm:$0xf] %v587_v56  ;;  %602 = vst [vmem:[#allocation2 + $0xd0] sm:$0xf] %v586_v57  ;;  %v438_v59 = vpop.permute.xlu1 %437  ;;  %v436_v60 = vpop.permute.xlu0 %435  ;;  %1651 = vmatpush3.bf16.msra.mxu1 %v1769_v58  ;;  %v1796_v57 = vld [vmem:[%s2161_s0 + $0x34] ss:$20 sps:$4 sm:$0xff]  }
  0xde   : > { %v448_v61 = vrot.slane %v438_v59, 4  ;;  %v447_v62 = vrot.slane %v436_v60, 4  ;;  %v1798_v58 = vld [vmem:[%s2161_s0 + $0x78] ss:$20 sps:$4 sm:$0xff]  }
  0xe0   : > { %v457_v0 = vsel %vm451_vm9, %v438_v59, %v448_v61  ;;  %v456_v1 = vsel %vm451_vm9, %v436_v60, %v447_v62  ;;  %v1771_v2 = vld [vmem:[#allocation2 + $0x40] sm:$0xff]  }
  0xe1   : > { %473 = vst [vmem:[#allocation2 + $0x94] sm:$0xf] %v457_v0  ;;  %472 = vst [vmem:[#allocation2 + $0x90] sm:$0xf] %v456_v1  ;;  %v564_v4 = vpop.permute.xlu1 %563  ;;  %v562_v5 = vpop.permute.xlu0 %561  ;;  %1616 = vmatprep.subr.bf16.mxu0 %v1771_v2  ;;  %v1805_v0 = vld [vmem:[%s2161_s0 + $0x10] ss:$20 sps:$4 sm:$0xff]  }
  0xe2   : > { %v576_v6 = vrot.slane %v564_v4, 4  ;;  %v575_v7 = vrot.slane %v562_v5, 4  ;;  %1617 = vmatpush3.bf16.msra.mxu0 %v1773_v63 }
  0xe3   : > { %1697 = vmatprep.subr.bf16.mxu0 %v1175_v3 }
  0xe4   : > { %v585_v10 = vsel %vm581_vm8, %v564_v4, %v576_v6  ;;  %v584_v20 = vsel %vm581_vm8, %v562_v5, %v575_v7  ;;  %v1772_v11 = vld [vmem:[#allocation2 + $0xd0] sm:$0xff]   ;;  %v1799_v6 = vld [vmem:[%s2161_s0 + $0x30] ss:$20 sps:$4 sm:$0xff]  }
  0xe5   : > { %601 = vst [vmem:[#allocation2 + $0xcc] sm:$0xf] %v585_v10  ;;  %600 = vst [vmem:[#allocation2 + $0xc8] sm:$0xf] %v584_v20  ;;  %v434_v12 = vpop.permute.xlu1 %433  ;;  %v432_v13 = vpop.permute.xlu0 %431  ;;  %1652 = vmatprep.subr.bf16.mxu1 %v1772_v11  ;;  %1210 = vmatmul.mubr.bf16.vlgmr.msra.gmra.mxu0 %v1775_v8  ;;  %v1802_v7 = vld [vmem:[%s2161_s0 + $0x5c] ss:$20 sps:$4 sm:$0xff]  }
  0xe6   : > { %v446_v14 = vrot.slane %v434_v12, 4  ;;  %v445_v15 = vrot.slane %v432_v13, 4  ;;  %1217 = vmatprep.mubr.bf16.mxu0 %v1780_v9  ;;  %1698 = vmatpush3.bf16.msra.mxu0 %v1175_v3  ;;  %v1804_v10 = vld [vmem:[%s2161_s0 + $0x58] ss:$20 sps:$4 sm:$0xff]  }
  0xe7   : > { %v1806_v20 = vld [vmem:[%s2161_s0 + $0x38] ss:$20 sps:$4 sm:$0xff]  }
  0xe8   : > { %v455_v16 = vsel %vm451_vm9, %v434_v12, %v446_v14  ;;  %v454_v17 = vsel %vm451_vm9, %v432_v13, %v445_v15  ;;  %v1774_v18 = vld [vmem:[#allocation2 + $0x90] sm:$0xff]   ;;  %v1807_v11 = vld [vmem:[%s2161_s0 + $0x84] ss:$20 sps:$4 sm:$0xff]   ;;  %v1810_v12 = vld [vmem:[%s2161_s0 + $0x60] ss:$20 sps:$4 sm:$0xff]  }
  0xe9   : > { %471 = vst [vmem:[#allocation2 + $0x8c] sm:$0xf] %v455_v16  ;;  %470 = vst [vmem:[#allocation2 + $0x88] sm:$0xf] %v454_v17  ;;  %v560_v19 = vpop.permute.xlu1 %559  ;;  %v558_v21 = vpop.permute.xlu0 %557  ;;  %1653 = vmatpush3.bf16.msra.mxu1 %v1774_v18  ;;  %v1809_v13 = vld [vmem:[%s2161_s0 + $0x80] ss:$20 sps:$4 sm:$0xff]  }
  0xea   : > { %v574_v22 = vrot.slane %v560_v19, 4  ;;  %v573_v23 = vrot.slane %v558_v21, 4  ;;  %v1811_v14 = vld [vmem:[%s2161_s0 + $0x88] ss:$20 sps:$4 sm:$0xff]   ;;  %v1812_v15 = vld [vmem:[%s2162_s1] sm:$0xff]   ;;  %v1389_v18 = vld [vmem:[%s2163_s2 + $0x10] sm:$0xff] }
  0xeb   : > { %v1388_v16 = vld [vmem:[%s2163_s2 + $0x8] sm:$0xff]  ;;  %v1387_v17 = vld [vmem:[%s2163_s2] sm:$0xff] }
  0xec   : > { %v583_v26 = vsel %vm581_vm8, %v560_v19, %v574_v22  ;;  %v582_v27 = vsel %vm581_vm8, %v558_v21, %v573_v23  ;;  %v1778_v28 = vld [vmem:[#allocation2 + $0xc8] sm:$0xff]   ;;  %1397 = vperm.xlu1 %1746, %v1388_v16   ;;  %1392 = vperm.xlu0 %1745, %v1387_v17  }
  0xed   : > { %599 = vst [vmem:[#allocation2 + $0xc4] sm:$0xf] %v583_v26  ;;  %598 = vst [vmem:[#allocation2 + $0xc0] sm:$0xf] %v582_v27  ;;  %v430_v29 = vpop.permute.xlu1 %429  ;;  %v428_v30 = vpop.permute.xlu0 %427  ;;  %1654 = vmatprep.subr.bf16.mxu1 %v1778_v28  ;;  %1218 = vmatmul.mubr.bf16.gmra.mxu0 %v1782_v24 }
  0xee   : > { %v444_v31 = vrot.slane %v430_v29, 4  ;;  %v443_v32 = vrot.slane %v428_v30, 4  ;;  %1225 = vmatprep.mubr.bf16.mxu0 %v1789_v25 }
  0xf0   : > { %v453_v33 = vsel %vm451_vm9, %v430_v29, %v444_v31  ;;  %v452_v34 = vsel %vm451_vm9, %v428_v30, %v443_v32  ;;  %v1779_v35 = vld [vmem:[#allocation2 + $0x88] sm:$0xff]   ;;  %1402 = vperm.xlu1 %1746, %v1389_v18  }
  0xf1   : > { %469 = vst [vmem:[#allocation2 + $0x84] sm:$0xf] %v453_v33  ;;  %468 = vst [vmem:[#allocation2 + $0x80] sm:$0xf] %v452_v34  ;;  %v702_v36 = vpop.permute.xlu1 %701  ;;  %v700_v37 = vpop.permute.xlu0 %699  ;;  %1655 = vmatpush3.bf16.msra.mxu1 %v1779_v35 }
  0xf2   : > { %v710_v38 = vrot.slane %v702_v36, 4  ;;  %v709_v39 = vrot.slane %v700_v37, 4 }
  0xf4   : > { %v719_v42 = vsel %vm711_vm10, %v702_v36, %v710_v38  ;;  %v718_v43 = vsel %vm711_vm10, %v700_v37, %v709_v39  ;;  %v1783_v44 = vld [vmem:[#allocation2 + $0xc0] sm:$0xff]  }
  0xf5   : > { %735 = vst [vmem:[#allocation2 + $0x11c] sm:$0xf] %v719_v42  ;;  %734 = vst [vmem:[#allocation2 + $0x118] sm:$0xf] %v718_v43  ;;  %v698_v45 = vpop.permute.xlu1 %697  ;;  %v696_v46 = vpop.permute.xlu0 %695  ;;  %1656 = vmatprep.subr.bf16.mxu1 %v1783_v44  ;;  %1226 = vmatmul.mubr.bf16.gmra.mxu0 %v1791_v40 }
  0xf6   : > { %v708_v47 = vrot.slane %v698_v45, 4  ;;  %v707_v48 = vrot.slane %v696_v46, 4  ;;  %1233 = vmatprep.mubr.bf16.mxu0 %v1794_v41 }
  0xf8   : > { %v717_v49 = vsel %vm711_vm10, %v698_v45, %v708_v47  ;;  %v716_v50 = vsel %vm711_vm10, %v696_v46, %v707_v48  ;;  %v1784_v51 = vld [vmem:[#allocation2 + $0x80] sm:$0xff]  }
  0xf9   : > { %733 = vst [vmem:[#allocation2 + $0x114] sm:$0xf] %v717_v49  ;;  %732 = vst [vmem:[#allocation2 + $0x110] sm:$0xf] %v716_v50  ;;  %v694_v52 = vpop.permute.xlu1 %693  ;;  %v692_v53 = vpop.permute.xlu0 %691  ;;  %1657 = vmatpush3.bf16.msra.mxu1 %v1784_v51 }
  0xfa   : > { %v706_v55 = vrot.slane %v694_v52, 4  ;;  %v705_v56 = vrot.slane %v692_v53, 4 }
  0xfc   : > { %v715_v59 = vsel %vm711_vm10, %v694_v52, %v706_v55  ;;  %v714_v60 = vsel %vm711_vm10, %v692_v53, %v705_v56  ;;  %v1792_v61 = vld [vmem:[#allocation2 + $0x118] sm:$0xff]   ;;  %1275 = vmatmul.mubr.bf16.vlgmr.msra.gmra.mxu1 %v1786_v54 }
  0xfd   : > { %731 = vst [vmem:[#allocation2 + $0x10c] sm:$0xf] %v715_v59  ;;  %730 = vst [vmem:[#allocation2 + $0x108] sm:$0xf] %v714_v60  ;;  %v690_v62 = vpop.permute.xlu1 %689  ;;  %v688_v63 = vpop.permute.xlu0 %687  ;;  %1699 = vmatprep.subr.bf16.mxu0 %v1792_v61  ;;  %1282 = vmatprep.mubr.bf16.mxu1 %v1796_v57 }
  0xfe   : > { %v704_v1 = vrot.slane %v690_v62, 4  ;;  %v703_v2 = vrot.slane %v688_v63, 4  ;;  %1700 = vmatpush3.bf16.msra.mxu0 %v1792_v61 }
  0xff   : > { %1234 = vmatmul.mubr.bf16.gmra.mxu0 %v1798_v58 }
 0x100   : > { %v713_v3 = vsel %vm711_vm10, %v690_v62, %v704_v1  ;;  %v712_v4 = vsel %vm711_vm10, %v688_v63, %v703_v2  ;;  %v1793_v5 = vld [vmem:[#allocation2 + $0x110] sm:$0xff]   ;;  %1707 = vmatprep.mubr.msk.bf16.mxu0 %vm1158_vm11, %v1805_v0 }
 0x101   : > { %729 = vst [vmem:[#allocation2 + $0x104] sm:$0xf] %v713_v3  ;;  %728 = vst [vmem:[#allocation2 + $0x100] sm:$0xf] %v712_v4  ;;  %1701 = vmatprep.subr.bf16.mxu0 %v1793_v5 }
 0x102   : > { %1702 = vmatpush3.bf16.msra.mxu0 %v1793_v5 }
 0x104   : > { %v1800_v8 = vld [vmem:[#allocation2 + $0x108] sm:$0xff]   ;;  %1283 = vmatmul.mubr.bf16.gmra.mxu1 %v1799_v6 }
 0x105   : > { %1703 = vmatprep.subr.bf16.mxu0 %v1800_v8  ;;  %1290 = vmatprep.mubr.bf16.mxu1 %v1802_v7 }
 0x106   : > { %1704 = vmatpush3.bf16.msra.mxu0 %v1800_v8 }
 0x108   : > { %v1801_v9 = vld [vmem:[#allocation2 + $0x100] sm:$0xff]  }
 0x109   : > { %1705 = vmatprep.subr.bf16.mxu0 %v1801_v9 }
 0x10a   : > { %1706 = vmatpush3.bf16.msra.mxu0 %v1801_v9 }
 0x10c   : > { %1291 = vmatmul.mubr.bf16.gmra.mxu1 %v1804_v10 }
 0x10d   : > { %1708 = vmatmul.mubr.msk.bf16.vlgmr.msra.gmra.mxu0 %vm1158_vm11, %v1806_v20  ;;  %1298 = vmatprep.mubr.bf16.mxu1 %v1807_v11 }
 0x10e   : > { %1711 = vmatprep.mubr.msk.bf16.mxu0 %vm1158_vm11, %v1810_v12 }
 0x114   : > { %1299 = vmatmul.mubr.bf16.gmra.mxu1 %v1809_v13 }
 0x115   : > { %1712 = vmatmul.mubr.msk.bf16.gmra.mxu0 %vm1158_vm11, %v1811_v14  ;;  %1723 = vmatprep.mubr.msk.bf16.mxu1 %vm1413_vm12, %v1812_v15 }
 0x1a5   : > { %v2144_v19 = vpop.f32.mrf.mxu0 }
 0x1a7   : > { %v2146_v21 = vpop.f32.mrf.mxu0 }
 0x1a9   : > { %v1621_v22 = vpop.f32.mrf.mxu0 }
 0x1ab   : > { %v1622_v23 = vpop.f32.mrf.mxu0 }
 0x1ac   : > { %v1623_v17 = vadd.f32 %v1622_v23, %v1621_v22 }
 0x1ad   : > { %v1624_v24 = vpop.f32.mrf.mxu0 }
 0x1af   : > { %v1625_v25 = vpop.f32.mrf.mxu0 }
 0x1b0   : > { %v1626_v12 = vadd.f32 %v1625_v25, %v1624_v24 }
 0x1b1   : > { %v1627_v26 = vpop.f32.mrf.mxu0 }
 0x1b3   : > { %v1628_v27 = vpop.f32.mrf.mxu0 }
 0x1b4   : > { %v1629_v7 = vadd.f32 %v1628_v27, %v1627_v26  ;;  %v1620_v26 = vadd.f32 %v2146_v21, %v2144_v19  ;;  %v1813_v21 = vld [vmem:[%s2162_s1 + $0x8] ss:$0 sps:$4 sm:$0xff]  }
 0x1b5   : > { %v1630_v28 = vpop.f32.mrf.mxu0 }
 0x1b7   : > { %v1631_v29 = vpop.f32.mrf.mxu0 }
 0x1b8   : > { %v1632_v0 = vadd.f32 %v1631_v29, %v1630_v28 }
 0x1b9   : > { %v1633_v30 = vpop.f32.mrf.mxu0 }
 0x1bb   : > { %v1634_v31 = vpop.f32.mrf.mxu0 }
 0x1bc   : > { %v1658_v32 = vpop.f32.mrf.mxu1  ;;  %v1635_v60 = vadd.f32 %v1634_v31, %v1633_v30 }
 0x1be   : > { %v1659_v33 = vpop.f32.mrf.mxu1 }
 0x1bf   : > { %v1636_v34 = vpop.f32.mrf.mxu0  ;;  %v1660_v18 = vadd.f32 %v1659_v33, %v1658_v32 }
 0x1c0   : > { %v1661_v35 = vpop.f32.mrf.mxu1 }
 0x1c1   : > { %v1637_v36 = vpop.f32.mrf.mxu0 }
 0x1c2   : > { %v1662_v37 = vpop.f32.mrf.mxu1  ;;  %v1638_v55 = vadd.f32 %v1637_v36, %v1636_v34 }
 0x1c3   : > { %v1639_v39 = vpop.f32.mrf.mxu0  ;;  %v1663_v13 = vadd.f32 %v1662_v37, %v1661_v35 }
 0x1c4   : > { %v1664_v38 = vpop.f32.mrf.mxu1 }
 0x1c5   : > { %v1640_v42 = vpop.f32.mrf.mxu0  ;;  %v1280_v36 = vadd.f32 %v1663_v13, %v1623_v17 }
 0x1c6   : > { %v1665_v40 = vpop.f32.mrf.mxu1  ;;  %v1641_v2 = vadd.f32 %v1640_v42, %v1639_v39 }
 0x1c7   : > { %v1666_v8 = vadd.f32 %v1665_v40, %v1664_v38  ;;  %v1277_v40 = vadd.f32 %v1660_v18, %v1620_v26 }
 0x1c8   : > { %v1667_v41 = vpop.f32.mrf.mxu1 }
 0x1c9   : > { %v1285_v28 = vadd.f32 %v1666_v8, %v1626_v12 }
 0x1ca   : > { %v1668_v43 = vpop.f32.mrf.mxu1 }
 0x1cb   : > { %v1669_v3 = vadd.f32 %v1668_v43, %v1667_v41  ;;  %v1398_v41 = vpop.permute.xlu1 %1397 }
 0x1cc   : > { %v1670_v44 = vpop.f32.mrf.mxu1 }
 0x1cd   : > { %v1709_v45 = vpop.f32.mrf.mxu0  ;;  %v1288_v14 = vadd.f32 %v1669_v3, %v1629_v7 }
 0x1ce   : > { %v1671_v46 = vpop.f32.mrf.mxu1  ;;  %v1350_v27 = vadd.f32 %v1709_v45, %v1285_v28 }
 0x1cf   : > { %v1341_v47 = vpop.f32.mrf.mxu0  ;;  %v1672_v61 = vadd.f32 %v1671_v46, %v1670_v44  ;;  %v1403_v42 = vpop.permute.xlu1 %1402 }
 0x1d0   : > { %v1673_v48 = vpop.f32.mrf.mxu1  ;;  %v1374_v22 = vmax.f32 %v1350_v27, 0.0  ;;  %v1342_v23 = vadd.f32 %v1341_v47, %v1277_v40  ;;  %v1393_v44 = vpop.permute.xlu0 %1392 }
 0x1d1   : > { %v1710_v49 = vpop.f32.mrf.mxu0  ;;  %v1293_v10 = vadd.f32 %v1672_v61, %v1632_v0 }
 0x1d2   : > { %v1674_v50 = vpop.f32.mrf.mxu1  ;;  %v1353_v29 = vadd.f32 %v1710_v49, %v1288_v14  ;;  %v1372_v37 = vmax.f32 %v1342_v23, 0.0 }
 0x1d3   : > { %v1344_v51 = vpop.f32.mrf.mxu0  ;;  %v1675_v56 = vadd.f32 %v1674_v50, %v1673_v48 }
 0x1d4   : > { %v1676_v52 = vpop.f32.mrf.mxu1  ;;  %v1375_v24 = vmax.f32 %v1353_v29, 0.0  ;;  %v1345_v25 = vadd.f32 %v1344_v51, %v1280_v36 }
 0x1d5   : > { %v1713_v53 = vpop.f32.mrf.mxu0  ;;  %v1296_v5 = vadd.f32 %v1675_v56, %v1635_v60 }
 0x1d6   : > { %v1677_v54 = vpop.f32.mrf.mxu1  ;;  %v1381_v32 = vpack.c.bf16 %v1375_v24, %v1374_v22  ;;  %v1373_v33 = vmax.f32 %v1345_v25, 0.0 }
 0x1d7   : > { %v1678_v57 = vadd.f32 %v1677_v54, %v1676_v52  ;;  %v1357_v58 = vpop.f32.mrf.mxu0 }
 0x1d8   : > { %v1679_v59 = vpop.f32.mrf.mxu1  ;;  %v1358_v15 = vadd.f32 %v1357_v58, %v1293_v10  ;;  %v1380_v19 = vpack.c.bf16 %v1373_v33, %v1372_v37 }
 0x1d9   : > { %v1301_v62 = vadd.f32 %v1678_v57, %v1638_v55  ;;  %v1714_v63 = vpop.f32.mrf.mxu0 }
 0x1da   : > { %v1680_v1 = vpop.f32.mrf.mxu1  ;;  %v1376_v38 = vmax.f32 %v1358_v15, 0.0 }
 0x1db   : > { %v1681_v4 = vadd.f32 %v1680_v1, %v1679_v59  ;;  %v1360_v6 = vpop.f32.mrf.mxu0  ;;  %v1366_v9 = vadd.f32 %v1713_v53, %v1301_v62 }
 0x1dc   : > { %v1361_v11 = vadd.f32 %v1360_v6, %v1296_v5 }
 0x1dd   : > { %v1304_v20 = vadd.f32 %v1681_v4, %v1641_v2  ;;  %v1378_v30 = vmax.f32 %v1366_v9, 0.0 }
 0x1de   : > { %v1377_v34 = vmax.f32 %v1361_v11, 0.0 }
 0x1df   : > { %v1369_v16 = vadd.f32 %v1714_v63, %v1304_v20 }
 0x1e0   : > { %v1382_v35 = vpack.c.bf16 %v1377_v34, %v1376_v38 }
 0x1e1   : > { %v1379_v31 = vmax.f32 %v1369_v16, 0.0 }
 0x1e3   : > { %v1383_v39 = vpack.c.bf16 %v1379_v31, %v1378_v30 }
 0x1e5   : > { %1715 = vmatprep.subr.bf16.mxu1 %v1383_v39 }
 0x1e6   : > { %1716 = vmatpush3.bf16.msra.mxu1 %v1383_v39 }
 0x1e7   : > { %1717 = vmatprep.subr.bf16.mxu1 %v1382_v35 }
 0x1ea   : > { %1718 = vmatpush3.bf16.msra.mxu1 %v1382_v35 }
 0x1eb   : > { %1719 = vmatprep.subr.bf16.mxu1 %v1381_v32 }
 0x1ee   : > { %1720 = vmatpush3.bf16.msra.mxu1 %v1381_v32 }
 0x1ef   : > { %1721 = vmatprep.subr.bf16.mxu1 %v1380_v19 }
 0x1f2   : > { %1722 = vmatpush3.bf16.msra.mxu1 %v1380_v19 }
 0x1f5   : > { %1724 = vmatmul.mubr.msk.bf16.vlgmr.msra.gmra.mxu1 %vm1413_vm12, %v1813_v21 }
 0x2b5   : > { %v1725_v43 = vpop.f32.mrf.mxu1 }
 0x2b6   : > { %v1463_v45 = vadd.f32 %v1725_v43, %v1403_v42 }
 0x2b7   : > { %v1454_v46 = vpop.f32.mrf.mxu1 }
 0x2b8   : > { %1470 = vst [vmem:[%s197_s8 + $0x10] sm:$0xff] %v1463_v45  ;;  %v1455_v47 = vadd.f32 %v1454_v46, %v1393_v44 }
 0x2b9   : > { %v1726_v48 = vpop.f32.mrf.mxu1 }
 0x2ba   : > { %1468 = vst [vmem:[%s197_s8] sm:$0xff] %v1455_v47 }
 0x2bb   : > { %v1457_v49 = vpop.f32.mrf.mxu1 }
 0x2bc   : > { %v1458_v50 = vadd.f32 %v1457_v49, %v1398_v41 }
 0x2be   : > { %1469 = vst [vmem:[%s197_s8 + $0x8] sm:$0xff] %v1458_v50 }
 0x2bf PF: > { %s14_s15 = sadd.s32 1, %s1820_s15  }
 0x2c0   : > { %p11_p4 = scmp.ge.s32.totalorder %s14_s15, 4  }
 0x2c2   :  { %13 = sbr.rel (!%p11_p4) target bundleno = 1 (0x1), region = 66 }

</bundles_post_ra>
